<compile_context>
chip_gen: v7x
topology: tpu7x:2x2x1
jax: 0.10.0
libtpu: 0.0.40
codegen_flags: <defaults>
</compile_context>

<pallas_src>
from functools import partial

import jax
import jax.numpy as jnp
from jax.experimental import pallas as pl
from jax.experimental.pallas import tpu as pltpu

jax.config.update("jax_default_matmul_precision", "highest")

EPS = 1e-5  # PyTorch LayerNorm default eps


def _layer_norm(x, gamma, beta):
    # x: (N, E); gamma/beta: (1, E) -- biased variance, like nn.LayerNorm
    mu = jnp.mean(x, axis=-1, keepdims=True)
    xc = x - mu
    var = jnp.mean(xc * xc, axis=-1, keepdims=True)
    inv = jax.lax.rsqrt(var + EPS)
    return xc * inv * gamma + beta


def encoder_kernel(x_ref,
                   wqkv_ref, bqkv_ref,
                   wo_ref, bo_ref,
                   g1_ref, be1_ref,
                   w1_ref, b1_ref,
                   w2_ref, b2_ref,
                   g2_ref, be2_ref,
                   o_ref,
                   *, num_heads, seq_len, embed_dim):
    Bt = x_ref.shape[0]
    S, E, H = seq_len, embed_dim, num_heads
    dh = E // H

    # (Bt, S, E) -> (Bt*S, E): leading-dim merge only (free, no relayout).
    x = x_ref[...].reshape(Bt * S, E)

    # --- fused QKV projection: one (Bt*S, E) @ (E, 3E) MXU pass.
    # The 1/sqrt(dh) query scale is already folded into W_q / b_q.
    qkv = (jnp.dot(x, wqkv_ref[...], preferred_element_type=jnp.float32)
           + bqkv_ref[...])
    qkv = qkv.reshape(Bt, S, 3 * E)        # leading-dim split (free)

    # --- attention, batched over the whole Bt batch per head.  Heads are a
    # static unroll; their dh-wide lane slices stay in place (no relayout) and
    # the head outputs are merged with a single lane-axis concatenate feeding
    # one full-width output projection.
    head_outs = []
    for h in range(H):
        lo = h * dh
        qh = qkv[:, :, lo:lo + dh]                    # (Bt, S, dh), pre-scaled
        kh = qkv[:, :, E + lo:E + lo + dh]            # (Bt, S, dh)
        vh = qkv[:, :, 2 * E + lo:2 * E + lo + dh]    # (Bt, S, dh)

        s = jnp.einsum("bqd,bkd->bqk", qh, kh,
                       preferred_element_type=jnp.float32)     # (Bt, S, S)
        s = s - jnp.max(s, axis=-1, keepdims=True)
        p = jnp.exp(s)
        l = jnp.sum(p, axis=-1, keepdims=True)                 # (Bt, S, 1)
        oh = jnp.einsum("bqk,bkd->bqd", p, vh,
                        preferred_element_type=jnp.float32)    # (Bt, S, dh)
        # Normalize after P@V: (Bt,S,1) reciprocal + cheap scale instead of an
        # (S,S)-wide divide.  approx=True (EUP vrcp) is a further free lever
        # once the 1e-4 parity tolerance is relaxed.
        head_outs.append(oh * pl.reciprocal(l))

    # concat(heads) -> single (Bt*S, E) @ (E, E) output projection.
    attn = jnp.concatenate(head_outs, axis=-1).reshape(Bt * S, E)
    attn = (jnp.dot(attn, wo_ref[...], preferred_element_type=jnp.float32)
            + bo_ref[...])

    # --- residual + LayerNorm 1
    x1 = _layer_norm(x + attn, g1_ref[...], be1_ref[...])

    # --- FFN: Linear -> ReLU -> Linear
    hmid = jnp.dot(x1, w1_ref[...], preferred_element_type=jnp.float32) + b1_ref[...]
    hact = jnp.maximum(hmid, 0.0)
    ff = jnp.dot(hact, w2_ref[...], preferred_element_type=jnp.float32) + b2_ref[...]

    # --- residual + LayerNorm 2
    y = _layer_norm(x1 + ff, g2_ref[...], be2_ref[...])
    o_ref[...] = y.reshape(Bt, S, E)       # leading-dim split only (free)


def _num_blocks(batch, seq_len):
    # 2-way split only pays on v7x (2 TensorCores) AND when each half still
    # feeds the MXU at least one full 256-row tile; otherwise the split is a
    # serial loop with doubled per-step overhead (v5e/v6e have a single TC).
    if batch % 2 == 0 and (batch // 2) * seq_len >= 256:
        return 2
    return 1


def transformer_encoder(x, params, num_heads):
    B, S, E = x.shape
    weights = list(params)

    num_blocks = _num_blocks(B, S)
    Bt = B // num_blocks

    x_spec = pl.BlockSpec((Bt, S, E), lambda i: (i, 0, 0))
    # Constant-index weight blocks.  (pipeline_mode=pl.Buffered(1) would drop
    # the redundant second buffer at large E/FF; irrelevant at this size.)
    w_specs = [pl.BlockSpec(w.shape, lambda i: (0, 0)) for w in weights]
    out_spec = pl.BlockSpec((Bt, S, E), lambda i: (i, 0, 0))

    return pl.pallas_call(
        partial(encoder_kernel, num_heads=num_heads, seq_len=S, embed_dim=E),
        out_shape=jax.ShapeDtypeStruct((B, S, E), jnp.float32),
        grid_spec=pltpu.PrefetchScalarGridSpec(
            num_scalar_prefetch=0,
            grid=(num_blocks,),
            in_specs=[x_spec] + w_specs,
            out_specs=out_spec,
        ),
        compiler_params=pltpu.CompilerParams(
            dimension_semantics=("parallel",)),
    )(x, *weights)


# ---------------------------------------------------------------------------
# Parameters (PyTorch-style raw weights) and pure-JAX reference.
# ---------------------------------------------------------------------------

def make_raw_params(key, E, FF):
    ks = jax.random.split(key, 8)
    in_proj_w = 0.05 * jax.random.normal(ks[0], (3 * E, E), jnp.float32)
    in_proj_b = 0.05 * jax.random.normal(ks[1], (3 * E,), jnp.float32)
    out_proj_w = 0.05 * jax.random.normal(ks[2], (E, E), jnp.float32)
    out_proj_b = 0.05 * jax.random.normal(ks[3], (E,), jnp.float32)
    ff1_w = 0.05 * jax.random.normal(ks[4], (FF, E), jnp.float32)
    ff1_b = 0.05 * jax.random.normal(ks[5], (FF,), jnp.float32)
    ff2_w = 0.05 * jax.random.normal(ks[6], (E, FF), jnp.float32)
    ff2_b = 0.05 * jax.random.normal(ks[7], (E,), jnp.float32)
    # LayerNorm params: PyTorch default init (ones / zeros)
    g1 = jnp.ones((E,), jnp.float32)
    be1 = jnp.zeros((E,), jnp.float32)
    g2 = jnp.ones((E,), jnp.float32)
    be2 = jnp.zeros((E,), jnp.float32)
    return (in_proj_w, in_proj_b, out_proj_w, out_proj_b,
            ff1_w, ff1_b, ff2_w, ff2_b, g1, be1, g2, be2)


def prepare_kernel_params(raw, E, FF, num_heads):
    """Host-side weight prep: transpose, fuse QKV, fold the query scale."""
    (in_w, in_b, out_w, out_b, f1w, f1b, f2w, f2b, g1, be1, g2, be2) = raw
    dh = E // num_heads
    scale = 1.0 / (dh ** 0.5)

    # PyTorch Linear stores (out, in); y = x @ W.T + b -> pre-transpose.
    wq_t = in_w[0:E].T * scale           # fold 1/sqrt(dh) into W_q
    wk_t = in_w[E:2 * E].T
    wv_t = in_w[2 * E:3 * E].T
    bq = in_b[0:E] * scale               # ... and into b_q
    bk = in_b[E:2 * E]
    bv = in_b[2 * E:3 * E]
    wqkv = jnp.concatenate([wq_t, wk_t, wv_t], axis=1)        # (E, 3E)
    bqkv = jnp.concatenate([bq, bk, bv]).reshape(1, 3 * E)    # (1, 3E)

    wo_t = out_w.T                        # (E, E)
    bo = out_b.reshape(1, E)
    w1_t = f1w.T                          # (E, FF)
    b1 = f1b.reshape(1, FF)
    w2_t = f2w.T                          # (FF, E)
    b2 = f2b.reshape(1, E)

    return (wqkv, bqkv, wo_t, bo,
            g1.reshape(1, E), be1.reshape(1, E),
            w1_t, b1, w2_t, b2,
            g2.reshape(1, E), be2.reshape(1, E))


def reference_forward(x, raw, num_heads):
    """Plain-JAX reference mirroring PyTorch MHA / LayerNorm / FFN semantics."""
    (in_w, in_b, out_w, out_b, f1w, f1b, f2w, f2b, g1, be1, g2, be2) = raw
    B, S, E = x.shape
    dh = E // num_heads
    scale = 1.0 / (dh ** 0.5)

    qkv = x @ in_w.T + in_b
    q, k, v = jnp.split(qkv, 3, axis=-1)
    q = q.reshape(B, S, num_heads, dh).transpose(0, 2, 1, 3) * scale
    k = k.reshape(B, S, num_heads, dh).transpose(0, 2, 1, 3)
    v = v.reshape(B, S, num_heads, dh).transpose(0, 2, 1, 3)
    s = jnp.einsum("bhqd,bhkd->bhqk", q, k)
    p = jax.nn.softmax(s, axis=-1)
    o = jnp.einsum("bhqk,bhkd->bhqd", p, v)
    o = o.transpose(0, 2, 1, 3).reshape(B, S, E)
    attn = o @ out_w.T + out_b

    def ln(y, g, b):
        mu = jnp.mean(y, -1, keepdims=True)
        var = jnp.mean((y - mu) ** 2, -1, keepdims=True)
        return (y - mu) * jax.lax.rsqrt(var + EPS) * g + b

    x1 = ln(x + attn, g1, be1)
    ff = jnp.maximum(x1 @ f1w.T + f1b, 0.0) @ f2w.T + f2b
    return ln(x1 + ff, g2, be2)


if __name__ == "__main__":
    B, S, E, FF = 2, 8, 32, 128
    # num_heads = max divisor of E that is <= 8  (matches the PyTorch __init__)
    num_heads = max(h for h in range(1, E + 1) if E % h == 0 and h <= 8)

    key = jax.random.PRNGKey(0)
    kx, kp = jax.random.split(key)
    x = jax.random.normal(kx, (B, S, E), jnp.float32)

    raw = make_raw_params(kp, E, FF)
    kparams = prepare_kernel_params(raw, E, FF, num_heads)

    out = transformer_encoder(x, kparams, num_heads)
    out = jax.block_until_ready(out)

    ref = reference_forward(x, raw, num_heads)
    assert out.shape == (B, S, E)
    assert jnp.allclose(out, ref, rtol=1e-4, atol=1e-4), "mismatch vs reference"

    print("KERNEL_OK")
</pallas_src>

<mosaic_0001>
module attributes {stable_mosaic.version = 11 : i64} {
  func.func @encoder_kernel(%arg0: i32, %arg1: memref<2x8x32xf32, #tpu.memory_space<vmem>>, %arg2: memref<32x96xf32, #tpu.memory_space<vmem>>, %arg3: memref<1x96xf32, #tpu.memory_space<vmem>>, %arg4: memref<32x32xf32, #tpu.memory_space<vmem>>, %arg5: memref<1x32xf32, #tpu.memory_space<vmem>>, %arg6: memref<1x32xf32, #tpu.memory_space<vmem>>, %arg7: memref<1x32xf32, #tpu.memory_space<vmem>>, %arg8: memref<32x128xf32, #tpu.memory_space<vmem>>, %arg9: memref<1x128xf32, #tpu.memory_space<vmem>>, %arg10: memref<128x32xf32, #tpu.memory_space<vmem>>, %arg11: memref<1x32xf32, #tpu.memory_space<vmem>>, %arg12: memref<1x32xf32, #tpu.memory_space<vmem>>, %arg13: memref<1x32xf32, #tpu.memory_space<vmem>>, %arg14: memref<2x8x32xf32, #tpu.memory_space<vmem>>) attributes {dimension_semantics = [#tpu.dimension_semantics<parallel>], iteration_bounds = array<i64: 1>, scalar_prefetch = 0 : i64, scratch_operands = 0 : i64, tpu.core_type = #tpu.core_type<tc>, window_params = [{transform_indices = @transform_0, window_bounds = array<i64: 2, 8, 32>}, {pipeline_mode = #tpu.pipeline_mode<synchronous>, transform_indices = @transform_1, window_bounds = array<i64: 32, 96>}, {pipeline_mode = #tpu.pipeline_mode<synchronous>, transform_indices = @transform_2, window_bounds = array<i64: 1, 96>}, {pipeline_mode = #tpu.pipeline_mode<synchronous>, transform_indices = @transform_3, window_bounds = array<i64: 32, 32>}, {pipeline_mode = #tpu.pipeline_mode<synchronous>, transform_indices = @transform_4, window_bounds = array<i64: 1, 32>}, {pipeline_mode = #tpu.pipeline_mode<synchronous>, transform_indices = @transform_5, window_bounds = array<i64: 1, 32>}, {pipeline_mode = #tpu.pipeline_mode<synchronous>, transform_indices = @transform_6, window_bounds = array<i64: 1, 32>}, {pipeline_mode = #tpu.pipeline_mode<synchronous>, transform_indices = @transform_7, window_bounds = array<i64: 32, 128>}, {pipeline_mode = #tpu.pipeline_mode<synchronous>, transform_indices = @transform_8, window_bounds = array<i64: 1, 128>}, {pipeline_mode = #tpu.pipeline_mode<synchronous>, transform_indices = @transform_9, window_bounds = array<i64: 128, 32>}, {pipeline_mode = #tpu.pipeline_mode<synchronous>, transform_indices = @transform_10, window_bounds = array<i64: 1, 32>}, {pipeline_mode = #tpu.pipeline_mode<synchronous>, transform_indices = @transform_11, window_bounds = array<i64: 1, 32>}, {pipeline_mode = #tpu.pipeline_mode<synchronous>, transform_indices = @transform_12, window_bounds = array<i64: 1, 32>}, {transform_indices = @transform_13, window_bounds = array<i64: 2, 8, 32>}]} {
    %c0 = arith.constant 0 : index
    %c0_0 = arith.constant 0 : index
    %c0_1 = arith.constant 0 : index
    %0 = vector.load %arg1[%c0, %c0_0, %c0_1] : memref<2x8x32xf32, #tpu.memory_space<vmem>>, vector<2x8x32xf32>
    %1 = vector.shape_cast %0 : vector<2x8x32xf32> to vector<16x32xf32>
    %c0_2 = arith.constant 0 : index
    %c0_3 = arith.constant 0 : index
    %2 = vector.load %arg2[%c0_2, %c0_3] : memref<32x96xf32, #tpu.memory_space<vmem>>, vector<32x96xf32>
    %cst = arith.constant dense<0.000000e+00> : vector<16x96xf32>
    %3 = tpu.matmul %1, %2, %cst {dimension_numbers = #tpu.dot_dimension_numbers<[1], [0], [0], [1], [0, 0, 1, 1], [], []>, precision = #tpu.contract_precision<fp32>} : vector<16x32xf32>, vector<32x96xf32>, vector<16x96xf32> -> vector<16x96xf32>
    %c0_4 = arith.constant 0 : index
    %c0_5 = arith.constant 0 : index
    %4 = vector.load %arg3[%c0_4, %c0_5] : memref<1x96xf32, #tpu.memory_space<vmem>>, vector<1x96xf32>
    %5 = vector.broadcast %4 : vector<1x96xf32> to vector<16x96xf32>
    %6 = arith.addf %3, %5 : vector<16x96xf32>
    %7 = vector.shape_cast %6 : vector<16x96xf32> to vector<2x8x96xf32>
    %8 = vector.extract_strided_slice %7 {offsets = [0, 0, 0], sizes = [2, 8, 4], strides = [1, 1, 1]} : vector<2x8x96xf32> to vector<2x8x4xf32>
    %9 = vector.extract_strided_slice %7 {offsets = [0, 0, 32], sizes = [2, 8, 4], strides = [1, 1, 1]} : vector<2x8x96xf32> to vector<2x8x4xf32>
    %10 = vector.extract_strided_slice %7 {offsets = [0, 0, 64], sizes = [2, 8, 4], strides = [1, 1, 1]} : vector<2x8x96xf32> to vector<2x8x4xf32>
    "tpu.trace_start"() <{level = 10 : i32, message = "bqd,bkd->bqk"}> : () -> ()
    %cst_6 = arith.constant dense<0.000000e+00> : vector<2x8x8xf32>
    %11 = tpu.matmul %8, %9, %cst_6 {dimension_numbers = #tpu.dot_dimension_numbers<[2], [2], [1], [1], [0, 0, 0, 1, 1, 1], [0], [0]>, precision = #tpu.contract_precision<fp32>} : vector<2x8x4xf32>, vector<2x8x4xf32>, vector<2x8x8xf32> -> vector<2x8x8xf32>
    "tpu.trace_stop"() : () -> ()
    %cst_7 = arith.constant dense<0xFF800000> : vector<2x8xf32>
    %12 = vector.multi_reduction <maximumf>, %11, %cst_7 [2] : vector<2x8x8xf32> to vector<2x8xf32>
    %13 = vector.shape_cast %12 : vector<2x8xf32> to vector<2x8x1xf32>
    %14 = vector.broadcast %13 : vector<2x8x1xf32> to vector<2x8x8xf32>
    %15 = arith.subf %11, %14 : vector<2x8x8xf32>
    %16 = math.exp %15 : vector<2x8x8xf32>
    %cst_8 = arith.constant dense<0.000000e+00> : vector<2x8xf32>
    %17 = vector.multi_reduction <add>, %16, %cst_8 [2] : vector<2x8x8xf32> to vector<2x8xf32>
    %18 = vector.shape_cast %17 : vector<2x8xf32> to vector<2x8x1xf32>
    "tpu.trace_start"() <{level = 10 : i32, message = "bqk,bkd->bqd"}> : () -> ()
    %cst_9 = arith.constant dense<0.000000e+00> : vector<2x8x4xf32>
    %19 = tpu.matmul %16, %10, %cst_9 {dimension_numbers = #tpu.dot_dimension_numbers<[2], [1], [1], [2], [0, 0, 0, 1, 1, 2], [0], [0]>, precision = #tpu.contract_precision<fp32>} : vector<2x8x8xf32>, vector<2x8x4xf32>, vector<2x8x4xf32> -> vector<2x8x4xf32>
    "tpu.trace_stop"() : () -> ()
    %20 = tpu.reciprocal %18 : vector<2x8x1xf32> -> vector<2x8x1xf32>
    %21 = vector.broadcast %20 : vector<2x8x1xf32> to vector<2x8x4xf32>
    %22 = arith.mulf %19, %21 : vector<2x8x4xf32>
    %23 = vector.extract_strided_slice %7 {offsets = [0, 0, 4], sizes = [2, 8, 4], strides = [1, 1, 1]} : vector<2x8x96xf32> to vector<2x8x4xf32>
    %24 = vector.extract_strided_slice %7 {offsets = [0, 0, 36], sizes = [2, 8, 4], strides = [1, 1, 1]} : vector<2x8x96xf32> to vector<2x8x4xf32>
    %25 = vector.extract_strided_slice %7 {offsets = [0, 0, 68], sizes = [2, 8, 4], strides = [1, 1, 1]} : vector<2x8x96xf32> to vector<2x8x4xf32>
    "tpu.trace_start"() <{level = 10 : i32, message = "bqd,bkd->bqk"}> : () -> ()
    %cst_10 = arith.constant dense<0.000000e+00> : vector<2x8x8xf32>
    %26 = tpu.matmul %23, %24, %cst_10 {dimension_numbers = #tpu.dot_dimension_numbers<[2], [2], [1], [1], [0, 0, 0, 1, 1, 1], [0], [0]>, precision = #tpu.contract_precision<fp32>} : vector<2x8x4xf32>, vector<2x8x4xf32>, vector<2x8x8xf32> -> vector<2x8x8xf32>
    "tpu.trace_stop"() : () -> ()
    %cst_11 = arith.constant dense<0xFF800000> : vector<2x8xf32>
    %27 = vector.multi_reduction <maximumf>, %26, %cst_11 [2] : vector<2x8x8xf32> to vector<2x8xf32>
    %28 = vector.shape_cast %27 : vector<2x8xf32> to vector<2x8x1xf32>
    %29 = vector.broadcast %28 : vector<2x8x1xf32> to vector<2x8x8xf32>
    %30 = arith.subf %26, %29 : vector<2x8x8xf32>
    %31 = math.exp %30 : vector<2x8x8xf32>
    %cst_12 = arith.constant dense<0.000000e+00> : vector<2x8xf32>
    %32 = vector.multi_reduction <add>, %31, %cst_12 [2] : vector<2x8x8xf32> to vector<2x8xf32>
    %33 = vector.shape_cast %32 : vector<2x8xf32> to vector<2x8x1xf32>
    "tpu.trace_start"() <{level = 10 : i32, message = "bqk,bkd->bqd"}> : () -> ()
    %cst_13 = arith.constant dense<0.000000e+00> : vector<2x8x4xf32>
    %34 = tpu.matmul %31, %25, %cst_13 {dimension_numbers = #tpu.dot_dimension_numbers<[2], [1], [1], [2], [0, 0, 0, 1, 1, 2], [0], [0]>, precision = #tpu.contract_precision<fp32>} : vector<2x8x8xf32>, vector<2x8x4xf32>, vector<2x8x4xf32> -> vector<2x8x4xf32>
    "tpu.trace_stop"() : () -> ()
    %35 = tpu.reciprocal %33 : vector<2x8x1xf32> -> vector<2x8x1xf32>
    %36 = vector.broadcast %35 : vector<2x8x1xf32> to vector<2x8x4xf32>
    %37 = arith.mulf %34, %36 : vector<2x8x4xf32>
    %38 = vector.extract_strided_slice %7 {offsets = [0, 0, 8], sizes = [2, 8, 4], strides = [1, 1, 1]} : vector<2x8x96xf32> to vector<2x8x4xf32>
    %39 = vector.extract_strided_slice %7 {offsets = [0, 0, 40], sizes = [2, 8, 4], strides = [1, 1, 1]} : vector<2x8x96xf32> to vector<2x8x4xf32>
    %40 = vector.extract_strided_slice %7 {offsets = [0, 0, 72], sizes = [2, 8, 4], strides = [1, 1, 1]} : vector<2x8x96xf32> to vector<2x8x4xf32>
    "tpu.trace_start"() <{level = 10 : i32, message = "bqd,bkd->bqk"}> : () -> ()
    %cst_14 = arith.constant dense<0.000000e+00> : vector<2x8x8xf32>
    %41 = tpu.matmul %38, %39, %cst_14 {dimension_numbers = #tpu.dot_dimension_numbers<[2], [2], [1], [1], [0, 0, 0, 1, 1, 1], [0], [0]>, precision = #tpu.contract_precision<fp32>} : vector<2x8x4xf32>, vector<2x8x4xf32>, vector<2x8x8xf32> -> vector<2x8x8xf32>
    "tpu.trace_stop"() : () -> ()
    %cst_15 = arith.constant dense<0xFF800000> : vector<2x8xf32>
    %42 = vector.multi_reduction <maximumf>, %41, %cst_15 [2] : vector<2x8x8xf32> to vector<2x8xf32>
    %43 = vector.shape_cast %42 : vector<2x8xf32> to vector<2x8x1xf32>
    %44 = vector.broadcast %43 : vector<2x8x1xf32> to vector<2x8x8xf32>
    %45 = arith.subf %41, %44 : vector<2x8x8xf32>
    %46 = math.exp %45 : vector<2x8x8xf32>
    %cst_16 = arith.constant dense<0.000000e+00> : vector<2x8xf32>
    %47 = vector.multi_reduction <add>, %46, %cst_16 [2] : vector<2x8x8xf32> to vector<2x8xf32>
    %48 = vector.shape_cast %47 : vector<2x8xf32> to vector<2x8x1xf32>
    "tpu.trace_start"() <{level = 10 : i32, message = "bqk,bkd->bqd"}> : () -> ()
    %cst_17 = arith.constant dense<0.000000e+00> : vector<2x8x4xf32>
    %49 = tpu.matmul %46, %40, %cst_17 {dimension_numbers = #tpu.dot_dimension_numbers<[2], [1], [1], [2], [0, 0, 0, 1, 1, 2], [0], [0]>, precision = #tpu.contract_precision<fp32>} : vector<2x8x8xf32>, vector<2x8x4xf32>, vector<2x8x4xf32> -> vector<2x8x4xf32>
    "tpu.trace_stop"() : () -> ()
    %50 = tpu.reciprocal %48 : vector<2x8x1xf32> -> vector<2x8x1xf32>
    %51 = vector.broadcast %50 : vector<2x8x1xf32> to vector<2x8x4xf32>
    %52 = arith.mulf %49, %51 : vector<2x8x4xf32>
    %53 = vector.extract_strided_slice %7 {offsets = [0, 0, 12], sizes = [2, 8, 4], strides = [1, 1, 1]} : vector<2x8x96xf32> to vector<2x8x4xf32>
    %54 = vector.extract_strided_slice %7 {offsets = [0, 0, 44], sizes = [2, 8, 4], strides = [1, 1, 1]} : vector<2x8x96xf32> to vector<2x8x4xf32>
    %55 = vector.extract_strided_slice %7 {offsets = [0, 0, 76], sizes = [2, 8, 4], strides = [1, 1, 1]} : vector<2x8x96xf32> to vector<2x8x4xf32>
    "tpu.trace_start"() <{level = 10 : i32, message = "bqd,bkd->bqk"}> : () -> ()
    %cst_18 = arith.constant dense<0.000000e+00> : vector<2x8x8xf32>
    %56 = tpu.matmul %53, %54, %cst_18 {dimension_numbers = #tpu.dot_dimension_numbers<[2], [2], [1], [1], [0, 0, 0, 1, 1, 1], [0], [0]>, precision = #tpu.contract_precision<fp32>} : vector<2x8x4xf32>, vector<2x8x4xf32>, vector<2x8x8xf32> -> vector<2x8x8xf32>
    "tpu.trace_stop"() : () -> ()
    %cst_19 = arith.constant dense<0xFF800000> : vector<2x8xf32>
    %57 = vector.multi_reduction <maximumf>, %56, %cst_19 [2] : vector<2x8x8xf32> to vector<2x8xf32>
    %58 = vector.shape_cast %57 : vector<2x8xf32> to vector<2x8x1xf32>
    %59 = vector.broadcast %58 : vector<2x8x1xf32> to vector<2x8x8xf32>
    %60 = arith.subf %56, %59 : vector<2x8x8xf32>
    %61 = math.exp %60 : vector<2x8x8xf32>
    %cst_20 = arith.constant dense<0.000000e+00> : vector<2x8xf32>
    %62 = vector.multi_reduction <add>, %61, %cst_20 [2] : vector<2x8x8xf32> to vector<2x8xf32>
    %63 = vector.shape_cast %62 : vector<2x8xf32> to vector<2x8x1xf32>
    "tpu.trace_start"() <{level = 10 : i32, message = "bqk,bkd->bqd"}> : () -> ()
    %cst_21 = arith.constant dense<0.000000e+00> : vector<2x8x4xf32>
    %64 = tpu.matmul %61, %55, %cst_21 {dimension_numbers = #tpu.dot_dimension_numbers<[2], [1], [1], [2], [0, 0, 0, 1, 1, 2], [0], [0]>, precision = #tpu.contract_precision<fp32>} : vector<2x8x8xf32>, vector<2x8x4xf32>, vector<2x8x4xf32> -> vector<2x8x4xf32>
    "tpu.trace_stop"() : () -> ()
    %65 = tpu.reciprocal %63 : vector<2x8x1xf32> -> vector<2x8x1xf32>
    %66 = vector.broadcast %65 : vector<2x8x1xf32> to vector<2x8x4xf32>
    %67 = arith.mulf %64, %66 : vector<2x8x4xf32>
    %68 = vector.extract_strided_slice %7 {offsets = [0, 0, 16], sizes = [2, 8, 4], strides = [1, 1, 1]} : vector<2x8x96xf32> to vector<2x8x4xf32>
    %69 = vector.extract_strided_slice %7 {offsets = [0, 0, 48], sizes = [2, 8, 4], strides = [1, 1, 1]} : vector<2x8x96xf32> to vector<2x8x4xf32>
    %70 = vector.extract_strided_slice %7 {offsets = [0, 0, 80], sizes = [2, 8, 4], strides = [1, 1, 1]} : vector<2x8x96xf32> to vector<2x8x4xf32>
    "tpu.trace_start"() <{level = 10 : i32, message = "bqd,bkd->bqk"}> : () -> ()
    %cst_22 = arith.constant dense<0.000000e+00> : vector<2x8x8xf32>
    %71 = tpu.matmul %68, %69, %cst_22 {dimension_numbers = #tpu.dot_dimension_numbers<[2], [2], [1], [1], [0, 0, 0, 1, 1, 1], [0], [0]>, precision = #tpu.contract_precision<fp32>} : vector<2x8x4xf32>, vector<2x8x4xf32>, vector<2x8x8xf32> -> vector<2x8x8xf32>
    "tpu.trace_stop"() : () -> ()
    %cst_23 = arith.constant dense<0xFF800000> : vector<2x8xf32>
    %72 = vector.multi_reduction <maximumf>, %71, %cst_23 [2] : vector<2x8x8xf32> to vector<2x8xf32>
    %73 = vector.shape_cast %72 : vector<2x8xf32> to vector<2x8x1xf32>
    %74 = vector.broadcast %73 : vector<2x8x1xf32> to vector<2x8x8xf32>
    %75 = arith.subf %71, %74 : vector<2x8x8xf32>
    %76 = math.exp %75 : vector<2x8x8xf32>
    %cst_24 = arith.constant dense<0.000000e+00> : vector<2x8xf32>
    %77 = vector.multi_reduction <add>, %76, %cst_24 [2] : vector<2x8x8xf32> to vector<2x8xf32>
    %78 = vector.shape_cast %77 : vector<2x8xf32> to vector<2x8x1xf32>
    "tpu.trace_start"() <{level = 10 : i32, message = "bqk,bkd->bqd"}> : () -> ()
    %cst_25 = arith.constant dense<0.000000e+00> : vector<2x8x4xf32>
    %79 = tpu.matmul %76, %70, %cst_25 {dimension_numbers = #tpu.dot_dimension_numbers<[2], [1], [1], [2], [0, 0, 0, 1, 1, 2], [0], [0]>, precision = #tpu.contract_precision<fp32>} : vector<2x8x8xf32>, vector<2x8x4xf32>, vector<2x8x4xf32> -> vector<2x8x4xf32>
    "tpu.trace_stop"() : () -> ()
    %80 = tpu.reciprocal %78 : vector<2x8x1xf32> -> vector<2x8x1xf32>
    %81 = vector.broadcast %80 : vector<2x8x1xf32> to vector<2x8x4xf32>
    %82 = arith.mulf %79, %81 : vector<2x8x4xf32>
    %83 = vector.extract_strided_slice %7 {offsets = [0, 0, 20], sizes = [2, 8, 4], strides = [1, 1, 1]} : vector<2x8x96xf32> to vector<2x8x4xf32>
    %84 = vector.extract_strided_slice %7 {offsets = [0, 0, 52], sizes = [2, 8, 4], strides = [1, 1, 1]} : vector<2x8x96xf32> to vector<2x8x4xf32>
    %85 = vector.extract_strided_slice %7 {offsets = [0, 0, 84], sizes = [2, 8, 4], strides = [1, 1, 1]} : vector<2x8x96xf32> to vector<2x8x4xf32>
    "tpu.trace_start"() <{level = 10 : i32, message = "bqd,bkd->bqk"}> : () -> ()
    %cst_26 = arith.constant dense<0.000000e+00> : vector<2x8x8xf32>
    %86 = tpu.matmul %83, %84, %cst_26 {dimension_numbers = #tpu.dot_dimension_numbers<[2], [2], [1], [1], [0, 0, 0, 1, 1, 1], [0], [0]>, precision = #tpu.contract_precision<fp32>} : vector<2x8x4xf32>, vector<2x8x4xf32>, vector<2x8x8xf32> -> vector<2x8x8xf32>
    "tpu.trace_stop"() : () -> ()
    %cst_27 = arith.constant dense<0xFF800000> : vector<2x8xf32>
    %87 = vector.multi_reduction <maximumf>, %86, %cst_27 [2] : vector<2x8x8xf32> to vector<2x8xf32>
    %88 = vector.shape_cast %87 : vector<2x8xf32> to vector<2x8x1xf32>
    %89 = vector.broadcast %88 : vector<2x8x1xf32> to vector<2x8x8xf32>
    %90 = arith.subf %86, %89 : vector<2x8x8xf32>
    %91 = math.exp %90 : vector<2x8x8xf32>
    %cst_28 = arith.constant dense<0.000000e+00> : vector<2x8xf32>
    %92 = vector.multi_reduction <add>, %91, %cst_28 [2] : vector<2x8x8xf32> to vector<2x8xf32>
    %93 = vector.shape_cast %92 : vector<2x8xf32> to vector<2x8x1xf32>
    "tpu.trace_start"() <{level = 10 : i32, message = "bqk,bkd->bqd"}> : () -> ()
    %cst_29 = arith.constant dense<0.000000e+00> : vector<2x8x4xf32>
    %94 = tpu.matmul %91, %85, %cst_29 {dimension_numbers = #tpu.dot_dimension_numbers<[2], [1], [1], [2], [0, 0, 0, 1, 1, 2], [0], [0]>, precision = #tpu.contract_precision<fp32>} : vector<2x8x8xf32>, vector<2x8x4xf32>, vector<2x8x4xf32> -> vector<2x8x4xf32>
    "tpu.trace_stop"() : () -> ()
    %95 = tpu.reciprocal %93 : vector<2x8x1xf32> -> vector<2x8x1xf32>
    %96 = vector.broadcast %95 : vector<2x8x1xf32> to vector<2x8x4xf32>
    %97 = arith.mulf %94, %96 : vector<2x8x4xf32>
    %98 = vector.extract_strided_slice %7 {offsets = [0, 0, 24], sizes = [2, 8, 4], strides = [1, 1, 1]} : vector<2x8x96xf32> to vector<2x8x4xf32>
    %99 = vector.extract_strided_slice %7 {offsets = [0, 0, 56], sizes = [2, 8, 4], strides = [1, 1, 1]} : vector<2x8x96xf32> to vector<2x8x4xf32>
    %100 = vector.extract_strided_slice %7 {offsets = [0, 0, 88], sizes = [2, 8, 4], strides = [1, 1, 1]} : vector<2x8x96xf32> to vector<2x8x4xf32>
    "tpu.trace_start"() <{level = 10 : i32, message = "bqd,bkd->bqk"}> : () -> ()
    %cst_30 = arith.constant dense<0.000000e+00> : vector<2x8x8xf32>
    %101 = tpu.matmul %98, %99, %cst_30 {dimension_numbers = #tpu.dot_dimension_numbers<[2], [2], [1], [1], [0, 0, 0, 1, 1, 1], [0], [0]>, precision = #tpu.contract_precision<fp32>} : vector<2x8x4xf32>, vector<2x8x4xf32>, vector<2x8x8xf32> -> vector<2x8x8xf32>
    "tpu.trace_stop"() : () -> ()
    %cst_31 = arith.constant dense<0xFF800000> : vector<2x8xf32>
    %102 = vector.multi_reduction <maximumf>, %101, %cst_31 [2] : vector<2x8x8xf32> to vector<2x8xf32>
    %103 = vector.shape_cast %102 : vector<2x8xf32> to vector<2x8x1xf32>
    %104 = vector.broadcast %103 : vector<2x8x1xf32> to vector<2x8x8xf32>
    %105 = arith.subf %101, %104 : vector<2x8x8xf32>
    %106 = math.exp %105 : vector<2x8x8xf32>
    %cst_32 = arith.constant dense<0.000000e+00> : vector<2x8xf32>
    %107 = vector.multi_reduction <add>, %106, %cst_32 [2] : vector<2x8x8xf32> to vector<2x8xf32>
    %108 = vector.shape_cast %107 : vector<2x8xf32> to vector<2x8x1xf32>
    "tpu.trace_start"() <{level = 10 : i32, message = "bqk,bkd->bqd"}> : () -> ()
    %cst_33 = arith.constant dense<0.000000e+00> : vector<2x8x4xf32>
    %109 = tpu.matmul %106, %100, %cst_33 {dimension_numbers = #tpu.dot_dimension_numbers<[2], [1], [1], [2], [0, 0, 0, 1, 1, 2], [0], [0]>, precision = #tpu.contract_precision<fp32>} : vector<2x8x8xf32>, vector<2x8x4xf32>, vector<2x8x4xf32> -> vector<2x8x4xf32>
    "tpu.trace_stop"() : () -> ()
    %110 = tpu.reciprocal %108 : vector<2x8x1xf32> -> vector<2x8x1xf32>
    %111 = vector.broadcast %110 : vector<2x8x1xf32> to vector<2x8x4xf32>
    %112 = arith.mulf %109, %111 : vector<2x8x4xf32>
    %113 = vector.extract_strided_slice %7 {offsets = [0, 0, 28], sizes = [2, 8, 4], strides = [1, 1, 1]} : vector<2x8x96xf32> to vector<2x8x4xf32>
    %114 = vector.extract_strided_slice %7 {offsets = [0, 0, 60], sizes = [2, 8, 4], strides = [1, 1, 1]} : vector<2x8x96xf32> to vector<2x8x4xf32>
    %115 = vector.extract_strided_slice %7 {offsets = [0, 0, 92], sizes = [2, 8, 4], strides = [1, 1, 1]} : vector<2x8x96xf32> to vector<2x8x4xf32>
    "tpu.trace_start"() <{level = 10 : i32, message = "bqd,bkd->bqk"}> : () -> ()
    %cst_34 = arith.constant dense<0.000000e+00> : vector<2x8x8xf32>
    %116 = tpu.matmul %113, %114, %cst_34 {dimension_numbers = #tpu.dot_dimension_numbers<[2], [2], [1], [1], [0, 0, 0, 1, 1, 1], [0], [0]>, precision = #tpu.contract_precision<fp32>} : vector<2x8x4xf32>, vector<2x8x4xf32>, vector<2x8x8xf32> -> vector<2x8x8xf32>
    "tpu.trace_stop"() : () -> ()
    %cst_35 = arith.constant dense<0xFF800000> : vector<2x8xf32>
    %117 = vector.multi_reduction <maximumf>, %116, %cst_35 [2] : vector<2x8x8xf32> to vector<2x8xf32>
    %118 = vector.shape_cast %117 : vector<2x8xf32> to vector<2x8x1xf32>
    %119 = vector.broadcast %118 : vector<2x8x1xf32> to vector<2x8x8xf32>
    %120 = arith.subf %116, %119 : vector<2x8x8xf32>
    %121 = math.exp %120 : vector<2x8x8xf32>
    %cst_36 = arith.constant dense<0.000000e+00> : vector<2x8xf32>
    %122 = vector.multi_reduction <add>, %121, %cst_36 [2] : vector<2x8x8xf32> to vector<2x8xf32>
    %123 = vector.shape_cast %122 : vector<2x8xf32> to vector<2x8x1xf32>
    "tpu.trace_start"() <{level = 10 : i32, message = "bqk,bkd->bqd"}> : () -> ()
    %cst_37 = arith.constant dense<0.000000e+00> : vector<2x8x4xf32>
    %124 = tpu.matmul %121, %115, %cst_37 {dimension_numbers = #tpu.dot_dimension_numbers<[2], [1], [1], [2], [0, 0, 0, 1, 1, 2], [0], [0]>, precision = #tpu.contract_precision<fp32>} : vector<2x8x8xf32>, vector<2x8x4xf32>, vector<2x8x4xf32> -> vector<2x8x4xf32>
    "tpu.trace_stop"() : () -> ()
    %125 = tpu.reciprocal %123 : vector<2x8x1xf32> -> vector<2x8x1xf32>
    %126 = vector.broadcast %125 : vector<2x8x1xf32> to vector<2x8x4xf32>
    %127 = arith.mulf %124, %126 : vector<2x8x4xf32>
    %128 = tpu.concatenate %22, %37, %52, %67, %82, %97, %112, %127 in 2 : vector<2x8x4xf32>, vector<2x8x4xf32>, vector<2x8x4xf32>, vector<2x8x4xf32>, vector<2x8x4xf32>, vector<2x8x4xf32>, vector<2x8x4xf32>, vector<2x8x4xf32> -> vector<2x8x32xf32>
    %129 = vector.shape_cast %128 : vector<2x8x32xf32> to vector<16x32xf32>
    %c0_38 = arith.constant 0 : index
    %c0_39 = arith.constant 0 : index
    %130 = vector.load %arg4[%c0_38, %c0_39] : memref<32x32xf32, #tpu.memory_space<vmem>>, vector<32x32xf32>
    %cst_40 = arith.constant dense<0.000000e+00> : vector<16x32xf32>
    %131 = tpu.matmul %129, %130, %cst_40 {dimension_numbers = #tpu.dot_dimension_numbers<[1], [0], [0], [1], [0, 0, 1, 1], [], []>, precision = #tpu.contract_precision<fp32>} : vector<16x32xf32>, vector<32x32xf32>, vector<16x32xf32> -> vector<16x32xf32>
    %c0_41 = arith.constant 0 : index
    %c0_42 = arith.constant 0 : index
    %132 = vector.load %arg5[%c0_41, %c0_42] : memref<1x32xf32, #tpu.memory_space<vmem>>, vector<1x32xf32>
    %133 = vector.broadcast %132 : vector<1x32xf32> to vector<16x32xf32>
    %134 = arith.addf %131, %133 : vector<16x32xf32>
    %135 = arith.addf %1, %134 : vector<16x32xf32>
    %c0_43 = arith.constant 0 : index
    %c0_44 = arith.constant 0 : index
    %136 = vector.load %arg6[%c0_43, %c0_44] : memref<1x32xf32, #tpu.memory_space<vmem>>, vector<1x32xf32>
    %c0_45 = arith.constant 0 : index
    %c0_46 = arith.constant 0 : index
    %137 = vector.load %arg7[%c0_45, %c0_46] : memref<1x32xf32, #tpu.memory_space<vmem>>, vector<1x32xf32>
    %cst_47 = arith.constant dense<0.000000e+00> : vector<16xf32>
    %138 = vector.multi_reduction <add>, %135, %cst_47 [1] : vector<16x32xf32> to vector<16xf32>
    %139 = vector.shape_cast %138 : vector<16xf32> to vector<16x1xf32>
    %cst_48 = arith.constant 3.200000e+01 : f32
    %140 = vector.broadcast %cst_48 : f32 to vector<16x1xf32>
    %141 = arith.divf %139, %140 : vector<16x1xf32>
    %142 = vector.broadcast %141 : vector<16x1xf32> to vector<16x32xf32>
    %143 = arith.subf %135, %142 : vector<16x32xf32>
    %144 = arith.mulf %143, %143 : vector<16x32xf32>
    %cst_49 = arith.constant dense<0.000000e+00> : vector<16xf32>
    %145 = vector.multi_reduction <add>, %144, %cst_49 [1] : vector<16x32xf32> to vector<16xf32>
    %146 = vector.shape_cast %145 : vector<16xf32> to vector<16x1xf32>
    %cst_50 = arith.constant 3.200000e+01 : f32
    %147 = vector.broadcast %cst_50 : f32 to vector<16x1xf32>
    %148 = arith.divf %146, %147 : vector<16x1xf32>
    %cst_51 = arith.constant 9.99999974E-6 : f32
    %149 = vector.broadcast %cst_51 : f32 to vector<16x1xf32>
    %150 = arith.addf %148, %149 : vector<16x1xf32>
    %151 = math.rsqrt %150 : vector<16x1xf32>
    %152 = vector.broadcast %151 : vector<16x1xf32> to vector<16x32xf32>
    %153 = arith.mulf %143, %152 : vector<16x32xf32>
    %154 = vector.broadcast %136 : vector<1x32xf32> to vector<16x32xf32>
    %155 = arith.mulf %153, %154 : vector<16x32xf32>
    %156 = vector.broadcast %137 : vector<1x32xf32> to vector<16x32xf32>
    %157 = arith.addf %155, %156 : vector<16x32xf32>
    %c0_52 = arith.constant 0 : index
    %c0_53 = arith.constant 0 : index
    %158 = vector.load %arg8[%c0_52, %c0_53] : memref<32x128xf32, #tpu.memory_space<vmem>>, vector<32x128xf32>
    %cst_54 = arith.constant dense<0.000000e+00> : vector<16x128xf32>
    %159 = tpu.matmul %157, %158, %cst_54 {dimension_numbers = #tpu.dot_dimension_numbers<[1], [0], [0], [1], [0, 0, 1, 1], [], []>, precision = #tpu.contract_precision<fp32>} : vector<16x32xf32>, vector<32x128xf32>, vector<16x128xf32> -> vector<16x128xf32>
    %c0_55 = arith.constant 0 : index
    %c0_56 = arith.constant 0 : index
    %160 = vector.load %arg9[%c0_55, %c0_56] : memref<1x128xf32, #tpu.memory_space<vmem>>, vector<1x128xf32>
    %161 = vector.broadcast %160 : vector<1x128xf32> to vector<16x128xf32>
    %162 = arith.addf %159, %161 : vector<16x128xf32>
    %cst_57 = arith.constant 0.000000e+00 : f32
    %163 = vector.broadcast %cst_57 : f32 to vector<16x128xf32>
    %164 = arith.maximumf %162, %163 : vector<16x128xf32>
    %c0_58 = arith.constant 0 : index
    %c0_59 = arith.constant 0 : index
    %165 = vector.load %arg10[%c0_58, %c0_59] : memref<128x32xf32, #tpu.memory_space<vmem>>, vector<128x32xf32>
    %cst_60 = arith.constant dense<0.000000e+00> : vector<16x32xf32>
    %166 = tpu.matmul %164, %165, %cst_60 {dimension_numbers = #tpu.dot_dimension_numbers<[1], [0], [0], [1], [0, 0, 1, 1], [], []>, precision = #tpu.contract_precision<fp32>} : vector<16x128xf32>, vector<128x32xf32>, vector<16x32xf32> -> vector<16x32xf32>
    %c0_61 = arith.constant 0 : index
    %c0_62 = arith.constant 0 : index
    %167 = vector.load %arg11[%c0_61, %c0_62] : memref<1x32xf32, #tpu.memory_space<vmem>>, vector<1x32xf32>
    %168 = vector.broadcast %167 : vector<1x32xf32> to vector<16x32xf32>
    %169 = arith.addf %166, %168 : vector<16x32xf32>
    %170 = arith.addf %157, %169 : vector<16x32xf32>
    %c0_63 = arith.constant 0 : index
    %c0_64 = arith.constant 0 : index
    %171 = vector.load %arg12[%c0_63, %c0_64] : memref<1x32xf32, #tpu.memory_space<vmem>>, vector<1x32xf32>
    %c0_65 = arith.constant 0 : index
    %c0_66 = arith.constant 0 : index
    %172 = vector.load %arg13[%c0_65, %c0_66] : memref<1x32xf32, #tpu.memory_space<vmem>>, vector<1x32xf32>
    %cst_67 = arith.constant dense<0.000000e+00> : vector<16xf32>
    %173 = vector.multi_reduction <add>, %170, %cst_67 [1] : vector<16x32xf32> to vector<16xf32>
    %174 = vector.shape_cast %173 : vector<16xf32> to vector<16x1xf32>
    %cst_68 = arith.constant 3.200000e+01 : f32
    %175 = vector.broadcast %cst_68 : f32 to vector<16x1xf32>
    %176 = arith.divf %174, %175 : vector<16x1xf32>
    %177 = vector.broadcast %176 : vector<16x1xf32> to vector<16x32xf32>
    %178 = arith.subf %170, %177 : vector<16x32xf32>
    %179 = arith.mulf %178, %178 : vector<16x32xf32>
    %cst_69 = arith.constant dense<0.000000e+00> : vector<16xf32>
    %180 = vector.multi_reduction <add>, %179, %cst_69 [1] : vector<16x32xf32> to vector<16xf32>
    %181 = vector.shape_cast %180 : vector<16xf32> to vector<16x1xf32>
    %cst_70 = arith.constant 3.200000e+01 : f32
    %182 = vector.broadcast %cst_70 : f32 to vector<16x1xf32>
    %183 = arith.divf %181, %182 : vector<16x1xf32>
    %cst_71 = arith.constant 9.99999974E-6 : f32
    %184 = vector.broadcast %cst_71 : f32 to vector<16x1xf32>
    %185 = arith.addf %183, %184 : vector<16x1xf32>
    %186 = math.rsqrt %185 : vector<16x1xf32>
    %187 = vector.broadcast %186 : vector<16x1xf32> to vector<16x32xf32>
    %188 = arith.mulf %178, %187 : vector<16x32xf32>
    %189 = vector.broadcast %171 : vector<1x32xf32> to vector<16x32xf32>
    %190 = arith.mulf %188, %189 : vector<16x32xf32>
    %191 = vector.broadcast %172 : vector<1x32xf32> to vector<16x32xf32>
    %192 = arith.addf %190, %191 : vector<16x32xf32>
    %193 = vector.shape_cast %192 : vector<16x32xf32> to vector<2x8x32xf32>
    %c0_72 = arith.constant 0 : index
    %c0_73 = arith.constant 0 : index
    %c0_74 = arith.constant 0 : index
    %194 = vector.load %arg14[%c0_72, %c0_73, %c0_74] : memref<2x8x32xf32, #tpu.memory_space<vmem>>, vector<2x8x32xf32>
    tpu.vector_store %arg14[%c0_72, %c0_73, %c0_74], %193 {strides = array<i32>} : memref<2x8x32xf32, #tpu.memory_space<vmem>>, vector<2x8x32xf32>,
    return
  }
  func.func @transform_0(%arg0: i32) -> (i32, i32, i32) {
    %c0_i32 = arith.constant 0 : i32
    %c0_i32_0 = arith.constant 0 : i32
    %c0_i32_1 = arith.constant 0 : i32
    return %arg0, %c0_i32, %c0_i32_0 : i32, i32, i32
  }
  func.func @transform_1(%arg0: i32) -> (i32, i32) {
    %c0_i32 = arith.constant 0 : i32
    %c0_i32_0 = arith.constant 0 : i32
    %c0_i32_1 = arith.constant 0 : i32
    return %c0_i32, %c0_i32_0 : i32, i32
  }
  func.func @transform_2(%arg0: i32) -> (i32, i32) {
    %c0_i32 = arith.constant 0 : i32
    %c0_i32_0 = arith.constant 0 : i32
    %c0_i32_1 = arith.constant 0 : i32
    return %c0_i32, %c0_i32_0 : i32, i32
  }
  func.func @transform_3(%arg0: i32) -> (i32, i32) {
    %c0_i32 = arith.constant 0 : i32
    %c0_i32_0 = arith.constant 0 : i32
    %c0_i32_1 = arith.constant 0 : i32
    return %c0_i32, %c0_i32_0 : i32, i32
  }
  func.func @transform_4(%arg0: i32) -> (i32, i32) {
    %c0_i32 = arith.constant 0 : i32
    %c0_i32_0 = arith.constant 0 : i32
    %c0_i32_1 = arith.constant 0 : i32
    return %c0_i32, %c0_i32_0 : i32, i32
  }
  func.func @transform_5(%arg0: i32) -> (i32, i32) {
    %c0_i32 = arith.constant 0 : i32
    %c0_i32_0 = arith.constant 0 : i32
    %c0_i32_1 = arith.constant 0 : i32
    return %c0_i32, %c0_i32_0 : i32, i32
  }
  func.func @transform_6(%arg0: i32) -> (i32, i32) {
    %c0_i32 = arith.constant 0 : i32
    %c0_i32_0 = arith.constant 0 : i32
    %c0_i32_1 = arith.constant 0 : i32
    return %c0_i32, %c0_i32_0 : i32, i32
  }
  func.func @transform_7(%arg0: i32) -> (i32, i32) {
    %c0_i32 = arith.constant 0 : i32
    %c0_i32_0 = arith.constant 0 : i32
    %c0_i32_1 = arith.constant 0 : i32
    return %c0_i32, %c0_i32_0 : i32, i32
  }
  func.func @transform_8(%arg0: i32) -> (i32, i32) {
    %c0_i32 = arith.constant 0 : i32
    %c0_i32_0 = arith.constant 0 : i32
    %c0_i32_1 = arith.constant 0 : i32
    return %c0_i32, %c0_i32_0 : i32, i32
  }
  func.func @transform_9(%arg0: i32) -> (i32, i32) {
    %c0_i32 = arith.constant 0 : i32
    %c0_i32_0 = arith.constant 0 : i32
    %c0_i32_1 = arith.constant 0 : i32
    return %c0_i32, %c0_i32_0 : i32, i32
  }
  func.func @transform_10(%arg0: i32) -> (i32, i32) {
    %c0_i32 = arith.constant 0 : i32
    %c0_i32_0 = arith.constant 0 : i32
    %c0_i32_1 = arith.constant 0 : i32
    return %c0_i32, %c0_i32_0 : i32, i32
  }
  func.func @transform_11(%arg0: i32) -> (i32, i32) {
    %c0_i32 = arith.constant 0 : i32
    %c0_i32_0 = arith.constant 0 : i32
    %c0_i32_1 = arith.constant 0 : i32
    return %c0_i32, %c0_i32_0 : i32, i32
  }
  func.func @transform_12(%arg0: i32) -> (i32, i32) {
    %c0_i32 = arith.constant 0 : i32
    %c0_i32_0 = arith.constant 0 : i32
    %c0_i32_1 = arith.constant 0 : i32
    return %c0_i32, %c0_i32_0 : i32, i32
  }
  func.func @transform_13(%arg0: i32) -> (i32, i32, i32) {
    %c0_i32 = arith.constant 0 : i32
    %c0_i32_0 = arith.constant 0 : i32
    %c0_i32_1 = arith.constant 0 : i32
    return %arg0, %c0_i32, %c0_i32_0 : i32, i32, i32
  }
}

</mosaic_0001>

<bundles_post_ra>
// kernel: tpu_custom_call.1
= control target key start
LH: loop header
LB: loop body
LE: loop exit
PB: predicated region body
PF: predicated region fallthrough
CT: control target
= control target key end

     0   :  { %vm58_vm0 = vcmask 261120   ;;  %s21788_s0 = inlined_call_operand.vmem [shape: f32[2,8,32], index: 0, kind: input, shape index: {}]   ;;  %s21789_s1 = inlined_call_operand.vmem [shape: f32[32,96], index: 1, kind: input, shape index: {}]   ;;  %s21790_s2 = inlined_call_operand.vmem [shape: f32[1,96], index: 2, kind: input, shape index: {}]   ;;  %s21791_s3 = inlined_call_operand.vmem [shape: f32[32,32], index: 3, kind: input, shape index: {}]   ;;  %s21792_s4 = inlined_call_operand.vmem [shape: f32[1,32], index: 4, kind: input, shape index: {}]   ;;  %s21793_s5 = inlined_call_operand.vmem [shape: f32[1,32], index: 5, kind: input, shape index: {}]   ;;  %s21794_s6 = inlined_call_operand.vmem [shape: f32[1,32], index: 6, kind: input, shape index: {}]   ;;  %s21795_s7 = inlined_call_operand.vmem [shape: f32[32,128], index: 7, kind: input, shape index: {}]   ;;  %s21796_s8 = inlined_call_operand.vmem [shape: f32[1,128], index: 8, kind: input, shape index: {}]   ;;  %s21797_s9 = inlined_call_operand.vmem [shape: f32[128,32], index: 9, kind: input, shape index: {}]   ;;  %s21798_s10 = inlined_call_operand.vmem [shape: f32[1,32], index: 10, kind: input, shape index: {}]   ;;  %s21799_s11 = inlined_call_operand.vmem [shape: f32[1,32], index: 11, kind: input, shape index: {}]   ;;  %s21800_s12 = inlined_call_operand.vmem [shape: f32[1,32], index: 12, kind: input, shape index: {}]   ;;  %s21801_s13 = inlined_call_operand.hbm [shape: f32[2,8,32], index: 13, kind: output, shape index: {}]  }
   0x1   :  { %v47_v0 = vld [vmem:[%s21789_s1] sm:$0xff]  ;;  %v48_v1 = vld [vmem:[%s21789_s1 + $0x8] sm:$0xff]  ;;  %v49_v2 = vld [vmem:[%s21789_s1 + $0x10] sm:$0xff] }
   0x2   :  { %v66_v3 = vand.u32 4294901760, %v47_v0  ;;  %v69_v4 = vand.u32 4294901760, %v48_v1  ;;  %v50_v5 = vld [vmem:[%s21789_s1 + $0x18] sm:$0xff]  ;;  %v72_v6 = vand.u32 4294901760, %v49_v2  ;;  %v45_v7 = vld [vmem:[%s21788_s0] sm:$0xff]  ;;  %v46_v8 = vld [vmem:[%s21788_s0 + $0x8] sm:$0xff] }
   0x3   :  { %v75_v9 = vand.u32 4294901760, %v50_v5  ;;  %v60_v10 = vsel %vm58_vm0, %v45_v7, 0  ;;  %v63_v11 = vsel %vm58_vm0, %v46_v8, 0 }
   0x4   :  { %v20186_v12 = vpack.c.bf16 %v69_v4, %v66_v3  ;;  %v20188_v13 = vand.u32 4294901760, %v60_v10  ;;  %v20190_v14 = vand.u32 4294901760, %v63_v11  ;;  %v156_v15 = vsub.f32 %v47_v0, %v66_v3 }
   0x5   :  { %18 = vsyncpa [#allocation3], 0  ;;  %v20192_v16 = vpack.c.bf16 %v75_v9, %v72_v6  ;;  %v163_v17 = vsub.f32 %v48_v1, %v69_v4  ;;  %v170_v18 = vsub.f32 %v49_v2, %v72_v6  ;;  %v177_v19 = vsub.f32 %v50_v5, %v75_v9  ;;  %v17250_v47 = vld [vmem:[%s21790_s2] ss:$0 sm:$0xff]  ;;  %s20064_s21 = smov 96   ;;  %s20065_s22 = smov 64  }
   0x6   :  { %19227 = vmatprep.subr.bf16.mxu0 %v20186_v12  ;;  %v135_v20 = vsub.f32 %v60_v10, %v20188_v13  ;;  %v145_v21 = vsub.f32 %v63_v11, %v20190_v14  ;;  %v157_v22 = vand.u32 4294901760, %v156_v15  ;;  %v20062_v46 = vmov 0.0   ;;  %s20066_s23 = smov 124   ;;  %s20067_s2 = smov 92  }
   0x7   :  { %19229 = vmatpush3.bf16.msra.mxu0 %v20186_v12  ;;  %v164_v23 = vand.u32 4294901760, %v163_v17  ;;  %v171_v24 = vand.u32 4294901760, %v170_v18  ;;  %v178_v25 = vand.u32 4294901760, %v177_v19  ;;  %v19242_v42 = vpack.c.bf16 %v163_v17, %v156_v15  ;;  %17924 = vmatprep.subr.mxu1 %v20062_v46  ;;  %s20068_s24 = smov 60   ;;  %s20069_s25 = smov 120  }
   0x8   :  { %19231 = vmatprep.subr.bf16.mxu0 %v20192_v16  ;;  %v136_v26 = vand.u32 4294901760, %v135_v20  ;;  %v146_v27 = vand.u32 4294901760, %v145_v21  ;;  %v158_v28 = vsub.f32 %v156_v15, %v157_v22  ;;  %v19246_v43 = vpack.c.bf16 %v177_v19, %v170_v18  ;;  %s20070_s26 = smov 88   ;;  %s20071_s27 = smov 56  }
   0x9   :  { %v165_v29 = vsub.f32 %v163_v17, %v164_v23  ;;  %v172_v30 = vsub.f32 %v170_v18, %v171_v24  ;;  %v179_v31 = vsub.f32 %v177_v19, %v178_v25  ;;  %v19258_v44 = vpack.c.bf16 %v164_v23, %v157_v22  ;;  %s20072_s28 = smov 116   ;;  %s20073_s29 = smov 84  }
   0xa   :  { %v137_v32 = vsub.f32 %v135_v20, %v136_v26  ;;  %v147_v33 = vsub.f32 %v145_v21, %v146_v27  ;;  %v159_v34 = vand.u32 4294901760, %v158_v28  ;;  %v19262_v45 = vpack.c.bf16 %v178_v25, %v171_v24  ;;  %s20074_s30 = smov 52   ;;  %s20075_s14 = smov 112  }
   0xb   :  { %19233 = vmatpush3.bf16.msra.mxu0 %v20192_v16  ;;  %v166_v35 = vand.u32 4294901760, %v165_v29  ;;  %v173_v36 = vand.u32 4294901760, %v172_v30  ;;  %v180_v37 = vand.u32 4294901760, %v179_v31  ;;  %vm20063_vm1 = vmmov 0   ;;  %s20076_s15 = smov 80   ;;  %s20077_s16 = smov 48  }
   0xc   :  { %v138_v38 = vand.u32 4294901760, %v137_v32  ;;  %v148_v39 = vand.u32 4294901760, %v147_v33  ;;  %17926 = vmatprep.mubr.msk.f32.mxu1 %vm20063_vm1, %v20062_v46  ;;  %vm596_vm2 = vcmask 31744   ;;  %vm1500_vm3 = vcmask 64512   ;;  %s20078_s17 = smov 108   ;;  %s20079_s18 = smov 76  }
   0xd   :  { %v19234_v40 = vpack.c.bf16 %v166_v35, %v159_v34  ;;  %v19238_v41 = vpack.c.bf16 %v180_v37, %v173_v36  ;;  %s20080_s19 = smov 44   ;;  %s20081_s1 = smov 104   ;;  %vm15325_vm4 = vcmask 97280   ;;  %vm15328_vm5 = vcmask 130048  }
   0xe   :  { %17866 = vmatprep.mubr.f32.mxu0 %v138_v38  ;;  %s20082_s20 = smov 72   ;;  %vm15331_vm6 = vcmask 162816   ;;  %vm15337_vm7 = vcmask 228352   ;;  %vm15334_vm8 = vcmask 195584  }
   0xf   :  { %17867 = vmatmul.mubr.f32.vlgmr.msra.gmra.mrb[0].mxu0 %v148_v39  ;;  %19235 = vmatprep.subr.bf16.mxu0 %v19234_v40 }
  0x10   :  { %19237 = vmatpush3.bf16.msra.mxu0 %v19234_v40  ;;  %17877 = vmatprep.mubr.f32.mxu0 %v20188_v13 }
  0x11   :  { %19239 = vmatprep.subr.bf16.mxu0 %v19238_v41 }
  0x14   :  { %19241 = vmatpush3.bf16.msra.mxu0 %v19238_v41 }
  0x15   :  { %19243 = vmatprep.subr.bf16.mxu0 %v19242_v42 }
  0x17   :  { %17878 = vmatmul.mubr.f32.vlgmr.msra.gmra.mrb[0].mxu0 %v20190_v14 }
  0x18   :  { %19245 = vmatpush3.bf16.msra.mxu0 %v19242_v42  ;;  %17888 = vmatprep.mubr.f32.mxu0 %v135_v20 }
  0x19   :  { %19247 = vmatprep.subr.bf16.mxu0 %v19246_v43 }
  0x1c   :  { %19249 = vmatpush3.bf16.msra.mxu0 %v19246_v43 }
  0x1d   :  { %19251 = vmatprep.subr.bf16.mxu0 %v20186_v12 }
  0x1f   :  { %17889 = vmatmul.mubr.f32.vlgmr.msra.gmra.mrb[0].mxu0 %v145_v21 }
  0x20   :  { %19253 = vmatpush3.bf16.msra.mxu0 %v20186_v12  ;;  %17899 = vmatprep.mubr.f32.mxu0 %v136_v26 }
  0x21   :  { %19255 = vmatprep.subr.bf16.mxu0 %v20192_v16 }
  0x24   :  { %19257 = vmatpush3.bf16.msra.mxu0 %v20192_v16 }
  0x25   :  { %19259 = vmatprep.subr.bf16.mxu0 %v19258_v44 }
  0x27   :  { %17900 = vmatmul.mubr.f32.vlgmr.msra.gmra.mrb[0].mxu0 %v146_v27 }
  0x28   :  { %19261 = vmatpush3.bf16.msra.mxu0 %v19258_v44  ;;  %17910 = vmatprep.mubr.f32.mxu0 %v20188_v13 }
  0x29   :  { %19263 = vmatprep.subr.bf16.mxu0 %v19262_v45 }
  0x2c   :  { %19265 = vmatpush3.bf16.msra.mxu0 %v19262_v45 }
  0x2d   :  { %19267 = vmatprep.subr.bf16.mxu0 %v20186_v12 }
  0x2f   :  { %17911 = vmatmul.mubr.f32.vlgmr.msra.gmra.mrb[0].mxu0 %v20190_v14 }
  0x30   :  { %19269 = vmatpush3.bf16.msra.mxu0 %v20186_v12  ;;  %17921 = vmatprep.mubr.f32.mxu0 %v20188_v13 }
  0x31   :  { %19271 = vmatprep.subr.bf16.mxu0 %v20192_v16 }
  0x34   :  { %19273 = vmatpush3.bf16.msra.mxu0 %v20192_v16 }
  0x35   :  { %17984 = vmatprep.subr.mxu0 %v20062_v46 }
  0x37   :  { %17922 = vmatmul.mubr.f32.vlgmr.msra.gmra.mrb[0].mxu0 %v20190_v14 }
  0x38   :  { %17986 = vmatprep.mubr.msk.f32.mxu0 %vm20063_vm1, %v20062_v46 }
 0x10a   :  { %v17923_v48 = vpop.f32.mrb[0].mxu0 }
 0x10b   :  { %v583_v49 = vpop.f32.mrb[1].mxu0  ;;  %v20226_v51 = vadd.f32 %v17923_v48, %v17250_v47 }
 0x10c   :  { %v20223_v50 = vadd.f32 %v17250_v47, %v583_v49 }
 0x10d   :  { %v1050_v4 = vsel %vm596_vm2, %v20226_v51, 0 }
 0x10e   :  { %594 = vrot.lane.b32.xlu0 %v20223_v50, %s20064_s21  ;;  %v597_v52 = vsel %vm596_vm2, %v20223_v50, 0  ;;  %v1120_v6 = vand.u32 4294901760, %v1050_v4 }
 0x10f   :  { %v667_v53 = vand.u32 4294901760, %v597_v52 }
 0x110   :  { %v1121_v8 = vsub.f32 %v1050_v4, %v1120_v6 }
 0x111   :  { %v668_v54 = vsub.f32 %v597_v52, %v667_v53 }
 0x112   :  { %1048 = vrot.lane.b32.xlu0 %v20226_v51, %s20064_s21  ;;  %v1122_v10 = vand.u32 4294901760, %v1121_v8  ;;  %s20083_s21 = smov 40  }
 0x113   :  { %v669_v55 = vand.u32 4294901760, %v668_v54 }
 0x114   :  { %v1123_v12 = vsub.f32 %v1121_v8, %v1122_v10 }
 0x115   :  { %v670_v58 = vsub.f32 %v668_v54, %v669_v55 }
 0x116   :  { %1519 = vrot.lane.b32.xlu0 %v20223_v50, %s20065_s22  ;;  %v1124_v14 = vand.u32 4294901760, %v1123_v12 }
 0x117   :  { %v671_v62 = vand.u32 4294901760, %v670_v58 }
 0x11a   :  { %2427 = vrot.lane.b32.xlu0 %v20223_v50, %s20066_s23 }
 0x11e   :  { %2881 = vrot.lane.b32.xlu0 %v20226_v51, %s20066_s23  ;;  %s20085_s23 = smov 68  }
 0x122   :  { %2429 = vrot.lane.b32.xlu0 %v20223_v50, %s20067_s2 }
 0x126   :  { %2883 = vrot.lane.b32.xlu0 %v20226_v51, %s20067_s2  ;;  %s20086_s2 = smov 36  }
 0x180   :  { %v595_v56 = vpop.permute.xlu0 %594 }
 0x181   :  { %v599_v57 = vsel %vm596_vm2, %v595_v56, 0 }
 0x182   :  { %v602_v59 = vand.u32 4294901760, %v599_v57 }
 0x184   :  { %v679_v60 = vsub.f32 %v599_v57, %v602_v59  ;;  %17925 = vmatpush3.xpose.msra.mxu1 %v602_v59  ;;  %v1049_v61 = vpop.permute.xlu0 %1048 }
 0x185   :  { %17929 = vmatprep.subr.mxu1 %v20062_v46  ;;  %v1052_v5 = vsel %vm596_vm2, %v1049_v61, 0 }
 0x186   :  { %v680_v63 = vand.u32 4294901760, %v679_v60  ;;  %v1055_v7 = vand.u32 4294901760, %v1052_v5 }
 0x187   :  { %17927 = vmatmul.mubr.f32.vlgmr.msra.gmra.mrb[0].mxu1 %v671_v62 }
 0x188   :  { %v681_v0 = vsub.f32 %v679_v60, %v680_v63  ;;  %v20239_v1 = vpop.permute.xlu0 %1519  ;;  %17931 = vmatprep.mubr.msk.f32.mxu1 %vm20063_vm1, %v20062_v46  ;;  %v1132_v9 = vsub.f32 %v1052_v5, %v1055_v7 }
 0x189   :  { %v20244_v2 = vand.u32 4294901760, %v20239_v1 }
 0x18a   :  { %v682_v3 = vand.u32 4294901760, %v681_v0  ;;  %v1133_v11 = vand.u32 4294901760, %v1132_v9 }
 0x18b   :  { %17985 = vmatpush3.msra.mxu0 %v20244_v2  ;;  %v1603_v25 = vsub.f32 %v20239_v1, %v20244_v2 }
 0x18c   :  { %17930 = vmatpush3.xpose.msra.mxu1 %v682_v3  ;;  %17989 = vmatprep.subr.mxu0 %v20062_v46  ;;  %v1134_v13 = vsub.f32 %v1132_v9, %v1133_v11  ;;  %v2428_v36 = vpop.permute.xlu0 %2427 }
 0x18d   :  { %17934 = vmatprep.subr.mxu1 %v20062_v46  ;;  %v1604_v29 = vand.u32 4294901760, %v1603_v25  ;;  %v2431_v44 = vsel %vm596_vm2, %v2428_v36, 0 }
 0x18e   :  { %v1135_v15 = vand.u32 4294901760, %v1134_v13  ;;  %v20313_v47 = vand.u32 4294901760, %v2431_v44 }
 0x18f   :  { %17932 = vmatmul.mubr.f32.vlgmr.msra.gmra.mrb[0].mxu1 %v667_v53  ;;  %v1605_v32 = vsub.f32 %v1603_v25, %v1604_v29 }
 0x190   :  { %17935 = vmatpush3.xpose.msra.mxu1 %v679_v60  ;;  %17936 = vmatprep.mubr.msk.f32.mxu1 %vm20063_vm1, %v20062_v46  ;;  %v20300_v37 = vpop.permute.xlu0 %2881  ;;  %v2502_v49 = vsub.f32 %v2431_v44, %v20313_v47 }
 0x191   :  { %17939 = vmatprep.subr.mxu1 %v20062_v46  ;;  %v1606_v35 = vand.u32 4294901760, %v1605_v32 }
 0x192   :  { %v2503_v56 = vand.u32 4294901760, %v2502_v49 }
 0x194   :  { %v2430_v41 = vpop.permute.xlu0 %2429  ;;  %v2504_v61 = vsub.f32 %v2502_v49, %v2503_v56 }
 0x195   :  { %v2433_v45 = vsel %vm596_vm2, %v2430_v41, 0 }
 0x196   :  { %v20317_v48 = vand.u32 4294901760, %v2433_v45 }
 0x197   :  { %17937 = vmatmul.mubr.f32.vlgmr.msra.gmra.mrb[0].mxu1 %v668_v54 }
 0x198   :  { %17940 = vmatpush3.xpose.msra.mxu1 %v602_v59  ;;  %17941 = vmatprep.mubr.msk.f32.mxu1 %vm20063_vm1, %v20062_v46  ;;  %v2513_v52 = vsub.f32 %v2433_v45, %v20317_v48 }
 0x199   :  { %17944 = vmatprep.subr.mxu1 %v20062_v46 }
 0x19a   :  { %v2514_v58 = vand.u32 4294901760, %v2513_v52 }
 0x19f   :  { %17942 = vmatmul.mubr.f32.vlgmr.msra.gmra.mrb[0].mxu1 %v669_v55 }
 0x1a0   :  { %17945 = vmatpush3.xpose.msra.mxu1 %v680_v63  ;;  %17946 = vmatprep.mubr.msk.f32.mxu1 %vm20063_vm1, %v20062_v46  ;;  %v2515_v63 = vsub.f32 %v2513_v52, %v2514_v58 }
 0x1a1   :  { %17949 = vmatprep.subr.mxu1 %v20062_v46 }
 0x1a2   :  { %v2516_v4 = vand.u32 4294901760, %v2515_v63 }
 0x1a7   :  { %17947 = vmatmul.mubr.f32.vlgmr.msra.gmra.mrb[0].mxu1 %v667_v53 }
 0x1a8   :  { %17950 = vmatpush3.xpose.msra.mxu1 %v602_v59  ;;  %17951 = vmatprep.mubr.msk.f32.mxu1 %vm20063_vm1, %v20062_v46 }
 0x1a9   :  { %17954 = vmatprep.subr.mxu1 %v20062_v46 }
 0x1af   :  { %17952 = vmatmul.mubr.f32.vlgmr.msra.gmra.mrb[0].mxu1 %v667_v53 }
 0x1b0   :  { %17955 = vmatpush3.xpose.msra.mxu1 %v1055_v7  ;;  %17956 = vmatprep.mubr.msk.f32.mxu1 %vm20063_vm1, %v20062_v46 }
 0x1b1   :  { %17959 = vmatprep.subr.mxu1 %v20062_v46 }
 0x1b3   :  { %17957 = vmatmul.mubr.f32.vlgmr.msra.gmra.mrb[2].mxu1 %v1124_v14 }
 0x1b4   :  { %17960 = vmatpush3.xpose.msra.mxu1 %v1135_v15  ;;  %17961 = vmatprep.mubr.msk.f32.mxu1 %vm20063_vm1, %v20062_v46 }
 0x1b5   :  { %17964 = vmatprep.subr.mxu1 %v20062_v46 }
 0x1bb   :  { %17962 = vmatmul.mubr.f32.vlgmr.msra.gmra.mrb[2].mxu1 %v1120_v6 }
 0x1bc   :  { %17965 = vmatpush3.xpose.msra.mxu1 %v1132_v9  ;;  %17966 = vmatprep.mubr.msk.f32.mxu1 %vm20063_vm1, %v20062_v46 }
 0x1bd   :  { %17969 = vmatprep.subr.mxu1 %v20062_v46 }
 0x1c3   :  { %17967 = vmatmul.mubr.f32.vlgmr.msra.gmra.mrb[2].mxu1 %v1121_v8 }
 0x1c4   :  { %17970 = vmatpush3.xpose.msra.mxu1 %v1055_v7  ;;  %17971 = vmatprep.mubr.msk.f32.mxu1 %vm20063_vm1, %v20062_v46 }
 0x1c5   :  { %17974 = vmatprep.subr.mxu1 %v20062_v46 }
 0x1cb   :  { %17972 = vmatmul.mubr.f32.vlgmr.msra.gmra.mrb[2].mxu1 %v1122_v10 }
 0x1cc   :  { %17975 = vmatpush3.xpose.msra.mxu1 %v1133_v11  ;;  %17976 = vmatprep.mubr.msk.f32.mxu1 %vm20063_vm1, %v20062_v46 }
 0x1cd   :  { %17979 = vmatprep.subr.mxu1 %v20062_v46 }
 0x1d3   :  { %17977 = vmatmul.mubr.f32.vlgmr.msra.gmra.mrb[2].mxu1 %v1120_v6 }
 0x1d4   :  { %17980 = vmatpush3.xpose.msra.mxu1 %v1055_v7  ;;  %17981 = vmatprep.mubr.msk.f32.mxu1 %vm20063_vm1, %v20062_v46  ;;  %v2885_v7 = vsel %vm596_vm2, %v20300_v37, 0 }
 0x1d5   :  { %18014 = vmatprep.subr.mxu1 %v20062_v46  ;;  %v2955_v9 = vand.u32 4294901760, %v2885_v7 }
 0x1d7   :  { %v2956_v11 = vsub.f32 %v2885_v7, %v2955_v9 }
 0x1d9   :  { %v2957_v13 = vand.u32 4294901760, %v2956_v11 }
 0x1db   :  { %17982 = vmatmul.mubr.f32.vlgmr.msra.gmra.mrb[2].mxu1 %v1120_v6  ;;  %v2884_v6 = vpop.permute.xlu0 %2883  ;;  %v2958_v15 = vsub.f32 %v2956_v11, %v2957_v13 }
 0x1dc   :  { %18016 = vmatprep.mubr.msk.f32.mxu1 %vm20063_vm1, %v20062_v46  ;;  %v2887_v8 = vsel %vm596_vm2, %v2884_v6, 0 }
 0x1dd   :  { %v2890_v10 = vand.u32 4294901760, %v2887_v8 }
 0x1df   :  { %v2967_v12 = vsub.f32 %v2887_v8, %v2890_v10 }
 0x1e1   :  { %v2968_v14 = vand.u32 4294901760, %v2967_v12 }
 0x282   :  { %v1043_v16 = vpop.f32.mrb[0].mxu1 }
 0x283   :  { %v17953_v17 = vpop.f32.mrb[1].mxu1  ;;  %v1501_v18 = vsel %vm1500_vm3, %v1043_v16, -inf }
 0x284   :  { %1502 = vmax.xlane.f32.xlu1 %v1501_v18  ;;  %v2959_v17 = vand.u32 4294901760, %v2958_v15 }
 0x2ae   :  { %v1496_v19 = vpop.f32.mrb[2].mxu1 }
 0x2af   :  { %v17983_v20 = vpop.f32.mrb[3].mxu1  ;;  %v1504_v21 = vsel %vm1500_vm3, %v1496_v19, -inf }
 0x2b0   :  { %1505 = vmax.xlane.f32.xlu1 %v1504_v21 }
 0x2c1   :  { %1971 = vrot.lane.b32.xlu1 %v20226_v51, %s20065_s22  ;;  %s20084_s22 = smov 100  }
 0x311   :  { %v1503_v22 = vpop.xlane.xlu1 %1502 }
 0x312   :  { %v1507_v23 = vsub.f32 %v1043_v16, %v1503_v22  ;;  %v2969_v16 = vsub.f32 %v2967_v12, %v2968_v14 }
 0x314   :  { %v1509_v24 = vmul.f32 1.442695, %v1507_v23  ;;  %v2970_v18 = vand.u32 4294901760, %v2969_v16 }
 0x316   :  { %19964 = vpow2.f32 %v1509_v24 }
 0x320   :  { %v20290_v26 = vpop.eup %19964 }
 0x321   :  { %v1523_v27 = vsel %vm1500_vm3, %v20290_v26, 0 }
 0x322   :  { %v1591_v28 = vand.u32 4294901760, %v1523_v27 }
 0x324   :  { %v1592_v30 = vsub.f32 %v1523_v27, %v1591_v28 }
 0x326   :  { %v1593_v31 = vand.u32 4294901760, %v1592_v30 }
 0x328   :  { %v1594_v33 = vsub.f32 %v1592_v30, %v1593_v31 }
 0x32a   :  { %v1595_v34 = vand.u32 4294901760, %v1594_v33 }
 0x32c   :  { %17987 = vmatmul.mubr.f32.vlgmr.msra.gmra.mrb[2].mxu0 %v1595_v34 }
 0x32d   :  { %17990 = vmatpush3.msra.mxu0 %v1606_v35  ;;  %17991 = vmatprep.mubr.msk.f32.mxu0 %vm20063_vm1, %v20062_v46 }
 0x32e   :  { %17994 = vmatprep.subr.mxu0 %v20062_v46 }
 0x334   :  { %17992 = vmatmul.mubr.f32.vlgmr.msra.gmra.mrb[2].mxu0 %v1591_v28 }
 0x335   :  { %17995 = vmatpush3.msra.mxu0 %v1603_v25  ;;  %17996 = vmatprep.mubr.msk.f32.mxu0 %vm20063_vm1, %v20062_v46 }
 0x336   :  { %17999 = vmatprep.subr.mxu0 %v20062_v46 }
 0x33c   :  { %17997 = vmatmul.mubr.f32.vlgmr.msra.gmra.mrb[2].mxu0 %v1592_v30 }
 0x33d   :  { %18000 = vmatpush3.msra.mxu0 %v20244_v2  ;;  %v1506_v38 = vpop.xlane.xlu1 %1505  ;;  %18001 = vmatprep.mubr.msk.f32.mxu0 %vm20063_vm1, %v20062_v46 }
 0x33e   :  { %v1508_v39 = vsub.f32 %v1496_v19, %v1506_v38  ;;  %18004 = vmatprep.subr.mxu0 %v20062_v46 }
 0x340   :  { %v1511_v40 = vmul.f32 1.442695, %v1508_v39 }
 0x341   :  { %v1972_v42 = vpop.permute.xlu1 %1971 }
 0x342   :  { %19966 = vpow2.f32 %v1511_v40  ;;  %v20306_v43 = vand.u32 4294901760, %v1972_v42 }
 0x344   :  { %18002 = vmatmul.mubr.f32.vlgmr.msra.gmra.mrb[2].mxu0 %v1593_v31  ;;  %18015 = vmatpush3.msra.mxu1 %v20306_v43  ;;  %v2055_v53 = vsub.f32 %v1972_v42, %v20306_v43 }
 0x345   :  { %18005 = vmatpush3.msra.mxu0 %v1604_v29  ;;  %18006 = vmatprep.mubr.msk.f32.mxu0 %vm20063_vm1, %v20062_v46 }
 0x346   :  { %18009 = vmatprep.subr.mxu0 %v20062_v46  ;;  %18019 = vmatprep.subr.mxu1 %v20062_v46  ;;  %v2056_v59 = vand.u32 4294901760, %v2055_v53 }
 0x348   :  { %v2057_v0 = vsub.f32 %v2055_v53, %v2056_v59 }
 0x34a   :  { %v2058_v5 = vand.u32 4294901760, %v2057_v0 }
 0x34c   :  { %v20322_v54 = vpop.eup %19966  ;;  %18007 = vmatmul.mubr.f32.vlgmr.msra.gmra.mrb[2].mxu0 %v1591_v28 }
 0x34d   :  { %v1975_v55 = vsel %vm1500_vm3, %v20322_v54, 0  ;;  %18010 = vmatpush3.msra.mxu0 %v20244_v2  ;;  %18011 = vmatprep.mubr.msk.f32.mxu0 %vm20063_vm1, %v20062_v46  ;;  %v2505_v2 = vand.u32 4294901760, %v2504_v61 }
 0x34e   :  { %v20329_v57 = vand.u32 4294901760, %v1975_v55  ;;  %18044 = vmatprep.subr.mxu0 %v20062_v46 }
 0x350   :  { %v2044_v60 = vsub.f32 %v1975_v55, %v20329_v57 }
 0x352   :  { %v2045_v62 = vand.u32 4294901760, %v2044_v60 }
 0x354   :  { %18012 = vmatmul.mubr.f32.vlgmr.msra.gmra.mrb[2].mxu0 %v1591_v28  ;;  %v2046_v1 = vsub.f32 %v2044_v60, %v2045_v62 }
 0x355   :  { %18045 = vmatpush3.xpose.msra.mxu0 %v20317_v48  ;;  %18046 = vmatprep.mubr.msk.f32.mxu0 %vm20063_vm1, %v20062_v46 }
 0x356   :  { %18049 = vmatprep.subr.mxu0 %v20062_v46  ;;  %v2047_v3 = vand.u32 4294901760, %v2046_v1 }
 0x358   :  { %18017 = vmatmul.mubr.f32.vlgmr.msra.gmra.mrb[4].mxu1 %v2047_v3  ;;  %18047 = vmatmul.mubr.f32.vlgmr.msra.gmra.mrb[4].mxu0 %v2505_v2 }
 0x359   :  { %18020 = vmatpush3.msra.mxu1 %v2058_v5  ;;  %18050 = vmatpush3.xpose.msra.mxu0 %v2516_v4 }
 0x35a   :  { %18021 = vmatprep.mubr.msk.f32.mxu1 %vm20063_vm1, %v20062_v46  ;;  %18024 = vmatprep.subr.mxu1 %v20062_v46 }
 0x35b   :  { %18051 = vmatprep.mubr.msk.f32.mxu0 %vm20063_vm1, %v20062_v46  ;;  %18054 = vmatprep.subr.mxu0 %v20062_v46 }
 0x360   :  { %18022 = vmatmul.mubr.f32.vlgmr.msra.gmra.mrb[4].mxu1 %v20329_v57  ;;  %18052 = vmatmul.mubr.f32.vlgmr.msra.gmra.mrb[4].mxu0 %v20313_v47 }
 0x361   :  { %18025 = vmatpush3.msra.mxu1 %v2055_v53  ;;  %18055 = vmatpush3.xpose.msra.mxu0 %v2513_v52 }
 0x362   :  { %18026 = vmatprep.mubr.msk.f32.mxu1 %vm20063_vm1, %v20062_v46  ;;  %18029 = vmatprep.subr.mxu1 %v20062_v46 }
 0x363   :  { %18056 = vmatprep.mubr.msk.f32.mxu0 %vm20063_vm1, %v20062_v46  ;;  %18059 = vmatprep.subr.mxu0 %v20062_v46 }
 0x368   :  { %18027 = vmatmul.mubr.f32.vlgmr.msra.gmra.mrb[4].mxu1 %v2044_v60  ;;  %18057 = vmatmul.mubr.f32.vlgmr.msra.gmra.mrb[4].mxu0 %v2502_v49 }
 0x369   :  { %18030 = vmatpush3.msra.mxu1 %v20306_v43  ;;  %18060 = vmatpush3.xpose.msra.mxu0 %v20317_v48 }
 0x36a   :  { %18031 = vmatprep.mubr.msk.f32.mxu1 %vm20063_vm1, %v20062_v46  ;;  %18034 = vmatprep.subr.mxu1 %v20062_v46 }
 0x36b   :  { %18061 = vmatprep.mubr.msk.f32.mxu0 %vm20063_vm1, %v20062_v46  ;;  %18064 = vmatprep.subr.mxu0 %v20062_v46 }
 0x370   :  { %18032 = vmatmul.mubr.f32.vlgmr.msra.gmra.mrb[4].mxu1 %v2045_v62  ;;  %18062 = vmatmul.mubr.f32.vlgmr.msra.gmra.mrb[4].mxu0 %v2503_v56 }
 0x371   :  { %18035 = vmatpush3.msra.mxu1 %v2056_v59  ;;  %18065 = vmatpush3.xpose.msra.mxu0 %v2514_v58 }
 0x372   :  { %18036 = vmatprep.mubr.msk.f32.mxu1 %vm20063_vm1, %v20062_v46  ;;  %18039 = vmatprep.subr.mxu1 %v20062_v46 }
 0x373   :  { %18066 = vmatprep.mubr.msk.f32.mxu0 %vm20063_vm1, %v20062_v46  ;;  %18069 = vmatprep.subr.mxu0 %v20062_v46 }
 0x378   :  { %18037 = vmatmul.mubr.f32.vlgmr.msra.gmra.mrb[4].mxu1 %v20329_v57  ;;  %18067 = vmatmul.mubr.f32.vlgmr.msra.gmra.mrb[4].mxu0 %v20313_v47 }
 0x379   :  { %18040 = vmatpush3.msra.mxu1 %v20306_v43  ;;  %18070 = vmatpush3.xpose.msra.mxu0 %v20317_v48 }
 0x37a   :  { %18041 = vmatprep.mubr.msk.f32.mxu1 %vm20063_vm1, %v20062_v46  ;;  %18071 = vmatprep.mubr.msk.f32.mxu0 %vm20063_vm1, %v20062_v46 }
 0x37b   :  { %18074 = vmatprep.subr.mxu1 %v20062_v46  ;;  %18104 = vmatprep.subr.mxu0 %v20062_v46 }
 0x380   :  { %18042 = vmatmul.mubr.f32.vlgmr.msra.gmra.mrb[4].mxu1 %v20329_v57  ;;  %18072 = vmatmul.mubr.f32.vlgmr.msra.gmra.mrb[4].mxu0 %v20313_v47 }
 0x381   :  { %18075 = vmatpush3.xpose.msra.mxu1 %v2890_v10  ;;  %18076 = vmatprep.mubr.msk.f32.mxu1 %vm20063_vm1, %v20062_v46 }
 0x382   :  { %18079 = vmatprep.subr.mxu1 %v20062_v46  ;;  %18106 = vmatprep.mubr.msk.f32.mxu0 %vm20063_vm1, %v20062_v46 }
 0x384   :  { %18077 = vmatmul.mubr.f32.vlgmr.msra.gmra.mrb[6].mxu1 %v2959_v17 }
 0x385   :  { %18080 = vmatpush3.xpose.msra.mxu1 %v2970_v18  ;;  %18081 = vmatprep.mubr.msk.f32.mxu1 %vm20063_vm1, %v20062_v46 }
 0x386   :  { %18084 = vmatprep.subr.mxu1 %v20062_v46 }
 0x38c   :  { %18082 = vmatmul.mubr.f32.vlgmr.msra.gmra.mrb[6].mxu1 %v2955_v9 }
 0x38d   :  { %18085 = vmatpush3.xpose.msra.mxu1 %v2967_v12  ;;  %18086 = vmatprep.mubr.msk.f32.mxu1 %vm20063_vm1, %v20062_v46 }
 0x38e   :  { %18089 = vmatprep.subr.mxu1 %v20062_v46 }
 0x394   :  { %18087 = vmatmul.mubr.f32.vlgmr.msra.gmra.mrb[6].mxu1 %v2956_v11 }
 0x395   :  { %18090 = vmatpush3.xpose.msra.mxu1 %v2890_v10  ;;  %18091 = vmatprep.mubr.msk.f32.mxu1 %vm20063_vm1, %v20062_v46 }
 0x396   :  { %18094 = vmatprep.subr.mxu1 %v20062_v46 }
 0x39c   :  { %18092 = vmatmul.mubr.f32.vlgmr.msra.gmra.mrb[6].mxu1 %v2957_v13 }
 0x39d   :  { %18095 = vmatpush3.xpose.msra.mxu1 %v2968_v14  ;;  %18096 = vmatprep.mubr.msk.f32.mxu1 %vm20063_vm1, %v20062_v46 }
 0x39e   :  { %18099 = vmatprep.subr.mxu1 %v20062_v46 }
 0x3a4   :  { %18097 = vmatmul.mubr.f32.vlgmr.msra.gmra.mrb[6].mxu1 %v2955_v9 }
 0x3a5   :  { %18100 = vmatpush3.xpose.msra.mxu1 %v2890_v10  ;;  %18101 = vmatprep.mubr.msk.f32.mxu1 %vm20063_vm1, %v20062_v46 }
 0x3a6   :  { %18134 = vmatprep.subr.mxu1 %v20062_v46 }
 0x3ac   :  { %18102 = vmatmul.mubr.f32.vlgmr.msra.gmra.mrb[6].mxu1 %v2955_v9 }
 0x3ad   :  { %18136 = vmatprep.mubr.msk.f32.mxu1 %vm20063_vm1, %v20062_v46 }
 0x427   :  { %v20402_v19 = vpop.f32.mrb[2].mxu0 }
 0x428   :  { %v18013_v20 = vpop.f32.mrb[3].mxu0 }
 0x453   :  { %v20404_v21 = vpop.f32.mrb[4].mxu1  ;;  %v2877_v22 = vpop.f32.mrb[4].mxu0 }
 0x454   :  { %v18043_v23 = vpop.f32.mrb[5].mxu1  ;;  %v18073_v24 = vpop.f32.mrb[5].mxu0  ;;  %v3335_v25 = vsel %vm1500_vm3, %v2877_v22, -inf }
 0x455   :  { %3336 = vmax.xlane.f32.xlu1 %v3335_v25 }
 0x466   :  { %3805 = vrot.lane.b32.xlu1 %v20226_v51, %s20068_s24 }
 0x46a   :  { %4261 = vrot.lane.b32.xlu1 %v20223_v50, %s20069_s25 }
 0x46e   :  { %4263 = vrot.lane.b32.xlu1 %v20223_v50, %s20070_s26 }
 0x47f   :  { %v3331_v27 = vpop.f32.mrb[6].mxu1 }
 0x480   :  { %v18103_v28 = vpop.f32.mrb[7].mxu1  ;;  %v3338_v29 = vsel %vm1500_vm3, %v3331_v27, -inf }
 0x481   :  { %3339 = vmax.xlane.f32.xlu0 %v3338_v29 }
 0x497   :  { %3353 = vrot.lane.b32.xlu0 %v20223_v50, %s20068_s24  ;;  %s20087_s24 = smov 4  }
 0x49b   :  { %4715 = vrot.lane.b32.xlu0 %v20226_v51, %s20069_s25  ;;  %s20088_s25 = smov 8  }
 0x49f   :  { %4717 = vrot.lane.b32.xlu0 %v20226_v51, %s20070_s26  ;;  %s20089_s26 = smov 12  }
 0x4e2   :  { %v3337_v30 = vpop.xlane.xlu1 %3336 }
 0x4e3   :  { %v3341_v33 = vsub.f32 %v2877_v22, %v3337_v30 }
 0x4e5   :  { %v3343_v34 = vmul.f32 1.442695, %v3341_v33 }
 0x4e6   :  { %v3806_v31 = vpop.permute.xlu1 %3805 }
 0x4e7   :  { %v20414_v32 = vand.u32 4294901760, %v3806_v31  ;;  %19968 = vpow2.f32 %v3343_v34 }
 0x4e9   :  { %18135 = vmatpush3.msra.mxu1 %v20414_v32  ;;  %v20429_v55 = vsub.f32 %v3806_v31, %v20414_v32 }
 0x4ea   :  { %18139 = vmatprep.subr.mxu1 %v20062_v46  ;;  %v4262_v63 = vpop.permute.xlu1 %4261 }
 0x4eb   :  { %v3890_v59 = vand.u32 4294901760, %v20429_v55  ;;  %v4265_v4 = vsel %vm596_vm2, %v4262_v63, 0 }
 0x4ec   :  { %v20455_v6 = vand.u32 4294901760, %v4265_v4 }
 0x4ed   :  { %v3891_v62 = vsub.f32 %v20429_v55, %v3890_v59 }
 0x4ee   :  { %v4264_v3 = vpop.permute.xlu1 %4263  ;;  %v4336_v8 = vsub.f32 %v4265_v4, %v20455_v6 }
 0x4ef   :  { %v3892_v2 = vand.u32 4294901760, %v3891_v62  ;;  %v4267_v5 = vsel %vm596_vm2, %v4264_v3, 0 }
 0x4f0   :  { %v20458_v7 = vand.u32 4294901760, %v4267_v5  ;;  %v4337_v10 = vand.u32 4294901760, %v4336_v8 }
 0x4f1   :  { %v20418_v35 = vpop.eup %19968 }
 0x4f2   :  { %v3357_v36 = vsel %vm1500_vm3, %v20418_v35, 0  ;;  %v4347_v9 = vsub.f32 %v4267_v5, %v20458_v7  ;;  %v4338_v13 = vsub.f32 %v4336_v8, %v4337_v10 }
 0x4f3   :  { %v20422_v37 = vand.u32 4294901760, %v3357_v36 }
 0x4f4   :  { %v4348_v12 = vand.u32 4294901760, %v4347_v9  ;;  %v4339_v16 = vand.u32 4294901760, %v4338_v13 }
 0x4f5   :  { %v3426_v38 = vsub.f32 %v3357_v36, %v20422_v37 }
 0x4f6   :  { %v4349_v14 = vsub.f32 %v4347_v9, %v4348_v12 }
 0x4f7   :  { %v3427_v39 = vand.u32 4294901760, %v3426_v38 }
 0x4f8   :  { %v4350_v18 = vand.u32 4294901760, %v4349_v14 }
 0x4f9   :  { %v3428_v42 = vsub.f32 %v3426_v38, %v3427_v39 }
 0x4fb   :  { %v3429_v47 = vand.u32 4294901760, %v3428_v42 }
 0x50e   :  { %v3340_v40 = vpop.xlane.xlu0 %3339 }
 0x50f   :  { %v3342_v41 = vsub.f32 %v3331_v27, %v3340_v40 }
 0x511   :  { %v3345_v43 = vmul.f32 1.442695, %v3342_v41 }
 0x512   :  { %v3354_v44 = vpop.permute.xlu0 %3353 }
 0x513   :  { %19970 = vpow2.f32 %v3345_v43  ;;  %v3360_v45 = vand.u32 4294901760, %v3354_v44 }
 0x515   :  { %v3437_v48 = vsub.f32 %v3354_v44, %v3360_v45  ;;  %18105 = vmatpush3.msra.mxu0 %v3360_v45 }
 0x516   :  { %18107 = vmatmul.mubr.f32.vlgmr.msra.gmra.mrb[6].mxu0 %v3429_v47  ;;  %18109 = vmatprep.subr.mxu0 %v20062_v46  ;;  %v4716_v11 = vpop.permute.xlu0 %4715 }
 0x517   :  { %v3438_v49 = vand.u32 4294901760, %v3437_v48  ;;  %18111 = vmatprep.mubr.msk.f32.mxu0 %vm20063_vm1, %v20062_v46  ;;  %v4719_v17 = vsel %vm596_vm2, %v4716_v11, 0 }
 0x518   :  { %v4789_v22 = vand.u32 4294901760, %v4719_v17 }
 0x519   :  { %v3439_v52 = vsub.f32 %v3437_v48, %v3438_v49 }
 0x51a   :  { %v4718_v15 = vpop.permute.xlu0 %4717  ;;  %v4790_v24 = vsub.f32 %v4719_v17, %v4789_v22 }
 0x51b   :  { %v3440_v53 = vand.u32 4294901760, %v3439_v52  ;;  %v4721_v20 = vsel %vm596_vm2, %v4718_v15, 0 }
 0x51c   :  { %v4724_v23 = vand.u32 4294901760, %v4721_v20  ;;  %v4791_v27 = vand.u32 4294901760, %v4790_v24 }
 0x51d   :  { %v20431_v56 = vpop.eup %19970  ;;  %18110 = vmatpush3.msra.mxu0 %v3440_v53 }
 0x51e   :  { %v3809_v57 = vsel %vm1500_vm3, %v20431_v56, 0  ;;  %18112 = vmatmul.mubr.f32.vlgmr.msra.gmra.mrb[6].mxu0 %v20422_v37  ;;  %18114 = vmatprep.subr.mxu0 %v20062_v46  ;;  %v4801_v25 = vsub.f32 %v4721_v20, %v4724_v23  ;;  %v4792_v29 = vsub.f32 %v4790_v24, %v4791_v27 }
 0x51f   :  { %v20437_v58 = vand.u32 4294901760, %v3809_v57  ;;  %18115 = vmatpush3.msra.mxu0 %v3437_v48  ;;  %18116 = vmatprep.mubr.msk.f32.mxu0 %vm20063_vm1, %v20062_v46 }
 0x520   :  { %18119 = vmatprep.subr.mxu0 %v20062_v46  ;;  %v4802_v28 = vand.u32 4294901760, %v4801_v25  ;;  %v4793_v31 = vand.u32 4294901760, %v4792_v29 }
 0x521   :  { %v3878_v60 = vsub.f32 %v3809_v57, %v20437_v58 }
 0x522   :  { %v4803_v30 = vsub.f32 %v4801_v25, %v4802_v28 }
 0x523   :  { %v3879_v61 = vand.u32 4294901760, %v3878_v60 }
 0x525   :  { %v3880_v0 = vsub.f32 %v3878_v60, %v3879_v61 }
 0x526   :  { %18117 = vmatmul.mubr.f32.vlgmr.msra.gmra.mrb[6].mxu0 %v3426_v38 }
 0x527   :  { %18120 = vmatpush3.msra.mxu0 %v3360_v45  ;;  %v3881_v1 = vand.u32 4294901760, %v3880_v0  ;;  %18121 = vmatprep.mubr.msk.f32.mxu0 %vm20063_vm1, %v20062_v46 }
 0x528   :  { %18124 = vmatprep.subr.mxu0 %v20062_v46 }
 0x529   :  { %18137 = vmatmul.mubr.f32.vlgmr.msra.gmra.mrb[8].mxu1 %v3881_v1 }
 0x52a   :  { %18140 = vmatpush3.msra.mxu1 %v3892_v2  ;;  %18141 = vmatprep.mubr.msk.f32.mxu1 %vm20063_vm1, %v20062_v46 }
 0x52b   :  { %18144 = vmatprep.subr.mxu1 %v20062_v46 }
 0x52e   :  { %18122 = vmatmul.mubr.f32.vlgmr.msra.gmra.mrb[6].mxu0 %v3427_v39 }
 0x52f   :  { %18125 = vmatpush3.msra.mxu0 %v3438_v49  ;;  %18126 = vmatprep.mubr.msk.f32.mxu0 %vm20063_vm1, %v20062_v46 }
 0x530   :  { %18129 = vmatprep.subr.mxu0 %v20062_v46 }
 0x531   :  { %18142 = vmatmul.mubr.f32.vlgmr.msra.gmra.mrb[8].mxu1 %v20437_v58 }
 0x532   :  { %18145 = vmatpush3.msra.mxu1 %v20429_v55  ;;  %18146 = vmatprep.mubr.msk.f32.mxu1 %vm20063_vm1, %v20062_v46 }
 0x533   :  { %18149 = vmatprep.subr.mxu1 %v20062_v46 }
 0x536   :  { %18127 = vmatmul.mubr.f32.vlgmr.msra.gmra.mrb[6].mxu0 %v20422_v37 }
 0x537   :  { %18130 = vmatpush3.msra.mxu0 %v3360_v45  ;;  %18131 = vmatprep.mubr.msk.f32.mxu0 %vm20063_vm1, %v20062_v46 }
 0x538   :  { %18164 = vmatprep.subr.mxu0 %v20062_v46 }
 0x539   :  { %18147 = vmatmul.mubr.f32.vlgmr.msra.gmra.mrb[8].mxu1 %v3878_v60 }
 0x53a   :  { %18150 = vmatpush3.msra.mxu1 %v20414_v32  ;;  %18151 = vmatprep.mubr.msk.f32.mxu1 %vm20063_vm1, %v20062_v46 }
 0x53b   :  { %18154 = vmatprep.subr.mxu1 %v20062_v46 }
 0x53e   :  { %18132 = vmatmul.mubr.f32.vlgmr.msra.gmra.mrb[6].mxu0 %v20422_v37 }
 0x53f   :  { %18165 = vmatpush3.xpose.msra.mxu0 %v20458_v7  ;;  %18166 = vmatprep.mubr.msk.f32.mxu0 %vm20063_vm1, %v20062_v46 }
 0x540   :  { %18169 = vmatprep.subr.mxu0 %v20062_v46 }
 0x541   :  { %18152 = vmatmul.mubr.f32.vlgmr.msra.gmra.mrb[8].mxu1 %v3879_v61 }
 0x542   :  { %18155 = vmatpush3.msra.mxu1 %v3890_v59  ;;  %18167 = vmatmul.mubr.f32.vlgmr.msra.gmra.mrb[8].mxu0 %v4339_v16 }
 0x543   :  { %18170 = vmatpush3.xpose.msra.mxu0 %v4350_v18  ;;  %18156 = vmatprep.mubr.msk.f32.mxu1 %vm20063_vm1, %v20062_v46 }
 0x544   :  { %18159 = vmatprep.subr.mxu1 %v20062_v46  ;;  %18171 = vmatprep.mubr.msk.f32.mxu0 %vm20063_vm1, %v20062_v46 }
 0x545   :  { %18174 = vmatprep.subr.mxu0 %v20062_v46 }
 0x549   :  { %18157 = vmatmul.mubr.f32.vlgmr.msra.gmra.mrb[8].mxu1 %v20437_v58 }
 0x54a   :  { %18160 = vmatpush3.msra.mxu1 %v20414_v32  ;;  %18172 = vmatmul.mubr.f32.vlgmr.msra.gmra.mrb[8].mxu0 %v20455_v6  ;;  %v4804_v32 = vand.u32 4294901760, %v4803_v30 }
 0x54b   :  { %18175 = vmatpush3.xpose.msra.mxu0 %v4347_v9  ;;  %18161 = vmatprep.mubr.msk.f32.mxu1 %vm20063_vm1, %v20062_v46 }
 0x54c   :  { %18194 = vmatprep.subr.mxu1 %v20062_v46  ;;  %18176 = vmatprep.mubr.msk.f32.mxu0 %vm20063_vm1, %v20062_v46 }
 0x54d   :  { %18179 = vmatprep.subr.mxu0 %v20062_v46 }
 0x551   :  { %18162 = vmatmul.mubr.f32.vlgmr.msra.gmra.mrb[8].mxu1 %v20437_v58 }
 0x552   :  { %18195 = vmatpush3.xpose.msra.mxu1 %v4724_v23  ;;  %18177 = vmatmul.mubr.f32.vlgmr.msra.gmra.mrb[8].mxu0 %v4336_v8 }
 0x553   :  { %18180 = vmatpush3.xpose.msra.mxu0 %v20458_v7  ;;  %18196 = vmatprep.mubr.msk.f32.mxu1 %vm20063_vm1, %v20062_v46 }
 0x554   :  { %18199 = vmatprep.subr.mxu1 %v20062_v46  ;;  %18181 = vmatprep.mubr.msk.f32.mxu0 %vm20063_vm1, %v20062_v46 }
 0x555   :  { %18197 = vmatmul.mubr.f32.vlgmr.msra.gmra.mrb[10].mxu1 %v4793_v31  ;;  %18184 = vmatprep.subr.mxu0 %v20062_v46 }
 0x556   :  { %18200 = vmatpush3.xpose.msra.mxu1 %v4804_v32  ;;  %18201 = vmatprep.mubr.msk.f32.mxu1 %vm20063_vm1, %v20062_v46 }
 0x557   :  { %18204 = vmatprep.subr.mxu1 %v20062_v46 }
 0x55a   :  { %18182 = vmatmul.mubr.f32.vlgmr.msra.gmra.mrb[8].mxu0 %v4337_v10 }
 0x55b   :  { %18185 = vmatpush3.xpose.msra.mxu0 %v4348_v12  ;;  %18186 = vmatprep.mubr.msk.f32.mxu0 %vm20063_vm1, %v20062_v46 }
 0x55c   :  { %18189 = vmatprep.subr.mxu0 %v20062_v46 }
 0x55d   :  { %18202 = vmatmul.mubr.f32.vlgmr.msra.gmra.mrb[10].mxu1 %v4789_v22 }
 0x55e   :  { %18205 = vmatpush3.xpose.msra.mxu1 %v4801_v25  ;;  %18206 = vmatprep.mubr.msk.f32.mxu1 %vm20063_vm1, %v20062_v46 }
 0x55f   :  { %18209 = vmatprep.subr.mxu1 %v20062_v46 }
 0x562   :  { %18187 = vmatmul.mubr.f32.vlgmr.msra.gmra.mrb[8].mxu0 %v20455_v6 }
 0x563   :  { %18190 = vmatpush3.xpose.msra.mxu0 %v20458_v7  ;;  %18191 = vmatprep.mubr.msk.f32.mxu0 %vm20063_vm1, %v20062_v46 }
 0x564   :  { %18224 = vmatprep.subr.mxu0 %v20062_v46 }
 0x565   :  { %18207 = vmatmul.mubr.f32.vlgmr.msra.gmra.mrb[10].mxu1 %v4790_v24 }
 0x566   :  { %18210 = vmatpush3.xpose.msra.mxu1 %v4724_v23  ;;  %18211 = vmatprep.mubr.msk.f32.mxu1 %vm20063_vm1, %v20062_v46 }
 0x567   :  { %18214 = vmatprep.subr.mxu1 %v20062_v46 }
 0x56a   :  { %18192 = vmatmul.mubr.f32.vlgmr.msra.gmra.mrb[8].mxu0 %v20455_v6 }
 0x56b   :  { %18226 = vmatprep.mubr.msk.f32.mxu0 %vm20063_vm1, %v20062_v46 }
 0x56d   :  { %18212 = vmatmul.mubr.f32.vlgmr.msra.gmra.mrb[10].mxu1 %v4791_v27 }
 0x56e   :  { %18215 = vmatpush3.xpose.msra.mxu1 %v4802_v28  ;;  %18216 = vmatprep.mubr.msk.f32.mxu1 %vm20063_vm1, %v20062_v46 }
 0x56f   :  { %18219 = vmatprep.subr.mxu1 %v20062_v46 }
 0x575   :  { %18217 = vmatmul.mubr.f32.vlgmr.msra.gmra.mrb[10].mxu1 %v4789_v22 }
 0x576   :  { %18220 = vmatpush3.xpose.msra.mxu1 %v4724_v23  ;;  %18221 = vmatprep.mubr.msk.f32.mxu1 %vm20063_vm1, %v20062_v46 }
 0x577   :  { %18254 = vmatprep.subr.mxu1 %v20062_v46 }
 0x57d   :  { %18222 = vmatmul.mubr.f32.vlgmr.msra.gmra.mrb[10].mxu1 %v4789_v22 }
 0x57e   :  { %18256 = vmatprep.mubr.msk.f32.mxu1 %vm20063_vm1, %v20062_v46 }
 0x611   :  { %v20533_v33 = vpop.f32.mrb[6].mxu0 }
 0x612   :  { %v18133_v34 = vpop.f32.mrb[7].mxu0 }
 0x624   :  { %v20535_v36 = vpop.f32.mrb[8].mxu1 }
 0x625   :  { %v18163_v37 = vpop.f32.mrb[9].mxu1 }
 0x63d   :  { %v4711_v38 = vpop.f32.mrb[8].mxu0 }
 0x63e   :  { %v18193_v39 = vpop.f32.mrb[9].mxu0  ;;  %v5169_v40 = vsel %vm1500_vm3, %v4711_v38, -inf }
 0x63f   :  { %5170 = vmax.xlane.f32.xlu1 %v5169_v40 }
 0x650   :  { %5639 = vrot.lane.b32.xlu1 %v20226_v51, %s20071_s27  ;;  %v5165_v41 = vpop.f32.mrb[10].mxu1 }
 0x651   :  { %v18223_v42 = vpop.f32.mrb[11].mxu1  ;;  %v5172_v43 = vsel %vm1500_vm3, %v5165_v41, -inf }
 0x652   :  { %5173 = vmax.xlane.f32.xlu0 %v5172_v43 }
 0x654   :  { %6095 = vrot.lane.b32.xlu1 %v20223_v50, %s20072_s28 }
 0x658   :  { %6097 = vrot.lane.b32.xlu1 %v20223_v50, %s20073_s29 }
 0x668   :  { %5187 = vrot.lane.b32.xlu0 %v20223_v50, %s20071_s27  ;;  %s20090_s27 = smov 16  }
 0x66c   :  { %6549 = vrot.lane.b32.xlu0 %v20226_v51, %s20072_s28  ;;  %s20091_s28 = smov 20  }
 0x670   :  { %6551 = vrot.lane.b32.xlu0 %v20226_v51, %s20073_s29  ;;  %s20092_s29 = smov 24  }
 0x6cc   :  { %v5171_v44 = vpop.xlane.xlu1 %5170 }
 0x6cd   :  { %v5175_v45 = vsub.f32 %v4711_v38, %v5171_v44 }
 0x6cf   :  { %v5177_v47 = vmul.f32 1.442695, %v5175_v45 }
 0x6d0   :  { %v5640_v48 = vpop.permute.xlu1 %5639 }
 0x6d1   :  { %19972 = vpow2.f32 %v5177_v47  ;;  %v20545_v49 = vand.u32 4294901760, %v5640_v48 }
 0x6d3   :  { %18255 = vmatpush3.msra.mxu1 %v20545_v49  ;;  %v20560_v6 = vsub.f32 %v5640_v48, %v20545_v49 }
 0x6d4   :  { %18259 = vmatprep.subr.mxu1 %v20062_v46  ;;  %v6096_v14 = vpop.permute.xlu1 %6095 }
 0x6d5   :  { %v5724_v10 = vand.u32 4294901760, %v20560_v6  ;;  %v6099_v20 = vsel %vm596_vm2, %v6096_v14, 0 }
 0x6d6   :  { %v20586_v23 = vand.u32 4294901760, %v6099_v20 }
 0x6d7   :  { %v5725_v13 = vsub.f32 %v20560_v6, %v5724_v10 }
 0x6d8   :  { %v6098_v18 = vpop.permute.xlu1 %6097  ;;  %v6170_v25 = vsub.f32 %v6099_v20, %v20586_v23 }
 0x6d9   :  { %v5726_v17 = vand.u32 4294901760, %v5725_v13  ;;  %v6101_v22 = vsel %vm596_vm2, %v6098_v18, 0 }
 0x6da   :  { %v20589_v24 = vand.u32 4294901760, %v6101_v22  ;;  %v6171_v28 = vand.u32 4294901760, %v6170_v25 }
 0x6db   :  { %v20549_v52 = vpop.eup %19972 }
 0x6dc   :  { %v5191_v53 = vsel %vm1500_vm3, %v20549_v52, 0  ;;  %v6181_v27 = vsub.f32 %v6101_v22, %v20589_v24  ;;  %v6172_v31 = vsub.f32 %v6170_v25, %v6171_v28 }
 0x6dd   :  { %v20553_v55 = vand.u32 4294901760, %v5191_v53 }
 0x6de   :  { %v6182_v30 = vand.u32 4294901760, %v6181_v27  ;;  %v6173_v37 = vand.u32 4294901760, %v6172_v31 }
 0x6df   :  { %v5174_v57 = vpop.xlane.xlu0 %5173  ;;  %v5260_v58 = vsub.f32 %v5191_v53, %v20553_v55 }
 0x6e0   :  { %v5176_v59 = vsub.f32 %v5165_v41, %v5174_v57  ;;  %v6183_v32 = vsub.f32 %v6181_v27, %v6182_v30 }
 0x6e1   :  { %v5261_v60 = vand.u32 4294901760, %v5260_v58 }
 0x6e2   :  { %v5179_v61 = vmul.f32 1.442695, %v5176_v59  ;;  %v6184_v39 = vand.u32 4294901760, %v6183_v32 }
 0x6e3   :  { %v5188_v62 = vpop.permute.xlu0 %5187  ;;  %v5262_v63 = vsub.f32 %v5260_v58, %v5261_v60 }
 0x6e4   :  { %19974 = vpow2.f32 %v5179_v61  ;;  %v5194_v0 = vand.u32 4294901760, %v5188_v62 }
 0x6e5   :  { %v5263_v1 = vand.u32 4294901760, %v5262_v63 }
 0x6e6   :  { %v5271_v2 = vsub.f32 %v5188_v62, %v5194_v0  ;;  %18225 = vmatpush3.msra.mxu0 %v5194_v0 }
 0x6e7   :  { %18227 = vmatmul.mubr.f32.vlgmr.msra.gmra.mrb[10].mxu0 %v5263_v1  ;;  %18229 = vmatprep.subr.mxu0 %v20062_v46  ;;  %v6550_v29 = vpop.permute.xlu0 %6549 }
 0x6e8   :  { %v5272_v3 = vand.u32 4294901760, %v5271_v2  ;;  %18231 = vmatprep.mubr.msk.f32.mxu0 %vm20063_vm1, %v20062_v46  ;;  %v6553_v38 = vsel %vm596_vm2, %v6550_v29, 0 }
 0x6e9   :  { %v6623_v41 = vand.u32 4294901760, %v6553_v38 }
 0x6ea   :  { %v5273_v4 = vsub.f32 %v5271_v2, %v5272_v3 }
 0x6eb   :  { %v6552_v34 = vpop.permute.xlu0 %6551  ;;  %v6624_v43 = vsub.f32 %v6553_v38, %v6623_v41 }
 0x6ec   :  { %v5274_v5 = vand.u32 4294901760, %v5273_v4  ;;  %v6555_v40 = vsel %vm596_vm2, %v6552_v34, 0 }
 0x6ed   :  { %v6558_v42 = vand.u32 4294901760, %v6555_v40  ;;  %v6625_v45 = vand.u32 4294901760, %v6624_v43 }
 0x6ee   :  { %v20562_v7 = vpop.eup %19974  ;;  %18230 = vmatpush3.msra.mxu0 %v5274_v5 }
 0x6ef   :  { %v5643_v8 = vsel %vm1500_vm3, %v20562_v7, 0  ;;  %18232 = vmatmul.mubr.f32.vlgmr.msra.gmra.mrb[10].mxu0 %v20553_v55  ;;  %18234 = vmatprep.subr.mxu0 %v20062_v46  ;;  %v6635_v44 = vsub.f32 %v6555_v40, %v6558_v42  ;;  %v6626_v48 = vsub.f32 %v6624_v43, %v6625_v45 }
 0x6f0   :  { %v20568_v9 = vand.u32 4294901760, %v5643_v8  ;;  %18235 = vmatpush3.msra.mxu0 %v5271_v2  ;;  %18236 = vmatprep.mubr.msk.f32.mxu0 %vm20063_vm1, %v20062_v46 }
 0x6f1   :  { %18239 = vmatprep.subr.mxu0 %v20062_v46  ;;  %v6636_v47 = vand.u32 4294901760, %v6635_v44 }
 0x6f2   :  { %v5712_v11 = vsub.f32 %v5643_v8, %v20568_v9 }
 0x6f3   :  { %v6637_v53 = vsub.f32 %v6635_v44, %v6636_v47 }
 0x6f4   :  { %v5713_v12 = vand.u32 4294901760, %v5712_v11 }
 0x6f6   :  { %v5714_v15 = vsub.f32 %v5712_v11, %v5713_v12 }
 0x6f7   :  { %18237 = vmatmul.mubr.f32.vlgmr.msra.gmra.mrb[10].mxu0 %v5260_v58 }
 0x6f8   :  { %18240 = vmatpush3.msra.mxu0 %v5194_v0  ;;  %v5715_v16 = vand.u32 4294901760, %v5714_v15  ;;  %18241 = vmatprep.mubr.msk.f32.mxu0 %vm20063_vm1, %v20062_v46 }
 0x6f9   :  { %18244 = vmatprep.subr.mxu0 %v20062_v46 }
 0x6fa   :  { %18257 = vmatmul.mubr.f32.vlgmr.msra.gmra.mrb[12].mxu1 %v5715_v16 }
 0x6fb   :  { %18260 = vmatpush3.msra.mxu1 %v5726_v17  ;;  %18261 = vmatprep.mubr.msk.f32.mxu1 %vm20063_vm1, %v20062_v46 }
 0x6fc   :  { %18264 = vmatprep.subr.mxu1 %v20062_v46 }
 0x6ff   :  { %18242 = vmatmul.mubr.f32.vlgmr.msra.gmra.mrb[10].mxu0 %v5261_v60 }
 0x700   :  { %18245 = vmatpush3.msra.mxu0 %v5272_v3  ;;  %18246 = vmatprep.mubr.msk.f32.mxu0 %vm20063_vm1, %v20062_v46 }
 0x701   :  { %18249 = vmatprep.subr.mxu0 %v20062_v46 }
 0x702   :  { %18262 = vmatmul.mubr.f32.vlgmr.msra.gmra.mrb[12].mxu1 %v20568_v9 }
 0x703   :  { %18265 = vmatpush3.msra.mxu1 %v20560_v6  ;;  %18266 = vmatprep.mubr.msk.f32.mxu1 %vm20063_vm1, %v20062_v46 }
 0x704   :  { %18269 = vmatprep.subr.mxu1 %v20062_v46 }
 0x707   :  { %18247 = vmatmul.mubr.f32.vlgmr.msra.gmra.mrb[10].mxu0 %v20553_v55 }
 0x708   :  { %18250 = vmatpush3.msra.mxu0 %v5194_v0  ;;  %18251 = vmatprep.mubr.msk.f32.mxu0 %vm20063_vm1, %v20062_v46 }
 0x709   :  { %18284 = vmatprep.subr.mxu0 %v20062_v46 }
 0x70a   :  { %18267 = vmatmul.mubr.f32.vlgmr.msra.gmra.mrb[12].mxu1 %v5712_v11 }
 0x70b   :  { %18270 = vmatpush3.msra.mxu1 %v20545_v49  ;;  %18271 = vmatprep.mubr.msk.f32.mxu1 %vm20063_vm1, %v20062_v46 }
 0x70c   :  { %18274 = vmatprep.subr.mxu1 %v20062_v46 }
 0x70f   :  { %18252 = vmatmul.mubr.f32.vlgmr.msra.gmra.mrb[10].mxu0 %v20553_v55  ;;  %v6638_v55 = vand.u32 4294901760, %v6637_v53 }
 0x710   :  { %18285 = vmatpush3.xpose.msra.mxu0 %v20589_v24  ;;  %18286 = vmatprep.mubr.msk.f32.mxu0 %vm20063_vm1, %v20062_v46 }
 0x711   :  { %18289 = vmatprep.subr.mxu0 %v20062_v46 }
 0x712   :  { %18272 = vmatmul.mubr.f32.vlgmr.msra.gmra.mrb[12].mxu1 %v5713_v12 }
 0x713   :  { %18275 = vmatpush3.msra.mxu1 %v5724_v10  ;;  %18287 = vmatmul.mubr.f32.vlgmr.msra.gmra.mrb[12].mxu0 %v6173_v37 }
 0x714   :  { %18290 = vmatpush3.xpose.msra.mxu0 %v6184_v39  ;;  %18276 = vmatprep.mubr.msk.f32.mxu1 %vm20063_vm1, %v20062_v46 }
 0x715   :  { %18279 = vmatprep.subr.mxu1 %v20062_v46  ;;  %18291 = vmatprep.mubr.msk.f32.mxu0 %vm20063_vm1, %v20062_v46 }
 0x716   :  { %18294 = vmatprep.subr.mxu0 %v20062_v46 }
 0x71a   :  { %18277 = vmatmul.mubr.f32.vlgmr.msra.gmra.mrb[12].mxu1 %v20568_v9 }
 0x71b   :  { %18280 = vmatpush3.msra.mxu1 %v20545_v49  ;;  %18292 = vmatmul.mubr.f32.vlgmr.msra.gmra.mrb[12].mxu0 %v20586_v23  ;;  %v6627_v49 = vand.u32 4294901760, %v6626_v48 }
 0x71c   :  { %18295 = vmatpush3.xpose.msra.mxu0 %v6181_v27  ;;  %18281 = vmatprep.mubr.msk.f32.mxu1 %vm20063_vm1, %v20062_v46 }
 0x71d   :  { %18314 = vmatprep.subr.mxu1 %v20062_v46  ;;  %18296 = vmatprep.mubr.msk.f32.mxu0 %vm20063_vm1, %v20062_v46 }
 0x71e   :  { %18299 = vmatprep.subr.mxu0 %v20062_v46 }
 0x722   :  { %18282 = vmatmul.mubr.f32.vlgmr.msra.gmra.mrb[12].mxu1 %v20568_v9 }
 0x723   :  { %18315 = vmatpush3.xpose.msra.mxu1 %v6558_v42  ;;  %18297 = vmatmul.mubr.f32.vlgmr.msra.gmra.mrb[12].mxu0 %v6170_v25 }
 0x724   :  { %18300 = vmatpush3.xpose.msra.mxu0 %v20589_v24  ;;  %18316 = vmatprep.mubr.msk.f32.mxu1 %vm20063_vm1, %v20062_v46 }
 0x725   :  { %18319 = vmatprep.subr.mxu1 %v20062_v46  ;;  %18301 = vmatprep.mubr.msk.f32.mxu0 %vm20063_vm1, %v20062_v46 }
 0x726   :  { %18317 = vmatmul.mubr.f32.vlgmr.msra.gmra.mrb[14].mxu1 %v6627_v49  ;;  %18304 = vmatprep.subr.mxu0 %v20062_v46 }
 0x727   :  { %18320 = vmatpush3.xpose.msra.mxu1 %v6638_v55  ;;  %18321 = vmatprep.mubr.msk.f32.mxu1 %vm20063_vm1, %v20062_v46 }
 0x728   :  { %18324 = vmatprep.subr.mxu1 %v20062_v46 }
 0x72b   :  { %18302 = vmatmul.mubr.f32.vlgmr.msra.gmra.mrb[12].mxu0 %v6171_v28 }
 0x72c   :  { %18305 = vmatpush3.xpose.msra.mxu0 %v6182_v30  ;;  %18306 = vmatprep.mubr.msk.f32.mxu0 %vm20063_vm1, %v20062_v46 }
 0x72d   :  { %18309 = vmatprep.subr.mxu0 %v20062_v46 }
 0x72e   :  { %18322 = vmatmul.mubr.f32.vlgmr.msra.gmra.mrb[14].mxu1 %v6623_v41 }
 0x72f   :  { %18325 = vmatpush3.xpose.msra.mxu1 %v6635_v44  ;;  %18326 = vmatprep.mubr.msk.f32.mxu1 %vm20063_vm1, %v20062_v46 }
 0x730   :  { %18329 = vmatprep.subr.mxu1 %v20062_v46 }
 0x733   :  { %18307 = vmatmul.mubr.f32.vlgmr.msra.gmra.mrb[12].mxu0 %v20586_v23 }
 0x734   :  { %18310 = vmatpush3.xpose.msra.mxu0 %v20589_v24  ;;  %18311 = vmatprep.mubr.msk.f32.mxu0 %vm20063_vm1, %v20062_v46 }
 0x735   :  { %18344 = vmatprep.subr.mxu0 %v20062_v46 }
 0x736   :  { %18327 = vmatmul.mubr.f32.vlgmr.msra.gmra.mrb[14].mxu1 %v6624_v43 }
 0x737   :  { %18330 = vmatpush3.xpose.msra.mxu1 %v6558_v42  ;;  %18331 = vmatprep.mubr.msk.f32.mxu1 %vm20063_vm1, %v20062_v46 }
 0x738   :  { %18334 = vmatprep.subr.mxu1 %v20062_v46 }
 0x73b   :  { %18312 = vmatmul.mubr.f32.vlgmr.msra.gmra.mrb[12].mxu0 %v20586_v23 }
 0x73c   :  { %18346 = vmatprep.mubr.msk.f32.mxu0 %vm20063_vm1, %v20062_v46 }
 0x73e   :  { %18332 = vmatmul.mubr.f32.vlgmr.msra.gmra.mrb[14].mxu1 %v6625_v45 }
 0x73f   :  { %18335 = vmatpush3.xpose.msra.mxu1 %v6636_v47  ;;  %18336 = vmatprep.mubr.msk.f32.mxu1 %vm20063_vm1, %v20062_v46 }
 0x740   :  { %18339 = vmatprep.subr.mxu1 %v20062_v46 }
 0x746   :  { %18337 = vmatmul.mubr.f32.vlgmr.msra.gmra.mrb[14].mxu1 %v6623_v41 }
 0x747   :  { %18340 = vmatpush3.xpose.msra.mxu1 %v6558_v42  ;;  %18341 = vmatprep.mubr.msk.f32.mxu1 %vm20063_vm1, %v20062_v46 }
 0x748   :  { %18374 = vmatprep.subr.mxu1 %v20062_v46 }
 0x74e   :  { %18342 = vmatmul.mubr.f32.vlgmr.msra.gmra.mrb[14].mxu1 %v6623_v41 }
 0x74f   :  { %18376 = vmatprep.mubr.msk.f32.mxu1 %vm20063_vm1, %v20062_v46 }
 0x7e2   :  { %v20664_v57 = vpop.f32.mrb[10].mxu0 }
 0x7e3   :  { %v18253_v58 = vpop.f32.mrb[11].mxu0 }
 0x7f5   :  { %v20666_v59 = vpop.f32.mrb[12].mxu1 }
 0x7f6   :  { %v18283_v60 = vpop.f32.mrb[13].mxu1 }
 0x80e   :  { %v6545_v61 = vpop.f32.mrb[12].mxu0 }
 0x80f   :  { %v18313_v62 = vpop.f32.mrb[13].mxu0  ;;  %v7003_v63 = vsel %vm1500_vm3, %v6545_v61, -inf }
 0x810   :  { %7004 = vmax.xlane.f32.xlu1 %v7003_v63 }
 0x821   :  { %7473 = vrot.lane.b32.xlu1 %v20226_v51, %s20074_s30  ;;  %v6999_v0 = vpop.f32.mrb[14].mxu1 }
 0x822   :  { %v18343_v1 = vpop.f32.mrb[15].mxu1  ;;  %v7006_v2 = vsel %vm1500_vm3, %v6999_v0, -inf }
 0x823   :  { %7007 = vmax.xlane.f32.xlu0 %v7006_v2 }
 0x825   :  { %7929 = vrot.lane.b32.xlu1 %v20223_v50, %s20075_s14 }
 0x829   :  { %7931 = vrot.lane.b32.xlu1 %v20223_v50, %s20076_s15 }
 0x839   :  { %7021 = vrot.lane.b32.xlu0 %v20223_v50, %s20074_s30  ;;  %s20093_s30 = smov 28  }
 0x83d   :  { %8383 = vrot.lane.b32.xlu0 %v20226_v51, %s20075_s14 }
 0x841   :  { %8385 = vrot.lane.b32.xlu0 %v20226_v51, %s20076_s15 }
 0x89d   :  { %v7005_v3 = vpop.xlane.xlu1 %7004 }
 0x89e   :  { %v7009_v4 = vsub.f32 %v6545_v61, %v7005_v3 }
 0x8a0   :  { %v7011_v5 = vmul.f32 1.442695, %v7009_v4 }
 0x8a1   :  { %v7474_v6 = vpop.permute.xlu1 %7473 }
 0x8a2   :  { %19976 = vpow2.f32 %v7011_v5  ;;  %v20676_v8 = vand.u32 4294901760, %v7474_v6 }
 0x8a4   :  { %18375 = vmatpush3.msra.mxu1 %v20676_v8  ;;  %v20691_v28 = vsub.f32 %v7474_v6, %v20676_v8 }
 0x8a5   :  { %18379 = vmatprep.subr.mxu1 %v20062_v46  ;;  %v7930_v39 = vpop.permute.xlu1 %7929 }
 0x8a6   :  { %v7558_v32 = vand.u32 4294901760, %v20691_v28  ;;  %v7933_v44 = vsel %vm596_vm2, %v7930_v39, 0 }
 0x8a7   :  { %v20717_v47 = vand.u32 4294901760, %v7933_v44 }
 0x8a8   :  { %v7559_v38 = vsub.f32 %v20691_v28, %v7558_v32 }
 0x8a9   :  { %v7932_v43 = vpop.permute.xlu1 %7931  ;;  %v8004_v53 = vsub.f32 %v7933_v44, %v20717_v47 }
 0x8aa   :  { %v7560_v42 = vand.u32 4294901760, %v7559_v38  ;;  %v7935_v45 = vsel %vm596_vm2, %v7932_v43, 0 }
 0x8ab   :  { %v20720_v48 = vand.u32 4294901760, %v7935_v45  ;;  %v8005_v55 = vand.u32 4294901760, %v8004_v53 }
 0x8ac   :  { %v20680_v9 = vpop.eup %19976 }
 0x8ad   :  { %v7025_v10 = vsel %vm1500_vm3, %v20680_v9, 0  ;;  %v8015_v49 = vsub.f32 %v7935_v45, %v20720_v48  ;;  %v8006_v61 = vsub.f32 %v8004_v53, %v8005_v55 }
 0x8ae   :  { %v20684_v11 = vand.u32 4294901760, %v7025_v10 }
 0x8af   :  { %v8016_v60 = vand.u32 4294901760, %v8015_v49 }
 0x8b0   :  { %v7008_v12 = vpop.xlane.xlu0 %7007  ;;  %v7094_v13 = vsub.f32 %v7025_v10, %v20684_v11 }
 0x8b1   :  { %v7010_v14 = vsub.f32 %v6999_v0, %v7008_v12  ;;  %v8017_v62 = vsub.f32 %v8015_v49, %v8016_v60  ;;  %v8007_v0 = vand.u32 4294901760, %v8006_v61 }
 0x8b2   :  { %v7095_v15 = vand.u32 4294901760, %v7094_v13 }
 0x8b3   :  { %v7013_v16 = vmul.f32 1.442695, %v7010_v14  ;;  %v8018_v2 = vand.u32 4294901760, %v8017_v62 }
 0x8b4   :  { %v7022_v17 = vpop.permute.xlu0 %7021  ;;  %v7096_v18 = vsub.f32 %v7094_v13, %v7095_v15 }
 0x8b5   :  { %19978 = vpow2.f32 %v7013_v16  ;;  %v7028_v20 = vand.u32 4294901760, %v7022_v17 }
 0x8b6   :  { %v7097_v22 = vand.u32 4294901760, %v7096_v18 }
 0x8b7   :  { %v7105_v23 = vsub.f32 %v7022_v17, %v7028_v20  ;;  %18345 = vmatpush3.msra.mxu0 %v7028_v20 }
 0x8b8   :  { %18347 = vmatmul.mubr.f32.vlgmr.msra.gmra.mrb[14].mxu0 %v7097_v22  ;;  %18349 = vmatprep.subr.mxu0 %v20062_v46  ;;  %v8384_v58 = vpop.permute.xlu0 %8383 }
 0x8b9   :  { %v7106_v24 = vand.u32 4294901760, %v7105_v23  ;;  %18351 = vmatprep.mubr.msk.f32.mxu0 %vm20063_vm1, %v20062_v46  ;;  %v8387_v1 = vsel %vm596_vm2, %v8384_v58, 0 }
 0x8ba   :  { %v8457_v4 = vand.u32 4294901760, %v8387_v1 }
 0x8bb   :  { %v7107_v25 = vsub.f32 %v7105_v23, %v7106_v24 }
 0x8bc   :  { %v8386_v63 = vpop.permute.xlu0 %8385  ;;  %v8458_v6 = vsub.f32 %v8387_v1, %v8457_v4 }
 0x8bd   :  { %v7108_v27 = vand.u32 4294901760, %v7107_v25  ;;  %v8389_v3 = vsel %vm596_vm2, %v8386_v63, 0 }
 0x8be   :  { %v8392_v5 = vand.u32 4294901760, %v8389_v3 }
 0x8bf   :  { %v20693_v29 = vpop.eup %19978  ;;  %18350 = vmatpush3.msra.mxu0 %v7108_v27 }
 0x8c0   :  { %v7477_v30 = vsel %vm1500_vm3, %v20693_v29, 0  ;;  %18352 = vmatmul.mubr.f32.vlgmr.msra.gmra.mrb[14].mxu0 %v20684_v11  ;;  %18354 = vmatprep.subr.mxu0 %v20062_v46  ;;  %v8469_v10 = vsub.f32 %v8389_v3, %v8392_v5 }
 0x8c1   :  { %v20699_v31 = vand.u32 4294901760, %v7477_v30  ;;  %18355 = vmatpush3.msra.mxu0 %v7105_v23  ;;  %18356 = vmatprep.mubr.msk.f32.mxu0 %vm20063_vm1, %v20062_v46 }
 0x8c2   :  { %18359 = vmatprep.subr.mxu0 %v20062_v46  ;;  %v8470_v12 = vand.u32 4294901760, %v8469_v10 }
 0x8c3   :  { %v7546_v34 = vsub.f32 %v7477_v30, %v20699_v31 }
 0x8c4   :  { %v8471_v14 = vsub.f32 %v8469_v10, %v8470_v12 }
 0x8c5   :  { %v7547_v37 = vand.u32 4294901760, %v7546_v34 }
 0x8c7   :  { %v7548_v40 = vsub.f32 %v7546_v34, %v7547_v37 }
 0x8c8   :  { %18357 = vmatmul.mubr.f32.vlgmr.msra.gmra.mrb[14].mxu0 %v7094_v13 }
 0x8c9   :  { %18360 = vmatpush3.msra.mxu0 %v7028_v20  ;;  %v7549_v41 = vand.u32 4294901760, %v7548_v40  ;;  %18361 = vmatprep.mubr.msk.f32.mxu0 %vm20063_vm1, %v20062_v46 }
 0x8ca   :  { %18364 = vmatprep.subr.mxu0 %v20062_v46 }
 0x8cb   :  { %18377 = vmatmul.mubr.f32.vlgmr.msra.gmra.mrb[16].mxu1 %v7549_v41 }
 0x8cc   :  { %18380 = vmatpush3.msra.mxu1 %v7560_v42  ;;  %18381 = vmatprep.mubr.msk.f32.mxu1 %vm20063_vm1, %v20062_v46 }
 0x8cd   :  { %18384 = vmatprep.subr.mxu1 %v20062_v46 }
 0x8d0   :  { %18362 = vmatmul.mubr.f32.vlgmr.msra.gmra.mrb[14].mxu0 %v7095_v15  ;;  %v8472_v15 = vand.u32 4294901760, %v8471_v14 }
 0x8d1   :  { %18365 = vmatpush3.msra.mxu0 %v7106_v24  ;;  %18366 = vmatprep.mubr.msk.f32.mxu0 %vm20063_vm1, %v20062_v46 }
 0x8d2   :  { %18369 = vmatprep.subr.mxu0 %v20062_v46 }
 0x8d3   :  { %18382 = vmatmul.mubr.f32.vlgmr.msra.gmra.mrb[16].mxu1 %v20699_v31 }
 0x8d4   :  { %18385 = vmatpush3.msra.mxu1 %v20691_v28  ;;  %18386 = vmatprep.mubr.msk.f32.mxu1 %vm20063_vm1, %v20062_v46 }
 0x8d5   :  { %18389 = vmatprep.subr.mxu1 %v20062_v46 }
 0x8d8   :  { %18367 = vmatmul.mubr.f32.vlgmr.msra.gmra.mrb[14].mxu0 %v20684_v11 }
 0x8d9   :  { %18370 = vmatpush3.msra.mxu0 %v7028_v20  ;;  %18371 = vmatprep.mubr.msk.f32.mxu0 %vm20063_vm1, %v20062_v46 }
 0x8da   :  { %18404 = vmatprep.subr.mxu0 %v20062_v46 }
 0x8db   :  { %18387 = vmatmul.mubr.f32.vlgmr.msra.gmra.mrb[16].mxu1 %v7546_v34 }
 0x8dc   :  { %18390 = vmatpush3.msra.mxu1 %v20676_v8  ;;  %18391 = vmatprep.mubr.msk.f32.mxu1 %vm20063_vm1, %v20062_v46 }
 0x8dd   :  { %18394 = vmatprep.subr.mxu1 %v20062_v46 }
 0x8e0   :  { %18372 = vmatmul.mubr.f32.vlgmr.msra.gmra.mrb[14].mxu0 %v20684_v11  ;;  %v8459_v11 = vand.u32 4294901760, %v8458_v6 }
 0x8e1   :  { %18405 = vmatpush3.xpose.msra.mxu0 %v20720_v48  ;;  %18406 = vmatprep.mubr.msk.f32.mxu0 %vm20063_vm1, %v20062_v46 }
 0x8e2   :  { %18409 = vmatprep.subr.mxu0 %v20062_v46  ;;  %v8460_v13 = vsub.f32 %v8458_v6, %v8459_v11 }
 0x8e3   :  { %18392 = vmatmul.mubr.f32.vlgmr.msra.gmra.mrb[16].mxu1 %v7547_v37 }
 0x8e4   :  { %18395 = vmatpush3.msra.mxu1 %v7558_v32  ;;  %18407 = vmatmul.mubr.f32.vlgmr.msra.gmra.mrb[16].mxu0 %v8007_v0 }
 0x8e5   :  { %18410 = vmatpush3.xpose.msra.mxu0 %v8018_v2  ;;  %18396 = vmatprep.mubr.msk.f32.mxu1 %vm20063_vm1, %v20062_v46 }
 0x8e6   :  { %18399 = vmatprep.subr.mxu1 %v20062_v46  ;;  %18411 = vmatprep.mubr.msk.f32.mxu0 %vm20063_vm1, %v20062_v46 }
 0x8e7   :  { %18414 = vmatprep.subr.mxu0 %v20062_v46 }
 0x8eb   :  { %18397 = vmatmul.mubr.f32.vlgmr.msra.gmra.mrb[16].mxu1 %v20699_v31 }
 0x8ec   :  { %18400 = vmatpush3.msra.mxu1 %v20676_v8  ;;  %18412 = vmatmul.mubr.f32.vlgmr.msra.gmra.mrb[16].mxu0 %v20717_v47  ;;  %v8461_v8 = vand.u32 4294901760, %v8460_v13 }
 0x8ed   :  { %18415 = vmatpush3.xpose.msra.mxu0 %v8015_v49  ;;  %18401 = vmatprep.mubr.msk.f32.mxu1 %vm20063_vm1, %v20062_v46 }
 0x8ee   :  { %18434 = vmatprep.subr.mxu1 %v20062_v46  ;;  %18416 = vmatprep.mubr.msk.f32.mxu0 %vm20063_vm1, %v20062_v46 }
 0x8ef   :  { %18419 = vmatprep.subr.mxu0 %v20062_v46 }
 0x8f3   :  { %18402 = vmatmul.mubr.f32.vlgmr.msra.gmra.mrb[16].mxu1 %v20699_v31 }
 0x8f4   :  { %18435 = vmatpush3.xpose.msra.mxu1 %v8392_v5  ;;  %18417 = vmatmul.mubr.f32.vlgmr.msra.gmra.mrb[16].mxu0 %v8004_v53 }
 0x8f5   :  { %18420 = vmatpush3.xpose.msra.mxu0 %v20720_v48  ;;  %18436 = vmatprep.mubr.msk.f32.mxu1 %vm20063_vm1, %v20062_v46 }
 0x8f6   :  { %18439 = vmatprep.subr.mxu1 %v20062_v46  ;;  %18421 = vmatprep.mubr.msk.f32.mxu0 %vm20063_vm1, %v20062_v46 }
 0x8f7   :  { %18437 = vmatmul.mubr.f32.vlgmr.msra.gmra.mrb[18].mxu1 %v8461_v8  ;;  %18424 = vmatprep.subr.mxu0 %v20062_v46 }
 0x8f8   :  { %18440 = vmatpush3.xpose.msra.mxu1 %v8472_v15  ;;  %18441 = vmatprep.mubr.msk.f32.mxu1 %vm20063_vm1, %v20062_v46 }
 0x8f9   :  { %18444 = vmatprep.subr.mxu1 %v20062_v46 }
 0x8fc   :  { %18422 = vmatmul.mubr.f32.vlgmr.msra.gmra.mrb[16].mxu0 %v8005_v55 }
 0x8fd   :  { %18425 = vmatpush3.xpose.msra.mxu0 %v8016_v60  ;;  %18426 = vmatprep.mubr.msk.f32.mxu0 %vm20063_vm1, %v20062_v46 }
 0x8fe   :  { %18429 = vmatprep.subr.mxu0 %v20062_v46 }
 0x8ff   :  { %18442 = vmatmul.mubr.f32.vlgmr.msra.gmra.mrb[18].mxu1 %v8457_v4 }
 0x900   :  { %18445 = vmatpush3.xpose.msra.mxu1 %v8469_v10  ;;  %18446 = vmatprep.mubr.msk.f32.mxu1 %vm20063_vm1, %v20062_v46 }
 0x901   :  { %18449 = vmatprep.subr.mxu1 %v20062_v46 }
 0x904   :  { %18427 = vmatmul.mubr.f32.vlgmr.msra.gmra.mrb[16].mxu0 %v20717_v47 }
 0x905   :  { %18430 = vmatpush3.xpose.msra.mxu0 %v20720_v48  ;;  %18431 = vmatprep.mubr.msk.f32.mxu0 %vm20063_vm1, %v20062_v46 }
 0x906   :  { %18464 = vmatprep.subr.mxu0 %v20062_v46 }
 0x907   :  { %18447 = vmatmul.mubr.f32.vlgmr.msra.gmra.mrb[18].mxu1 %v8458_v6 }
 0x908   :  { %18450 = vmatpush3.xpose.msra.mxu1 %v8392_v5  ;;  %18451 = vmatprep.mubr.msk.f32.mxu1 %vm20063_vm1, %v20062_v46 }
 0x909   :  { %18454 = vmatprep.subr.mxu1 %v20062_v46 }
 0x90c   :  { %18432 = vmatmul.mubr.f32.vlgmr.msra.gmra.mrb[16].mxu0 %v20717_v47 }
 0x90d   :  { %18466 = vmatprep.mubr.msk.f32.mxu0 %vm20063_vm1, %v20062_v46 }
 0x90f   :  { %18452 = vmatmul.mubr.f32.vlgmr.msra.gmra.mrb[18].mxu1 %v8459_v11 }
 0x910   :  { %18455 = vmatpush3.xpose.msra.mxu1 %v8470_v12  ;;  %18456 = vmatprep.mubr.msk.f32.mxu1 %vm20063_vm1, %v20062_v46 }
 0x911   :  { %18459 = vmatprep.subr.mxu1 %v20062_v46 }
 0x917   :  { %18457 = vmatmul.mubr.f32.vlgmr.msra.gmra.mrb[18].mxu1 %v8457_v4 }
 0x918   :  { %18460 = vmatpush3.xpose.msra.mxu1 %v8392_v5  ;;  %18461 = vmatprep.mubr.msk.f32.mxu1 %vm20063_vm1, %v20062_v46 }
 0x919   :  { %18494 = vmatprep.subr.mxu1 %v20062_v46 }
 0x91f   :  { %18462 = vmatmul.mubr.f32.vlgmr.msra.gmra.mrb[18].mxu1 %v8457_v4 }
 0x920   :  { %18496 = vmatprep.mubr.msk.f32.mxu1 %vm20063_vm1, %v20062_v46 }
 0x9b3   :  { %v20795_v16 = vpop.f32.mrb[14].mxu0 }
 0x9b4   :  { %v18373_v17 = vpop.f32.mrb[15].mxu0 }
 0x9c6   :  { %v20797_v18 = vpop.f32.mrb[16].mxu1 }
 0x9c7   :  { %v18403_v20 = vpop.f32.mrb[17].mxu1 }
 0x9df   :  { %v8379_v22 = vpop.f32.mrb[16].mxu0 }
 0x9e0   :  { %v18433_v23 = vpop.f32.mrb[17].mxu0  ;;  %v8837_v24 = vsel %vm1500_vm3, %v8379_v22, -inf }
 0x9e1   :  { %8838 = vmax.xlane.f32.xlu1 %v8837_v24 }
 0x9f2   :  { %9307 = vrot.lane.b32.xlu1 %v20226_v51, %s20077_s16  ;;  %v8833_v25 = vpop.f32.mrb[18].mxu1 }
 0x9f3   :  { %v18463_v27 = vpop.f32.mrb[19].mxu1  ;;  %v8840_v28 = vsel %vm1500_vm3, %v8833_v25, -inf }
 0x9f4   :  { %8841 = vmax.xlane.f32.xlu0 %v8840_v28 }
 0x9f6   :  { %9763 = vrot.lane.b32.xlu1 %v20223_v50, %s20078_s17 }
 0x9fa   :  { %9765 = vrot.lane.b32.xlu1 %v20223_v50, %s20079_s18 }
 0xa0a   :  { %8855 = vrot.lane.b32.xlu0 %v20223_v50, %s20077_s16 }
 0xa0e   :  { %10217 = vrot.lane.b32.xlu0 %v20226_v51, %s20078_s17 }
 0xa12   :  { %10219 = vrot.lane.b32.xlu0 %v20226_v51, %s20079_s18 }
 0xa6e   :  { %v8839_v30 = vpop.xlane.xlu1 %8838 }
 0xa6f   :  { %v8843_v31 = vsub.f32 %v8379_v22, %v8839_v30 }
 0xa71   :  { %v8845_v32 = vmul.f32 1.442695, %v8843_v31 }
 0xa72   :  { %v9308_v34 = vpop.permute.xlu1 %9307 }
 0xa73   :  { %19980 = vpow2.f32 %v8845_v32  ;;  %v20807_v37 = vand.u32 4294901760, %v9308_v34 }
 0xa75   :  { %18495 = vmatpush3.msra.mxu1 %v20807_v37  ;;  %v20822_v62 = vsub.f32 %v9308_v34, %v20807_v37 }
 0xa76   :  { %18499 = vmatprep.subr.mxu1 %v20062_v46  ;;  %v9764_v6 = vpop.permute.xlu1 %9763 }
 0xa77   :  { %v9392_v2 = vand.u32 4294901760, %v20822_v62  ;;  %v9767_v14 = vsel %vm596_vm2, %v9764_v6, 0 }
 0xa78   :  { %v20848_v15 = vand.u32 4294901760, %v9767_v14 }
 0xa79   :  { %v9393_v5 = vsub.f32 %v20822_v62, %v9392_v2 }
 0xa7a   :  { %v9766_v13 = vpop.permute.xlu1 %9765  ;;  %v9838_v20 = vsub.f32 %v9767_v14, %v20848_v15 }
 0xa7b   :  { %v9394_v12 = vand.u32 4294901760, %v9393_v5  ;;  %v9769_v8 = vsel %vm596_vm2, %v9766_v13, 0 }
 0xa7c   :  { %v20851_v17 = vand.u32 4294901760, %v9769_v8  ;;  %v9839_v23 = vand.u32 4294901760, %v9838_v20 }
 0xa7d   :  { %v20811_v38 = vpop.eup %19980 }
 0xa7e   :  { %v8859_v39 = vsel %vm1500_vm3, %v20811_v38, 0  ;;  %v9849_v22 = vsub.f32 %v9769_v8, %v20851_v17  ;;  %v9840_v27 = vsub.f32 %v9838_v20, %v9839_v23 }
 0xa7f   :  { %v20815_v40 = vand.u32 4294901760, %v8859_v39 }
 0xa80   :  { %v9841_v31 = vand.u32 4294901760, %v9840_v27 }
 0xa81   :  { %v8842_v41 = vpop.xlane.xlu0 %8841  ;;  %v8928_v42 = vsub.f32 %v8859_v39, %v20815_v40 }
 0xa82   :  { %v8844_v43 = vsub.f32 %v8833_v25, %v8842_v41  ;;  %v9850_v25 = vand.u32 4294901760, %v9849_v22 }
 0xa83   :  { %v8929_v44 = vand.u32 4294901760, %v8928_v42 }
 0xa84   :  { %v8847_v45 = vmul.f32 1.442695, %v8844_v43  ;;  %v9851_v28 = vsub.f32 %v9849_v22, %v9850_v25 }
 0xa85   :  { %v8856_v47 = vpop.permute.xlu0 %8855  ;;  %v8930_v48 = vsub.f32 %v8928_v42, %v8929_v44 }
 0xa86   :  { %19982 = vpow2.f32 %v8847_v45  ;;  %v8862_v53 = vand.u32 4294901760, %v8856_v47  ;;  %v9852_v34 = vand.u32 4294901760, %v9851_v28 }
 0xa87   :  { %v8931_v49 = vand.u32 4294901760, %v8930_v48 }
 0xa88   :  { %v8939_v55 = vsub.f32 %v8856_v47, %v8862_v53  ;;  %18465 = vmatpush3.msra.mxu0 %v8862_v53 }
 0xa89   :  { %18467 = vmatmul.mubr.f32.vlgmr.msra.gmra.mrb[18].mxu0 %v8931_v49  ;;  %18469 = vmatprep.subr.mxu0 %v20062_v46  ;;  %v10218_v24 = vpop.permute.xlu0 %10217 }
 0xa8a   :  { %v8940_v58 = vand.u32 4294901760, %v8939_v55  ;;  %18471 = vmatprep.mubr.msk.f32.mxu0 %vm20063_vm1, %v20062_v46  ;;  %v10221_v32 = vsel %vm596_vm2, %v10218_v24, 0 }
 0xa8b   :  { %v10291_v41 = vand.u32 4294901760, %v10221_v32 }
 0xa8c   :  { %v8941_v60 = vsub.f32 %v8939_v55, %v8940_v58 }
 0xa8d   :  { %v10220_v30 = vpop.permute.xlu0 %10219 }
 0xa8e   :  { %v8942_v61 = vand.u32 4294901760, %v8941_v60  ;;  %v10223_v39 = vsel %vm596_vm2, %v10220_v30, 0 }
 0xa90   :  { %v20824_v63 = vpop.eup %19982  ;;  %18470 = vmatpush3.msra.mxu0 %v8942_v61 }
 0xa91   :  { %v9311_v0 = vsel %vm1500_vm3, %v20824_v63, 0  ;;  %18472 = vmatmul.mubr.f32.vlgmr.msra.gmra.mrb[18].mxu0 %v20815_v40  ;;  %18474 = vmatprep.subr.mxu0 %v20062_v46 }
 0xa92   :  { %v20830_v1 = vand.u32 4294901760, %v9311_v0  ;;  %18475 = vmatpush3.msra.mxu0 %v8939_v55  ;;  %18476 = vmatprep.mubr.msk.f32.mxu0 %vm20063_vm1, %v20062_v46 }
 0xa93   :  { %18479 = vmatprep.subr.mxu0 %v20062_v46 }
 0xa94   :  { %v9380_v3 = vsub.f32 %v9311_v0, %v20830_v1 }
 0xa96   :  { %v9381_v4 = vand.u32 4294901760, %v9380_v3 }
 0xa98   :  { %v9382_v10 = vsub.f32 %v9380_v3, %v9381_v4 }
 0xa99   :  { %18477 = vmatmul.mubr.f32.vlgmr.msra.gmra.mrb[18].mxu0 %v8928_v42  ;;  %v10292_v42 = vsub.f32 %v10221_v32, %v10291_v41 }
 0xa9a   :  { %18480 = vmatpush3.msra.mxu0 %v8862_v53  ;;  %v9383_v11 = vand.u32 4294901760, %v9382_v10  ;;  %18481 = vmatprep.mubr.msk.f32.mxu0 %vm20063_vm1, %v20062_v46 }
 0xa9b   :  { %18484 = vmatprep.subr.mxu0 %v20062_v46 }
 0xa9c   :  { %18497 = vmatmul.mubr.f32.vlgmr.msra.gmra.mrb[20].mxu1 %v9383_v11 }
 0xa9d   :  { %18500 = vmatpush3.msra.mxu1 %v9394_v12  ;;  %18501 = vmatprep.mubr.msk.f32.mxu1 %vm20063_vm1, %v20062_v46 }
 0xa9e   :  { %18504 = vmatprep.subr.mxu1 %v20062_v46 }
 0xaa1   :  { %18482 = vmatmul.mubr.f32.vlgmr.msra.gmra.mrb[18].mxu0 %v8929_v44  ;;  %v10293_v44 = vand.u32 4294901760, %v10292_v42 }
 0xaa2   :  { %18485 = vmatpush3.msra.mxu0 %v8940_v58  ;;  %18486 = vmatprep.mubr.msk.f32.mxu0 %vm20063_vm1, %v20062_v46 }
 0xaa3   :  { %18489 = vmatprep.subr.mxu0 %v20062_v46  ;;  %v10294_v47 = vsub.f32 %v10292_v42, %v10293_v44 }
 0xaa4   :  { %18502 = vmatmul.mubr.f32.vlgmr.msra.gmra.mrb[20].mxu1 %v20830_v1 }
 0xaa5   :  { %18505 = vmatpush3.msra.mxu1 %v20822_v62  ;;  %18506 = vmatprep.mubr.msk.f32.mxu1 %vm20063_vm1, %v20062_v46 }
 0xaa6   :  { %18509 = vmatprep.subr.mxu1 %v20062_v46 }
 0xaa9   :  { %18487 = vmatmul.mubr.f32.vlgmr.msra.gmra.mrb[18].mxu0 %v20815_v40 }
 0xaaa   :  { %18490 = vmatpush3.msra.mxu0 %v8862_v53  ;;  %18491 = vmatprep.mubr.msk.f32.mxu0 %vm20063_vm1, %v20062_v46 }
 0xaab   :  { %18524 = vmatprep.subr.mxu0 %v20062_v46 }
 0xaac   :  { %18507 = vmatmul.mubr.f32.vlgmr.msra.gmra.mrb[20].mxu1 %v9380_v3 }
 0xaad   :  { %18510 = vmatpush3.msra.mxu1 %v20807_v37  ;;  %18511 = vmatprep.mubr.msk.f32.mxu1 %vm20063_vm1, %v20062_v46 }
 0xaae   :  { %18514 = vmatprep.subr.mxu1 %v20062_v46 }
 0xab1   :  { %18492 = vmatmul.mubr.f32.vlgmr.msra.gmra.mrb[18].mxu0 %v20815_v40  ;;  %v10226_v40 = vand.u32 4294901760, %v10223_v39 }
 0xab2   :  { %18525 = vmatpush3.xpose.msra.mxu0 %v20851_v17  ;;  %18526 = vmatprep.mubr.msk.f32.mxu0 %vm20063_vm1, %v20062_v46 }
 0xab3   :  { %18529 = vmatprep.subr.mxu0 %v20062_v46  ;;  %v10303_v43 = vsub.f32 %v10223_v39, %v10226_v40 }
 0xab4   :  { %18512 = vmatmul.mubr.f32.vlgmr.msra.gmra.mrb[20].mxu1 %v9381_v4 }
 0xab5   :  { %18515 = vmatpush3.msra.mxu1 %v9392_v2  ;;  %18527 = vmatmul.mubr.f32.vlgmr.msra.gmra.mrb[20].mxu0 %v9841_v31  ;;  %v10304_v45 = vand.u32 4294901760, %v10303_v43 }
 0xab6   :  { %18530 = vmatpush3.xpose.msra.mxu0 %v9852_v34  ;;  %18516 = vmatprep.mubr.msk.f32.mxu1 %vm20063_vm1, %v20062_v46 }
 0xab7   :  { %18519 = vmatprep.subr.mxu1 %v20062_v46  ;;  %18531 = vmatprep.mubr.msk.f32.mxu0 %vm20063_vm1, %v20062_v46  ;;  %v10305_v48 = vsub.f32 %v10303_v43, %v10304_v45 }
 0xab8   :  { %18534 = vmatprep.subr.mxu0 %v20062_v46 }
 0xab9   :  { %v10306_v53 = vand.u32 4294901760, %v10305_v48 }
 0xabc   :  { %18517 = vmatmul.mubr.f32.vlgmr.msra.gmra.mrb[20].mxu1 %v20830_v1 }
 0xabd   :  { %18520 = vmatpush3.msra.mxu1 %v20807_v37  ;;  %18532 = vmatmul.mubr.f32.vlgmr.msra.gmra.mrb[20].mxu0 %v20848_v15  ;;  %v10295_v37 = vand.u32 4294901760, %v10294_v47 }
 0xabe   :  { %18535 = vmatpush3.xpose.msra.mxu0 %v9849_v22  ;;  %18521 = vmatprep.mubr.msk.f32.mxu1 %vm20063_vm1, %v20062_v46 }
 0xabf   :  { %18554 = vmatprep.subr.mxu1 %v20062_v46  ;;  %18536 = vmatprep.mubr.msk.f32.mxu0 %vm20063_vm1, %v20062_v46 }
 0xac0   :  { %18539 = vmatprep.subr.mxu0 %v20062_v46 }
 0xac4   :  { %18522 = vmatmul.mubr.f32.vlgmr.msra.gmra.mrb[20].mxu1 %v20830_v1 }
 0xac5   :  { %18555 = vmatpush3.xpose.msra.mxu1 %v10226_v40  ;;  %18537 = vmatmul.mubr.f32.vlgmr.msra.gmra.mrb[20].mxu0 %v9838_v20 }
 0xac6   :  { %18540 = vmatpush3.xpose.msra.mxu0 %v20851_v17  ;;  %18556 = vmatprep.mubr.msk.f32.mxu1 %vm20063_vm1, %v20062_v46 }
 0xac7   :  { %18559 = vmatprep.subr.mxu1 %v20062_v46  ;;  %18541 = vmatprep.mubr.msk.f32.mxu0 %vm20063_vm1, %v20062_v46 }
 0xac8   :  { %18557 = vmatmul.mubr.f32.vlgmr.msra.gmra.mrb[22].mxu1 %v10295_v37  ;;  %18544 = vmatprep.subr.mxu0 %v20062_v46 }
 0xac9   :  { %18560 = vmatpush3.xpose.msra.mxu1 %v10306_v53  ;;  %18561 = vmatprep.mubr.msk.f32.mxu1 %vm20063_vm1, %v20062_v46 }
 0xaca   :  { %18564 = vmatprep.subr.mxu1 %v20062_v46 }
 0xacd   :  { %18542 = vmatmul.mubr.f32.vlgmr.msra.gmra.mrb[20].mxu0 %v9839_v23 }
 0xace   :  { %18545 = vmatpush3.xpose.msra.mxu0 %v9850_v25  ;;  %18546 = vmatprep.mubr.msk.f32.mxu0 %vm20063_vm1, %v20062_v46 }
 0xacf   :  { %18549 = vmatprep.subr.mxu0 %v20062_v46 }
 0xad0   :  { %18562 = vmatmul.mubr.f32.vlgmr.msra.gmra.mrb[22].mxu1 %v10291_v41 }
 0xad1   :  { %18565 = vmatpush3.xpose.msra.mxu1 %v10303_v43  ;;  %18566 = vmatprep.mubr.msk.f32.mxu1 %vm20063_vm1, %v20062_v46 }
 0xad2   :  { %18569 = vmatprep.subr.mxu1 %v20062_v46 }
 0xad5   :  { %18547 = vmatmul.mubr.f32.vlgmr.msra.gmra.mrb[20].mxu0 %v20848_v15 }
 0xad6   :  { %18550 = vmatpush3.xpose.msra.mxu0 %v20851_v17  ;;  %18551 = vmatprep.mubr.msk.f32.mxu0 %vm20063_vm1, %v20062_v46 }
 0xad7   :  { %18584 = vmatprep.subr.mxu0 %v20062_v46 }
 0xad8   :  { %18567 = vmatmul.mubr.f32.vlgmr.msra.gmra.mrb[22].mxu1 %v10292_v42 }
 0xad9   :  { %18570 = vmatpush3.xpose.msra.mxu1 %v10226_v40  ;;  %18571 = vmatprep.mubr.msk.f32.mxu1 %vm20063_vm1, %v20062_v46 }
 0xada   :  { %18574 = vmatprep.subr.mxu1 %v20062_v46 }
 0xadd   :  { %18552 = vmatmul.mubr.f32.vlgmr.msra.gmra.mrb[20].mxu0 %v20848_v15 }
 0xade   :  { %18586 = vmatprep.mubr.msk.f32.mxu0 %vm20063_vm1, %v20062_v46 }
 0xae0   :  { %18572 = vmatmul.mubr.f32.vlgmr.msra.gmra.mrb[22].mxu1 %v10293_v44 }
 0xae1   :  { %18575 = vmatpush3.xpose.msra.mxu1 %v10304_v45  ;;  %18576 = vmatprep.mubr.msk.f32.mxu1 %vm20063_vm1, %v20062_v46 }
 0xae2   :  { %18579 = vmatprep.subr.mxu1 %v20062_v46 }
 0xae8   :  { %18577 = vmatmul.mubr.f32.vlgmr.msra.gmra.mrb[22].mxu1 %v10291_v41 }
 0xae9   :  { %18580 = vmatpush3.xpose.msra.mxu1 %v10226_v40  ;;  %18581 = vmatprep.mubr.msk.f32.mxu1 %vm20063_vm1, %v20062_v46 }
 0xaea   :  { %18614 = vmatprep.subr.mxu1 %v20062_v46 }
 0xaf0   :  { %18582 = vmatmul.mubr.f32.vlgmr.msra.gmra.mrb[22].mxu1 %v10291_v41 }
 0xaf1   :  { %18616 = vmatprep.mubr.msk.f32.mxu1 %vm20063_vm1, %v20062_v46 }
 0xb84   :  { %v20926_v49 = vpop.f32.mrb[18].mxu0 }
 0xb85   :  { %v18493_v55 = vpop.f32.mrb[19].mxu0 }
 0xb97   :  { %v20928_v58 = vpop.f32.mrb[20].mxu1 }
 0xb98   :  { %v18523_v60 = vpop.f32.mrb[21].mxu1 }
 0xbb0   :  { %v10213_v61 = vpop.f32.mrb[20].mxu0 }
 0xbb1   :  { %v18553_v62 = vpop.f32.mrb[21].mxu0  ;;  %v10671_v0 = vsel %vm1500_vm3, %v10213_v61, -inf }
 0xbb2   :  { %10672 = vmax.xlane.f32.xlu1 %v10671_v0 }
 0xbc3   :  { %11141 = vrot.lane.b32.xlu1 %v20226_v51, %s20080_s19  ;;  %v10667_v1 = vpop.f32.mrb[22].mxu1 }
 0xbc4   :  { %v18583_v2 = vpop.f32.mrb[23].mxu1  ;;  %v10674_v3 = vsel %vm1500_vm3, %v10667_v1, -inf }
 0xbc5   :  { %10675 = vmax.xlane.f32.xlu0 %v10674_v3 }
 0xbc7   :  { %11597 = vrot.lane.b32.xlu1 %v20223_v50, %s20081_s1 }
 0xbcb   :  { %11599 = vrot.lane.b32.xlu1 %v20223_v50, %s20082_s20 }
 0xbdb   :  { %10689 = vrot.lane.b32.xlu0 %v20223_v50, %s20080_s19 }
 0xbdf   :  { %12051 = vrot.lane.b32.xlu0 %v20226_v51, %s20081_s1 }
 0xbe3   :  { %12053 = vrot.lane.b32.xlu0 %v20226_v51, %s20082_s20 }
 0xc3f   :  { %v10673_v4 = vpop.xlane.xlu1 %10672 }
 0xc40   :  { %v10677_v5 = vsub.f32 %v10213_v61, %v10673_v4 }
 0xc42   :  { %v10679_v6 = vmul.f32 1.442695, %v10677_v5 }
 0xc43   :  { %v11142_v10 = vpop.permute.xlu1 %11141 }
 0xc44   :  { %19984 = vpow2.f32 %v10679_v6  ;;  %v20938_v11 = vand.u32 4294901760, %v11142_v10 }
 0xc46   :  { %18615 = vmatpush3.msra.mxu1 %v20938_v11  ;;  %v20953_v34 = vsub.f32 %v11142_v10, %v20938_v11 }
 0xc47   :  { %18619 = vmatprep.subr.mxu1 %v20062_v46  ;;  %v11598_v47 = vpop.permute.xlu1 %11597 }
 0xc48   :  { %v11226_v42 = vand.u32 4294901760, %v20953_v34  ;;  %v11601_v60 = vsel %vm596_vm2, %v11598_v47, 0 }
 0xc49   :  { %v20979_v62 = vand.u32 4294901760, %v11601_v60 }
 0xc4a   :  { %v11227_v45 = vsub.f32 %v20953_v34, %v11226_v42 }
 0xc4b   :  { %v11600_v55 = vpop.permute.xlu1 %11599 }
 0xc4c   :  { %v11228_v53 = vand.u32 4294901760, %v11227_v45  ;;  %v11603_v61 = vsel %vm596_vm2, %v11600_v55, 0 }
 0xc4d   :  { %v20982_v0 = vand.u32 4294901760, %v11603_v61 }
 0xc4e   :  { %v20942_v12 = vpop.eup %19984 }
 0xc4f   :  { %v10693_v13 = vsel %vm1500_vm3, %v20942_v12, 0  ;;  %v11683_v2 = vsub.f32 %v11603_v61, %v20982_v0 }
 0xc50   :  { %v20946_v14 = vand.u32 4294901760, %v10693_v13 }
 0xc51   :  { %v11684_v5 = vand.u32 4294901760, %v11683_v2 }
 0xc52   :  { %v10676_v8 = vpop.xlane.xlu0 %10675  ;;  %v10762_v15 = vsub.f32 %v10693_v13, %v20946_v14 }
 0xc53   :  { %v10678_v17 = vsub.f32 %v10667_v1, %v10676_v8  ;;  %v11672_v1 = vsub.f32 %v11601_v60, %v20979_v62  ;;  %v11685_v10 = vsub.f32 %v11683_v2, %v11684_v5 }
 0xc54   :  { %v10763_v20 = vand.u32 4294901760, %v10762_v15 }
 0xc55   :  { %v10681_v22 = vmul.f32 1.442695, %v10678_v17  ;;  %v11673_v3 = vand.u32 4294901760, %v11672_v1  ;;  %v11686_v17 = vand.u32 4294901760, %v11685_v10 }
 0xc56   :  { %v10690_v23 = vpop.permute.xlu0 %10689  ;;  %v10764_v24 = vsub.f32 %v10762_v15, %v10763_v20 }
 0xc57   :  { %19986 = vpow2.f32 %v10681_v22  ;;  %v10696_v25 = vand.u32 4294901760, %v10690_v23  ;;  %v11674_v6 = vsub.f32 %v11672_v1, %v11673_v3 }
 0xc58   :  { %v10765_v27 = vand.u32 4294901760, %v10764_v24 }
 0xc59   :  { %v10773_v28 = vsub.f32 %v10690_v23, %v10696_v25  ;;  %18585 = vmatpush3.msra.mxu0 %v10696_v25  ;;  %v11675_v8 = vand.u32 4294901760, %v11674_v6 }
 0xc5a   :  { %18587 = vmatmul.mubr.f32.vlgmr.msra.gmra.mrb[22].mxu0 %v10765_v27  ;;  %18589 = vmatprep.subr.mxu0 %v20062_v46  ;;  %v12052_v4 = vpop.permute.xlu0 %12051 }
 0xc5b   :  { %v10774_v30 = vand.u32 4294901760, %v10773_v28  ;;  %18591 = vmatprep.mubr.msk.f32.mxu0 %vm20063_vm1, %v20062_v46 }
 0xc5d   :  { %v10775_v31 = vsub.f32 %v10773_v28, %v10774_v30 }
 0xc5e   :  { %v12054_v13 = vpop.permute.xlu0 %12053 }
 0xc5f   :  { %v10776_v32 = vand.u32 4294901760, %v10775_v31 }
 0xc61   :  { %v20955_v39 = vpop.eup %19986  ;;  %18590 = vmatpush3.msra.mxu0 %v10776_v32 }
 0xc62   :  { %v11145_v41 = vsel %vm1500_vm3, %v20955_v39, 0  ;;  %18592 = vmatmul.mubr.f32.vlgmr.msra.gmra.mrb[22].mxu0 %v20946_v14  ;;  %18594 = vmatprep.subr.mxu0 %v20062_v46 }
 0xc63   :  { %v20961_v40 = vand.u32 4294901760, %v11145_v41  ;;  %18595 = vmatpush3.msra.mxu0 %v10773_v28  ;;  %18596 = vmatprep.mubr.msk.f32.mxu0 %vm20063_vm1, %v20062_v46 }
 0xc64   :  { %18599 = vmatprep.subr.mxu0 %v20062_v46 }
 0xc65   :  { %v11214_v43 = vsub.f32 %v11145_v41, %v20961_v40 }
 0xc67   :  { %v11215_v44 = vand.u32 4294901760, %v11214_v43 }
 0xc69   :  { %v11216_v48 = vsub.f32 %v11214_v43, %v11215_v44 }
 0xc6a   :  { %18597 = vmatmul.mubr.f32.vlgmr.msra.gmra.mrb[22].mxu0 %v10762_v15  ;;  %v12055_v15 = vsel %vm596_vm2, %v12052_v4, 0 }
 0xc6b   :  { %18600 = vmatpush3.msra.mxu0 %v10696_v25  ;;  %v11217_v37 = vand.u32 4294901760, %v11216_v48  ;;  %18601 = vmatprep.mubr.msk.f32.mxu0 %vm20063_vm1, %v20062_v46  ;;  %v12125_v22 = vand.u32 4294901760, %v12055_v15 }
 0xc6c   :  { %18604 = vmatprep.subr.mxu0 %v20062_v46 }
 0xc6d   :  { %18617 = vmatmul.mubr.f32.vlgmr.msra.gmra.mrb[24].mxu1 %v11217_v37  ;;  %v12126_v23 = vsub.f32 %v12055_v15, %v12125_v22 }
 0xc6e   :  { %18620 = vmatpush3.msra.mxu1 %v11228_v53  ;;  %18621 = vmatprep.mubr.msk.f32.mxu1 %vm20063_vm1, %v20062_v46 }
 0xc6f   :  { %18624 = vmatprep.subr.mxu1 %v20062_v46 }
 0xc72   :  { %18602 = vmatmul.mubr.f32.vlgmr.msra.gmra.mrb[22].mxu0 %v10763_v20  ;;  %v12057_v20 = vsel %vm596_vm2, %v12054_v13, 0 }
 0xc73   :  { %18605 = vmatpush3.msra.mxu0 %v10774_v30  ;;  %18606 = vmatprep.mubr.msk.f32.mxu0 %vm20063_vm1, %v20062_v46 }
 0xc74   :  { %18609 = vmatprep.subr.mxu0 %v20062_v46 }
 0xc75   :  { %18622 = vmatmul.mubr.f32.vlgmr.msra.gmra.mrb[24].mxu1 %v20961_v40 }
 0xc76   :  { %18625 = vmatpush3.msra.mxu1 %v20953_v34  ;;  %18626 = vmatprep.mubr.msk.f32.mxu1 %vm20063_vm1, %v20062_v46 }
 0xc77   :  { %18629 = vmatprep.subr.mxu1 %v20062_v46 }
 0xc7a   :  { %18607 = vmatmul.mubr.f32.vlgmr.msra.gmra.mrb[22].mxu0 %v20946_v14 }
 0xc7b   :  { %18610 = vmatpush3.msra.mxu0 %v10696_v25  ;;  %18611 = vmatprep.mubr.msk.f32.mxu0 %vm20063_vm1, %v20062_v46  ;;  %v12127_v25 = vand.u32 4294901760, %v12126_v23 }
 0xc7c   :  { %18644 = vmatprep.subr.mxu0 %v20062_v46 }
 0xc7d   :  { %18627 = vmatmul.mubr.f32.vlgmr.msra.gmra.mrb[24].mxu1 %v11214_v43  ;;  %v12128_v28 = vsub.f32 %v12126_v23, %v12127_v25 }
 0xc7e   :  { %18630 = vmatpush3.msra.mxu1 %v20938_v11  ;;  %18631 = vmatprep.mubr.msk.f32.mxu1 %vm20063_vm1, %v20062_v46 }
 0xc7f   :  { %18634 = vmatprep.subr.mxu1 %v20062_v46 }
 0xc82   :  { %18612 = vmatmul.mubr.f32.vlgmr.msra.gmra.mrb[22].mxu0 %v20946_v14  ;;  %v12060_v14 = vand.u32 4294901760, %v12057_v20 }
 0xc83   :  { %18645 = vmatpush3.xpose.msra.mxu0 %v20982_v0  ;;  %18646 = vmatprep.mubr.msk.f32.mxu0 %vm20063_vm1, %v20062_v46 }
 0xc84   :  { %18649 = vmatprep.subr.mxu0 %v20062_v46  ;;  %v12137_v24 = vsub.f32 %v12057_v20, %v12060_v14 }
 0xc85   :  { %18632 = vmatmul.mubr.f32.vlgmr.msra.gmra.mrb[24].mxu1 %v11215_v44 }
 0xc86   :  { %18635 = vmatpush3.msra.mxu1 %v11226_v42  ;;  %18647 = vmatmul.mubr.f32.vlgmr.msra.gmra.mrb[24].mxu0 %v11675_v8  ;;  %v12138_v27 = vand.u32 4294901760, %v12137_v24 }
 0xc87   :  { %18650 = vmatpush3.xpose.msra.mxu0 %v11686_v17  ;;  %18636 = vmatprep.mubr.msk.f32.mxu1 %vm20063_vm1, %v20062_v46 }
 0xc88   :  { %18639 = vmatprep.subr.mxu1 %v20062_v46  ;;  %18651 = vmatprep.mubr.msk.f32.mxu0 %vm20063_vm1, %v20062_v46  ;;  %v12139_v30 = vsub.f32 %v12137_v24, %v12138_v27 }
 0xc89   :  { %18654 = vmatprep.subr.mxu0 %v20062_v46 }
 0xc8a   :  { %v12140_v31 = vand.u32 4294901760, %v12139_v30 }
 0xc8d   :  { %18637 = vmatmul.mubr.f32.vlgmr.msra.gmra.mrb[24].mxu1 %v20961_v40 }
 0xc8e   :  { %18640 = vmatpush3.msra.mxu1 %v20938_v11  ;;  %18652 = vmatmul.mubr.f32.vlgmr.msra.gmra.mrb[24].mxu0 %v20979_v62  ;;  %v12129_v11 = vand.u32 4294901760, %v12128_v28 }
 0xc8f   :  { %18655 = vmatpush3.xpose.msra.mxu0 %v11683_v2  ;;  %18641 = vmatprep.mubr.msk.f32.mxu1 %vm20063_vm1, %v20062_v46 }
 0xc90   :  { %18674 = vmatprep.subr.mxu1 %v20062_v46  ;;  %18656 = vmatprep.mubr.msk.f32.mxu0 %vm20063_vm1, %v20062_v46 }
 0xc91   :  { %18659 = vmatprep.subr.mxu0 %v20062_v46 }
 0xc95   :  { %18642 = vmatmul.mubr.f32.vlgmr.msra.gmra.mrb[24].mxu1 %v20961_v40 }
 0xc96   :  { %18675 = vmatpush3.xpose.msra.mxu1 %v12060_v14  ;;  %18657 = vmatmul.mubr.f32.vlgmr.msra.gmra.mrb[24].mxu0 %v11672_v1 }
 0xc97   :  { %18660 = vmatpush3.xpose.msra.mxu0 %v20982_v0  ;;  %18676 = vmatprep.mubr.msk.f32.mxu1 %vm20063_vm1, %v20062_v46 }
 0xc98   :  { %18679 = vmatprep.subr.mxu1 %v20062_v46  ;;  %18661 = vmatprep.mubr.msk.f32.mxu0 %vm20063_vm1, %v20062_v46 }
 0xc99   :  { %18677 = vmatmul.mubr.f32.vlgmr.msra.gmra.mrb[26].mxu1 %v12129_v11  ;;  %18664 = vmatprep.subr.mxu0 %v20062_v46 }
 0xc9a   :  { %18680 = vmatpush3.xpose.msra.mxu1 %v12140_v31  ;;  %18681 = vmatprep.mubr.msk.f32.mxu1 %vm20063_vm1, %v20062_v46 }
 0xc9b   :  { %18684 = vmatprep.subr.mxu1 %v20062_v46 }
 0xc9e   :  { %18662 = vmatmul.mubr.f32.vlgmr.msra.gmra.mrb[24].mxu0 %v11673_v3 }
 0xc9f   :  { %18665 = vmatpush3.xpose.msra.mxu0 %v11684_v5  ;;  %18666 = vmatprep.mubr.msk.f32.mxu0 %vm20063_vm1, %v20062_v46 }
 0xca0   :  { %18669 = vmatprep.subr.mxu0 %v20062_v46 }
 0xca1   :  { %18682 = vmatmul.mubr.f32.vlgmr.msra.gmra.mrb[26].mxu1 %v12125_v22 }
 0xca2   :  { %18685 = vmatpush3.xpose.msra.mxu1 %v12137_v24  ;;  %18686 = vmatprep.mubr.msk.f32.mxu1 %vm20063_vm1, %v20062_v46 }
 0xca3   :  { %18689 = vmatprep.subr.mxu1 %v20062_v46 }
 0xca6   :  { %18667 = vmatmul.mubr.f32.vlgmr.msra.gmra.mrb[24].mxu0 %v20979_v62 }
 0xca7   :  { %18670 = vmatpush3.xpose.msra.mxu0 %v20982_v0  ;;  %18671 = vmatprep.mubr.msk.f32.mxu0 %vm20063_vm1, %v20062_v46 }
 0xca8   :  { %18704 = vmatprep.subr.mxu0 %v20062_v46 }
 0xca9   :  { %18687 = vmatmul.mubr.f32.vlgmr.msra.gmra.mrb[26].mxu1 %v12126_v23 }
 0xcaa   :  { %18690 = vmatpush3.xpose.msra.mxu1 %v12060_v14  ;;  %18691 = vmatprep.mubr.msk.f32.mxu1 %vm20063_vm1, %v20062_v46 }
 0xcab   :  { %18694 = vmatprep.subr.mxu1 %v20062_v46 }
 0xcae   :  { %18672 = vmatmul.mubr.f32.vlgmr.msra.gmra.mrb[24].mxu0 %v20979_v62 }
 0xcaf   :  { %18706 = vmatprep.mubr.msk.f32.mxu0 %vm20063_vm1, %v20062_v46 }
 0xcb1   :  { %18692 = vmatmul.mubr.f32.vlgmr.msra.gmra.mrb[26].mxu1 %v12127_v25 }
 0xcb2   :  { %18695 = vmatpush3.xpose.msra.mxu1 %v12138_v27  ;;  %18696 = vmatprep.mubr.msk.f32.mxu1 %vm20063_vm1, %v20062_v46 }
 0xcb3   :  { %18699 = vmatprep.subr.mxu1 %v20062_v46 }
 0xcb9   :  { %18697 = vmatmul.mubr.f32.vlgmr.msra.gmra.mrb[26].mxu1 %v12125_v22 }
 0xcba   :  { %18700 = vmatpush3.xpose.msra.mxu1 %v12060_v14  ;;  %18701 = vmatprep.mubr.msk.f32.mxu1 %vm20063_vm1, %v20062_v46 }
 0xcbb   :  { %18734 = vmatprep.subr.mxu1 %v20062_v46 }
 0xcc1   :  { %18702 = vmatmul.mubr.f32.vlgmr.msra.gmra.mrb[26].mxu1 %v12125_v22 }
 0xcc2   :  { %18736 = vmatprep.mubr.msk.f32.mxu1 %vm20063_vm1, %v20062_v46 }
 0xd55   :  { %v21057_v32 = vpop.f32.mrb[22].mxu0 }
 0xd56   :  { %v18613_v34 = vpop.f32.mrb[23].mxu0 }
 0xd68   :  { %v21059_v41 = vpop.f32.mrb[24].mxu1 }
 0xd69   :  { %v18643_v40 = vpop.f32.mrb[25].mxu1 }
 0xd81   :  { %v12047_v42 = vpop.f32.mrb[24].mxu0 }
 0xd82   :  { %v18673_v43 = vpop.f32.mrb[25].mxu0  ;;  %v12505_v44 = vsel %vm1500_vm3, %v12047_v42, -inf }
 0xd83   :  { %12506 = vmax.xlane.f32.xlu1 %v12505_v44 }
 0xd94   :  { %12975 = vrot.lane.b32.xlu1 %v20226_v51, %s20083_s21  ;;  %v12501_v45 = vpop.f32.mrb[26].mxu1 }
 0xd95   :  { %v18703_v47 = vpop.f32.mrb[27].mxu1  ;;  %v12508_v48 = vsel %vm1500_vm3, %v12501_v45, -inf }
 0xd96   :  { %12509 = vmax.xlane.f32.xlu0 %v12508_v48 }
 0xd98   :  { %13431 = vrot.lane.b32.xlu1 %v20223_v50, %s20084_s22 }
 0xd9c   :  { %13433 = vrot.lane.b32.xlu1 %v20223_v50, %s20085_s23 }
 0xdac   :  { %12523 = vrot.lane.b32.xlu0 %v20223_v50, %s20083_s21 }
 0xdb0   :  { %13885 = vrot.lane.b32.xlu0 %v20226_v51, %s20084_s22 }
 0xdb4   :  { %13887 = vrot.lane.b32.xlu0 %v20226_v51, %s20085_s23 }
 0xe10   :  { %v12507_v37 = vpop.xlane.xlu1 %12506 }
 0xe11   :  { %v12511_v53 = vsub.f32 %v12047_v42, %v12507_v37 }
 0xe13   :  { %v12513_v55 = vmul.f32 1.442695, %v12511_v53 }
 0xe14   :  { %v12976_v60 = vpop.permute.xlu1 %12975 }
 0xe15   :  { %19988 = vpow2.f32 %v12513_v55  ;;  %v21069_v61 = vand.u32 4294901760, %v12976_v60 }
 0xe17   :  { %18735 = vmatpush3.msra.mxu1 %v21069_v61  ;;  %v21084_v23 = vsub.f32 %v12976_v60, %v21069_v61 }
 0xe18   :  { %18739 = vmatprep.subr.mxu1 %v20062_v46  ;;  %v13432_v34 = vpop.permute.xlu1 %13431 }
 0xe19   :  { %v13060_v28 = vand.u32 4294901760, %v21084_v23 }
 0xe1b   :  { %v13061_v31 = vsub.f32 %v21084_v23, %v13060_v28 }
 0xe1c   :  { %v13434_v44 = vpop.permute.xlu1 %13433 }
 0xe1d   :  { %v13062_v43 = vand.u32 4294901760, %v13061_v31  ;;  %v13437_v47 = vsel %vm596_vm2, %v13434_v44, 0 }
 0xe1e   :  { %v21113_v37 = vand.u32 4294901760, %v13437_v47 }
 0xe1f   :  { %v21073_v62 = vpop.eup %19988 }
 0xe20   :  { %v12527_v0 = vsel %vm1500_vm3, %v21073_v62, 0  ;;  %v13517_v55 = vsub.f32 %v13437_v47, %v21113_v37  ;;  %v3347_v47 = vsel %vm1500_vm3, %v20418_v35, 0.0 }
 0xe21   :  { %v21077_v1 = vand.u32 4294901760, %v12527_v0 }
 0xe23   :  { %v12510_v2 = vpop.xlane.xlu0 %12509  ;;  %v12596_v3 = vsub.f32 %v12527_v0, %v21077_v1 }
 0xe24   :  { %v12512_v4 = vsub.f32 %v12501_v45, %v12510_v2  ;;  %v13435_v45 = vsel %vm596_vm2, %v13432_v34, 0  ;;  %v13518_v2 = vand.u32 4294901760, %v13517_v55 }
 0xe25   :  { %v12597_v5 = vand.u32 4294901760, %v12596_v3  ;;  %v21110_v48 = vand.u32 4294901760, %v13435_v45 }
 0xe26   :  { %v12515_v6 = vmul.f32 1.442695, %v12512_v4  ;;  %v13519_v4 = vsub.f32 %v13517_v55, %v13518_v2 }
 0xe27   :  { %v12524_v10 = vpop.permute.xlu0 %12523  ;;  %v12598_v13 = vsub.f32 %v12596_v3, %v12597_v5  ;;  %v13506_v53 = vsub.f32 %v13435_v45, %v21110_v48 }
 0xe28   :  { %19990 = vpow2.f32 %v12515_v6  ;;  %v12530_v8 = vand.u32 4294901760, %v12524_v10 }
 0xe29   :  { %v12599_v15 = vand.u32 4294901760, %v12598_v13  ;;  %v13507_v60 = vand.u32 4294901760, %v13506_v53  ;;  %v13520_v13 = vand.u32 4294901760, %v13519_v4 }
 0xe2a   :  { %v12607_v17 = vsub.f32 %v12524_v10, %v12530_v8  ;;  %18705 = vmatpush3.msra.mxu0 %v12530_v8 }
 0xe2b   :  { %18707 = vmatmul.mubr.f32.vlgmr.msra.gmra.mrb[26].mxu0 %v12599_v15  ;;  %18709 = vmatprep.subr.mxu0 %v20062_v46  ;;  %v13886_v0 = vpop.permute.xlu0 %13885 }
 0xe2c   :  { %v12608_v20 = vand.u32 4294901760, %v12607_v17  ;;  %18711 = vmatprep.mubr.msk.f32.mxu0 %vm20063_vm1, %v20062_v46  ;;  %v13889_v10 = vsel %vm596_vm2, %v13886_v0, 0 }
 0xe2d   :  { %v13959_v15 = vand.u32 4294901760, %v13889_v10 }
 0xe2e   :  { %v12609_v22 = vsub.f32 %v12607_v17, %v12608_v20 }
 0xe30   :  { %v12610_v14 = vand.u32 4294901760, %v12609_v22 }
 0xe32   :  { %v21086_v24 = vpop.eup %19990  ;;  %18710 = vmatpush3.msra.mxu0 %v12610_v14 }
 0xe33   :  { %v12979_v25 = vsel %vm1500_vm3, %v21086_v24, 0  ;;  %18712 = vmatmul.mubr.f32.vlgmr.msra.gmra.mrb[26].mxu0 %v21077_v1  ;;  %18714 = vmatprep.subr.mxu0 %v20062_v46  ;;  %v12520_v35 = vsel %vm1500_vm3, %v21086_v24, 0.0 }
 0xe34   :  { %v21092_v27 = vand.u32 4294901760, %v12979_v25  ;;  %18715 = vmatpush3.msra.mxu0 %v12607_v17  ;;  %18716 = vmatprep.mubr.msk.f32.mxu0 %vm20063_vm1, %v20062_v46  ;;  %v13960_v17 = vsub.f32 %v13889_v10, %v13959_v15 }
 0xe35   :  { %18719 = vmatprep.subr.mxu0 %v20062_v46 }
 0xe36   :  { %v13048_v30 = vsub.f32 %v12979_v25, %v21092_v27  ;;  %v13961_v22 = vand.u32 4294901760, %v13960_v17 }
 0xe38   :  { %v13049_v11 = vand.u32 4294901760, %v13048_v30 }
 0xe3a   :  { %v13050_v40 = vsub.f32 %v13048_v30, %v13049_v11 }
 0xe3b   :  { %18717 = vmatmul.mubr.f32.vlgmr.msra.gmra.mrb[26].mxu0 %v12596_v3  ;;  %v13508_v3 = vsub.f32 %v13506_v53, %v13507_v60 }
 0xe3c   :  { %18720 = vmatpush3.msra.mxu0 %v12530_v8  ;;  %v13051_v42 = vand.u32 4294901760, %v13050_v40  ;;  %18721 = vmatprep.mubr.msk.f32.mxu0 %vm20063_vm1, %v20062_v46 }
 0xe3d   :  { %18724 = vmatprep.subr.mxu0 %v20062_v46  ;;  %v13509_v6 = vand.u32 4294901760, %v13508_v3 }
 0xe3e   :  { %18737 = vmatmul.mubr.f32.vlgmr.msra.gmra.mrb[28].mxu1 %v13051_v42 }
 0xe3f   :  { %18740 = vmatpush3.msra.mxu1 %v13062_v43  ;;  %18741 = vmatprep.mubr.msk.f32.mxu1 %vm20063_vm1, %v20062_v46 }
 0xe40   :  { %18744 = vmatprep.subr.mxu1 %v20062_v46 }
 0xe43   :  { %18722 = vmatmul.mubr.f32.vlgmr.msra.gmra.mrb[26].mxu0 %v12597_v5  ;;  %v13888_v5 = vpop.permute.xlu0 %13887 }
 0xe44   :  { %18725 = vmatpush3.msra.mxu0 %v12608_v20  ;;  %18726 = vmatprep.mubr.msk.f32.mxu0 %vm20063_vm1, %v20062_v46 }
 0xe45   :  { %18729 = vmatprep.subr.mxu0 %v20062_v46 }
 0xe46   :  { %18742 = vmatmul.mubr.f32.vlgmr.msra.gmra.mrb[28].mxu1 %v21092_v27 }
 0xe47   :  { %18745 = vmatpush3.msra.mxu1 %v21084_v23  ;;  %18746 = vmatprep.mubr.msk.f32.mxu1 %vm20063_vm1, %v20062_v46  ;;  %v13962_v23 = vsub.f32 %v13960_v17, %v13961_v22 }
 0xe48   :  { %18749 = vmatprep.subr.mxu1 %v20062_v46 }
 0xe4b   :  { %18727 = vmatmul.mubr.f32.vlgmr.msra.gmra.mrb[26].mxu0 %v21077_v1 }
 0xe4c   :  { %18730 = vmatpush3.msra.mxu0 %v12530_v8  ;;  %18731 = vmatprep.mubr.msk.f32.mxu0 %vm20063_vm1, %v20062_v46  ;;  %v13891_v8 = vsel %vm596_vm2, %v13888_v5, 0  ;;  %v1513_v5 = vsel %vm1500_vm3, %v20290_v26, 0.0 }
 0xe4d   :  { %18764 = vmatprep.subr.mxu0 %v20062_v46 }
 0xe4e   :  { %18747 = vmatmul.mubr.f32.vlgmr.msra.gmra.mrb[28].mxu1 %v13048_v30 }
 0xe4f   :  { %18750 = vmatpush3.msra.mxu1 %v21069_v61  ;;  %18751 = vmatprep.mubr.msk.f32.mxu1 %vm20063_vm1, %v20062_v46 }
 0xe50   :  { %18754 = vmatprep.subr.mxu1 %v20062_v46 }
 0xe53   :  { %18732 = vmatmul.mubr.f32.vlgmr.msra.gmra.mrb[26].mxu0 %v21077_v1  ;;  %v13894_v1 = vand.u32 4294901760, %v13891_v8 }
 0xe54   :  { %18765 = vmatpush3.xpose.msra.mxu0 %v21113_v37  ;;  %18766 = vmatprep.mubr.msk.f32.mxu0 %vm20063_vm1, %v20062_v46 }
 0xe55   :  { %18769 = vmatprep.subr.mxu0 %v20062_v46  ;;  %v13971_v20 = vsub.f32 %v13891_v8, %v13894_v1 }
 0xe56   :  { %18752 = vmatmul.mubr.f32.vlgmr.msra.gmra.mrb[28].mxu1 %v13049_v11 }
 0xe57   :  { %18755 = vmatpush3.msra.mxu1 %v13060_v28  ;;  %18767 = vmatmul.mubr.f32.vlgmr.msra.gmra.mrb[28].mxu0 %v13509_v6  ;;  %v13972_v14 = vand.u32 4294901760, %v13971_v20 }
 0xe58   :  { %18770 = vmatpush3.xpose.msra.mxu0 %v13520_v13  ;;  %18756 = vmatprep.mubr.msk.f32.mxu1 %vm20063_vm1, %v20062_v46 }
 0xe59   :  { %18759 = vmatprep.subr.mxu1 %v20062_v46  ;;  %18771 = vmatprep.mubr.msk.f32.mxu0 %vm20063_vm1, %v20062_v46  ;;  %v13973_v25 = vsub.f32 %v13971_v20, %v13972_v14 }
 0xe5a   :  { %18774 = vmatprep.subr.mxu0 %v20062_v46 }
 0xe5b   :  { %v13974_v28 = vand.u32 4294901760, %v13973_v25 }
 0xe5e   :  { %18757 = vmatmul.mubr.f32.vlgmr.msra.gmra.mrb[28].mxu1 %v21092_v27 }
 0xe5f   :  { %18760 = vmatpush3.msra.mxu1 %v21069_v61  ;;  %18772 = vmatmul.mubr.f32.vlgmr.msra.gmra.mrb[28].mxu0 %v21110_v48  ;;  %v13963_v61 = vand.u32 4294901760, %v13962_v23 }
 0xe60   :  { %18775 = vmatpush3.xpose.msra.mxu0 %v13517_v55  ;;  %18761 = vmatprep.mubr.msk.f32.mxu1 %vm20063_vm1, %v20062_v46 }
 0xe61   :  { %18794 = vmatprep.subr.mxu1 %v20062_v46  ;;  %18776 = vmatprep.mubr.msk.f32.mxu0 %vm20063_vm1, %v20062_v46 }
 0xe62   :  { %18779 = vmatprep.subr.mxu0 %v20062_v46 }
 0xe66   :  { %18762 = vmatmul.mubr.f32.vlgmr.msra.gmra.mrb[28].mxu1 %v21092_v27 }
 0xe67   :  { %18795 = vmatpush3.xpose.msra.mxu1 %v13894_v1  ;;  %18777 = vmatmul.mubr.f32.vlgmr.msra.gmra.mrb[28].mxu0 %v13506_v53  ;;  %v10686_v53 = vsel %vm1500_vm3, %v20955_v39, 0.0  ;;  %v12517_v39 = vsel %vm1500_vm3, %v21073_v62, 0.0 }
 0xe68   :  { %18780 = vmatpush3.xpose.msra.mxu0 %v21113_v37  ;;  %18796 = vmatprep.mubr.msk.f32.mxu1 %vm20063_vm1, %v20062_v46 }
 0xe69   :  { %18799 = vmatprep.subr.mxu1 %v20062_v46  ;;  %18781 = vmatprep.mubr.msk.f32.mxu0 %vm20063_vm1, %v20062_v46 }
 0xe6a   :  { %18797 = vmatmul.mubr.f32.vlgmr.msra.gmra.mrb[30].mxu1 %v13963_v61  ;;  %18784 = vmatprep.subr.mxu0 %v20062_v46 }
 0xe6b   :  { %18800 = vmatpush3.xpose.msra.mxu1 %v13974_v28  ;;  %18801 = vmatprep.mubr.msk.f32.mxu1 %vm20063_vm1, %v20062_v46 }
 0xe6c   :  { %18804 = vmatprep.subr.mxu1 %v20062_v46 }
 0xe6f   :  { %18782 = vmatmul.mubr.f32.vlgmr.msra.gmra.mrb[28].mxu0 %v13507_v60 }
 0xe70   :  { %18785 = vmatpush3.xpose.msra.mxu0 %v13518_v2  ;;  %18786 = vmatprep.mubr.msk.f32.mxu0 %vm20063_vm1, %v20062_v46 }
 0xe71   :  { %18789 = vmatprep.subr.mxu0 %v20062_v46 }
 0xe72   :  { %18802 = vmatmul.mubr.f32.vlgmr.msra.gmra.mrb[30].mxu1 %v13959_v15 }
 0xe73   :  { %18805 = vmatpush3.xpose.msra.mxu1 %v13971_v20  ;;  %18806 = vmatprep.mubr.msk.f32.mxu1 %vm20063_vm1, %v20062_v46 }
 0xe74   :  { %18809 = vmatprep.subr.mxu1 %v20062_v46 }
 0xe77   :  { %18787 = vmatmul.mubr.f32.vlgmr.msra.gmra.mrb[28].mxu0 %v21110_v48 }
 0xe78   :  { %18790 = vmatpush3.xpose.msra.mxu0 %v21113_v37  ;;  %18791 = vmatprep.mubr.msk.f32.mxu0 %vm20063_vm1, %v20062_v46  ;;  %v7018_v37 = vsel %vm1500_vm3, %v20693_v29, 0.0  ;;  %v7015_v29 = vsel %vm1500_vm3, %v20680_v9, 0.0 }
 0xe79   :  { %18824 = vmatprep.subr.mxu0 %v20062_v46 }
 0xe7a   :  { %18807 = vmatmul.mubr.f32.vlgmr.msra.gmra.mrb[30].mxu1 %v13960_v17 }
 0xe7b   :  { %18810 = vmatpush3.xpose.msra.mxu1 %v13894_v1  ;;  %18811 = vmatprep.mubr.msk.f32.mxu1 %vm20063_vm1, %v20062_v46 }
 0xe7c   :  { %18814 = vmatprep.subr.mxu1 %v20062_v46 }
 0xe7f   :  { %18792 = vmatmul.mubr.f32.vlgmr.msra.gmra.mrb[28].mxu0 %v21110_v48  ;;  %v5184_v48 = vsel %vm1500_vm3, %v20562_v7, 0.0  ;;  %v5181_v7 = vsel %vm1500_vm3, %v20549_v52, 0.0 }
 0xe80   :  { %18826 = vmatprep.mubr.msk.f32.mxu0 %vm20063_vm1, %v20062_v46 }
 0xe82   :  { %18812 = vmatmul.mubr.f32.vlgmr.msra.gmra.mrb[30].mxu1 %v13961_v22 }
 0xe83   :  { %18815 = vmatpush3.xpose.msra.mxu1 %v13972_v14  ;;  %18816 = vmatprep.mubr.msk.f32.mxu1 %vm20063_vm1, %v20062_v46 }
 0xe84   :  { %18819 = vmatprep.subr.mxu1 %v20062_v46 }
 0xe8a   :  { %18817 = vmatmul.mubr.f32.vlgmr.msra.gmra.mrb[30].mxu1 %v13959_v15 }
 0xe8b   :  { %18820 = vmatpush3.xpose.msra.mxu1 %v13894_v1  ;;  %18821 = vmatprep.mubr.msk.f32.mxu1 %vm20063_vm1, %v20062_v46 }
 0xe8c   :  { %18854 = vmatprep.subr.mxu1 %v20062_v46 }
 0xe92   :  { %18822 = vmatmul.mubr.f32.vlgmr.msra.gmra.mrb[30].mxu1 %v13959_v15 }
 0xe93   :  { %18856 = vmatprep.mubr.msk.f32.mxu1 %vm20063_vm1, %v20062_v46 }
 0xf26   :  { %v21188_v27 = vpop.f32.mrb[26].mxu0 }
 0xf27   :  { %v18733_v30 = vpop.f32.mrb[27].mxu0 }
 0xf39   :  { %v21190_v11 = vpop.f32.mrb[28].mxu1 }
 0xf3a   :  { %v18763_v31 = vpop.f32.mrb[29].mxu1 }
 0xf52   :  { %v13881_v34 = vpop.f32.mrb[28].mxu0 }
 0xf53   :  { %v18793_v40 = vpop.f32.mrb[29].mxu0  ;;  %v14339_v42 = vsel %vm1500_vm3, %v13881_v34, -inf }
 0xf54   :  { %14340 = vmax.xlane.f32.xlu1 %v14339_v42 }
 0xf65   :  { %14809 = vrot.lane.b32.xlu1 %v20226_v51, %s20086_s2  ;;  %v14335_v43 = vpop.f32.mrb[30].mxu1  ;;  %v8852_v51 = vsel %vm1500_vm3, %v20824_v63, 0.0  ;;  %v8849_v63 = vsel %vm1500_vm3, %v20811_v38, 0.0 }
 0xf66   :  { %v18823_v44 = vpop.f32.mrb[31].mxu1  ;;  %v14342_v45 = vsel %vm1500_vm3, %v14335_v43, -inf }
 0xf67   :  { %14343 = vmax.xlane.f32.xlu0 %v14342_v45 }
 0xf7d   :  { %14357 = vrot.lane.b32.xlu0 %v20223_v50, %s20086_s2  ;;  %v3350_v50 = vsel %vm1500_vm3, %v20431_v56, 0.0  ;;  %v10683_v56 = vsel %vm1500_vm3, %v20942_v12, 0.0 }
 0xf89   :  { %3348 = vadd.xlane.f32.xlu1 %v3347_v47 }
 0xf8d   :  { %5185 = vadd.xlane.f32.xlu1 %v5184_v48 }
 0xf91   :  { %7019 = vadd.xlane.f32.xlu1 %v7018_v37 }
 0xf95   :  { %8853 = vadd.xlane.f32.xlu1 %v8852_v51 }
 0xf99   :  { %10687 = vadd.xlane.f32.xlu1 %v10686_v53 }
 0xf9c   :  { %3351 = vadd.xlane.f32.xlu0 %v3350_v50 }
 0xf9d   :  { %12521 = vadd.xlane.f32.xlu1 %v12520_v35 }
 0xfa0   :  { %5182 = vadd.xlane.f32.xlu0 %v5181_v7 }
 0xfa4   :  { %7016 = vadd.xlane.f32.xlu0 %v7015_v29 }
 0xfa8   :  { %8850 = vadd.xlane.f32.xlu0 %v8849_v63 }
 0xfac   :  { %10684 = vadd.xlane.f32.xlu0 %v10683_v56 }
 0xfb0   :  { %12518 = vadd.xlane.f32.xlu0 %v12517_v39 }
 0xfe1   :  { %v14341_v24 = vpop.xlane.xlu1 %14340 }
 0xfe2   :  { %v14345_v55 = vsub.f32 %v13881_v34, %v14341_v24  ;;  %v1516_v34 = vsel %vm1500_vm3, %v20322_v54, 0.0 }
 0xfe4   :  { %v14347_v52 = vmul.f32 1.442695, %v14345_v55 }
 0xfe5   :  { %v14810_v60 = vpop.permute.xlu1 %14809 }
 0xfe6   :  { %19992 = vpow2.f32 %v14347_v52  ;;  %v21220_v0 = vand.u32 4294901760, %v14810_v60 }
 0xfe8   :  { %18855 = vmatpush3.msra.mxu1 %v21220_v0  ;;  %v14893_v26 = vsub.f32 %v14810_v60, %v21220_v0 }
 0xfe9   :  { %18859 = vmatprep.subr.mxu1 %v20062_v46 }
 0xfea   :  { %v14894_v30 = vand.u32 4294901760, %v14893_v26 }
 0xfec   :  { %v14895_v42 = vsub.f32 %v14893_v26, %v14894_v30 }
 0xfee   :  { %v14896_v45 = vand.u32 4294901760, %v14895_v42 }
 0xff0   :  { %v19993_v9 = vpop.eup %19992 }
 0xff1   :  { %v14361_v38 = vsel %vm1500_vm3, %v19993_v9, 0  ;;  %v14351_v12 = vsel %vm1500_vm3, %v19993_v9, 0.0 }
 0xff2   :  { %v21226_v2 = vand.u32 4294901760, %v14361_v38  ;;  %14352 = vadd.xlane.f32.xlu0 %v14351_v12 }
 0xff4   :  { %v14344_v62 = vpop.xlane.xlu0 %14343  ;;  %v14430_v3 = vsub.f32 %v14361_v38, %v21226_v2 }
 0xff5   :  { %v14346_v4 = vsub.f32 %v14335_v43, %v14344_v62 }
 0xff6   :  { %1514 = vadd.xlane.f32.xlu0 %v1513_v5  ;;  %v14431_v6 = vand.u32 4294901760, %v14430_v3 }
 0xff7   :  { %v14349_v10 = vmul.f32 1.442695, %v14346_v4 }
 0xff8   :  { %v14358_v13 = vpop.permute.xlu0 %14357  ;;  %v14432_v8 = vsub.f32 %v14430_v3, %v14431_v6 }
 0xff9   :  { %19994 = vpow2.f32 %v14349_v10  ;;  %v14364_v15 = vand.u32 4294901760, %v14358_v13 }
 0xffa   :  { %v14433_v1 = vand.u32 4294901760, %v14432_v8 }
 0xffb   :  { %v14441_v17 = vsub.f32 %v14358_v13, %v14364_v15  ;;  %18825 = vmatpush3.msra.mxu0 %v14364_v15 }
 0xffc   :  { %18827 = vmatmul.mubr.f32.vlgmr.msra.gmra.mrb[30].mxu0 %v14433_v1  ;;  %18829 = vmatprep.subr.mxu0 %v20062_v46 }
 0xffd   :  { %v14442_v20 = vand.u32 4294901760, %v14441_v17  ;;  %18831 = vmatprep.mubr.msk.f32.mxu0 %vm20063_vm1, %v20062_v46 }
 0xfff   :  { %v14443_v22 = vsub.f32 %v14441_v17, %v14442_v20 }
0x1001   :  { %v14444_v14 = vand.u32 4294901760, %v14443_v22 }
0x1003   :  { %v19995_v23 = vpop.eup %19994  ;;  %18830 = vmatpush3.msra.mxu0 %v14444_v14 }
0x1004   :  { %v14813_v25 = vsel %vm1500_vm3, %v19995_v23, 0  ;;  %18832 = vmatmul.mubr.f32.vlgmr.msra.gmra.mrb[30].mxu0 %v21226_v2  ;;  %18834 = vmatprep.subr.mxu0 %v20062_v46  ;;  %v14354_v61 = vsel %vm1500_vm3, %v19995_v23, 0.0  ;;  %v15343_v23 = vld [vmem:[%s21791_s3 + $0x18] sm:$0xff] }
0x1005   :  { %v21239_v28 = vand.u32 4294901760, %v14813_v25  ;;  %14355 = vadd.xlane.f32.xlu1 %v14354_v61  ;;  %18835 = vmatpush3.msra.mxu0 %v14441_v17  ;;  %v15367_v61 = vand.u32 4294901760, %v15343_v23 }
0x1006   :  { %18836 = vmatprep.mubr.msk.f32.mxu0 %vm20063_vm1, %v20062_v46  ;;  %18839 = vmatprep.subr.mxu0 %v20062_v46 }
0x1007   :  { %v14882_v31 = vsub.f32 %v14813_v25, %v21239_v28 }
0x1009   :  { %1517 = vadd.xlane.f32.xlu1 %v1516_v34  ;;  %v14883_v40 = vand.u32 4294901760, %v14882_v31 }
0x100b   :  { %v14884_v43 = vsub.f32 %v14882_v31, %v14883_v40 }
0x100c   :  { %18837 = vmatmul.mubr.f32.vlgmr.msra.gmra.mrb[30].mxu0 %v14430_v3 }
0x100d   :  { %18840 = vmatpush3.msra.mxu0 %v14364_v15  ;;  %v14885_v44 = vand.u32 4294901760, %v14884_v43  ;;  %18841 = vmatprep.mubr.msk.f32.mxu0 %vm20063_vm1, %v20062_v46  ;;  %v15469_v43 = vsub.f32 %v15343_v23, %v15367_v61 }
0x100e   :  { %18844 = vmatprep.subr.mxu0 %v20062_v46 }
0x100f   :  { %18857 = vmatmul.mubr.f32.vlgmr.msra.gmra.mrb[32].mxu1 %v14885_v44 }
0x1010   :  { %18860 = vmatpush3.msra.mxu1 %v14896_v45  ;;  %18861 = vmatprep.mubr.msk.f32.mxu1 %vm20063_vm1, %v20062_v46 }
0x1011   :  { %18864 = vmatprep.subr.mxu1 %v20062_v46 }
0x1014   :  { %18842 = vmatmul.mubr.f32.vlgmr.msra.gmra.mrb[30].mxu0 %v14431_v6 }
0x1015   :  { %18845 = vmatpush3.msra.mxu0 %v14442_v20  ;;  %18846 = vmatprep.mubr.msk.f32.mxu0 %vm20063_vm1, %v20062_v46 }
0x1016   :  { %v3349_v54 = vpop.xlane.xlu1 %3348  ;;  %18849 = vmatprep.subr.mxu0 %v20062_v46 }
0x1017   :  { %19996 = vrcp.f32 %v3349_v54  ;;  %18862 = vmatmul.mubr.f32.vlgmr.msra.gmra.mrb[32].mxu1 %v21239_v28 }
0x1018   :  { %18865 = vmatpush3.msra.mxu1 %v14893_v26  ;;  %18866 = vmatprep.mubr.msk.f32.mxu1 %vm20063_vm1, %v20062_v46  ;;  %v15342_v26 = vld [vmem:[%s21791_s3 + $0x10] sm:$0xff] }
0x1019   :  { %18869 = vmatprep.subr.mxu1 %v20062_v46  ;;  %v15364_v25 = vand.u32 4294901760, %v15342_v26 }
0x101a   :  { %v5186_v47 = vpop.xlane.xlu1 %5185 }
0x101b   :  { %19998 = vrcp.f32 %v5186_v47  ;;  %v15462_v42 = vsub.f32 %v15342_v26, %v15364_v25 }
0x101c   :  { %18847 = vmatmul.mubr.f32.vlgmr.msra.gmra.mrb[30].mxu0 %v21226_v2 }
0x101d   :  { %18850 = vmatpush3.msra.mxu0 %v14364_v15  ;;  %18851 = vmatprep.mubr.msk.f32.mxu0 %vm20063_vm1, %v20062_v46  ;;  %v15463_v54 = vand.u32 4294901760, %v15462_v42 }
0x101e   :  { %v7020_v48 = vpop.xlane.xlu1 %7019 }
0x101f   :  { %20000 = vrcp.f32 %v7020_v48  ;;  %18867 = vmatmul.mubr.f32.vlgmr.msra.gmra.mrb[32].mxu1 %v14882_v31  ;;  %v21313_v31 = vpack.c.bf16 %v15367_v61, %v15364_v25 }
0x1020   :  { %18870 = vmatpush3.msra.mxu1 %v21220_v0  ;;  %18871 = vmatprep.mubr.msk.f32.mxu1 %vm20063_vm1, %v20062_v46 }
0x1021   :  { %v19997_v37 = vpop.eup %19996  ;;  %18874 = vmatprep.subr.mxu1 %v20062_v46 }
0x1022   :  { %v8854_v51 = vpop.xlane.xlu1 %8853  ;;  %v4259_v53 = vmul.f32 %v19997_v37, %v20533_v33  ;;  %v15470_v37 = vand.u32 4294901760, %v15469_v43 }
0x1023   :  { %20002 = vrcp.f32 %v8854_v51 }
0x1024   :  { %15267 = vrot.lane.b32.xlu0 %v4259_v53, %s20087_s24  ;;  %18852 = vmatmul.mubr.f32.vlgmr.msra.gmra.mrb[30].mxu0 %v21226_v2 }
0x1025   :  { %v19999_v50 = vpop.eup %19998 }
0x1026   :  { %v10688_v35 = vpop.xlane.xlu1 %10687  ;;  %v6094_v7 = vmul.f32 %v19999_v50, %v20666_v59 }
0x1027   :  { %20004 = vrcp.f32 %v10688_v35  ;;  %18872 = vmatmul.mubr.f32.vlgmr.msra.gmra.mrb[32].mxu1 %v14883_v40  ;;  %v15464_v35 = vsub.f32 %v15462_v42, %v15463_v54 }
0x1028   :  { %18875 = vmatpush3.msra.mxu1 %v14894_v30  ;;  %15277 = vrot.lane.b32.xlu0 %v6094_v7, %s20088_s25  ;;  %v15471_v7 = vsub.f32 %v15469_v43, %v15470_v37 }
0x1029   :  { %v20001_v29 = vpop.eup %20000  ;;  %v3352_v63 = vpop.xlane.xlu0 %3351  ;;  %18876 = vmatprep.mubr.msk.f32.mxu1 %vm20063_vm1, %v20062_v46  ;;  %18879 = vmatprep.subr.mxu1 %v20062_v46 }
0x102a   :  { %20006 = vrcp.f32 %v3352_v63  ;;  %v12522_v33 = vpop.xlane.xlu1 %12521  ;;  %v7928_v56 = vmul.f32 %v20001_v29, %v20797_v18  ;;  %v15465_v29 = vand.u32 4294901760, %v15464_v35  ;;  %v15472_v63 = vand.u32 4294901760, %v15471_v7 }
0x102b   :  { %20008 = vrcp.f32 %v12522_v33 }
0x102c   :  { %15285 = vrot.lane.b32.xlu0 %v7928_v56, %s20089_s26  ;;  %v19286_v33 = vpack.c.bf16 %v15472_v63, %v15465_v29 }
0x102d   :  { %v20003_v59 = vpop.eup %20002  ;;  %v5183_v39 = vpop.xlane.xlu0 %5182 }
0x102e   :  { %20010 = vrcp.f32 %v5183_v39  ;;  %v9762_v24 = vmul.f32 %v20003_v59, %v20928_v58  ;;  %v21323_v59 = vpack.c.bf16 %v15469_v43, %v15462_v42 }
0x102f   :  { %18877 = vmatmul.mubr.f32.vlgmr.msra.gmra.mrb[32].mxu1 %v21239_v28 }
0x1030   :  { %18880 = vmatpush3.msra.mxu1 %v21220_v0  ;;  %15293 = vrot.lane.b32.xlu0 %v9762_v24, %s20090_s27  ;;  %v21327_v24 = vpack.c.bf16 %v15470_v37, %v15463_v54  ;;  %v17251_v54 = vld [vmem:[%s21792_s4] ss:$0 sm:$0xff] }
0x1031   :  { %v20005_v55 = vpop.eup %20004  ;;  %v7017_v52 = vpop.xlane.xlu0 %7016  ;;  %18881 = vmatprep.mubr.msk.f32.mxu1 %vm20063_vm1, %v20062_v46 }
0x1032   :  { %20012 = vrcp.f32 %v7017_v52  ;;  %v11596_v18 = vmul.f32 %v20005_v55, %v21059_v41 }
0x1034   :  { %v20007_v60 = vpop.eup %20006  ;;  %15301 = vrot.lane.b32.xlu0 %v11596_v18, %s20091_s28 }
0x1035   :  { %v20009_v9 = vpop.eup %20008  ;;  %v8851_v58 = vpop.xlane.xlu0 %8850  ;;  %v4260_v38 = vmul.f32 %v20007_v60, %v20535_v36 }
0x1036   :  { %20014 = vrcp.f32 %v8851_v58  ;;  %v13430_v0 = vmul.f32 %v20009_v9, %v21190_v11 }
0x1037   :  { %18882 = vmatmul.mubr.f32.vlgmr.msra.gmra.mrb[32].mxu1 %v21239_v28  ;;  %15269 = vrot.lane.b32.xlu1 %v4260_v38, %s20087_s24 }
0x1038   :  { %v20011_v12 = vpop.eup %20010  ;;  %15309 = vrot.lane.b32.xlu0 %v13430_v0, %s20092_s29 }
0x1039   :  { %v10685_v46 = vpop.xlane.xlu0 %10684  ;;  %v6093_v41 = vmul.f32 %v20011_v12, %v20664_v57 }
0x103a   :  { %20016 = vrcp.f32 %v10685_v46 }
0x103b   :  { %15275 = vrot.lane.b32.xlu1 %v6093_v41, %s20088_s25 }
0x103c   :  { %v20013_v2 = vpop.eup %20012 }
0x103d   :  { %v12519_v62 = vpop.xlane.xlu0 %12518  ;;  %v7927_v36 = vmul.f32 %v20013_v2, %v20795_v16 }
0x103e   :  { %20018 = vrcp.f32 %v12519_v62 }
0x103f   :  { %15283 = vrot.lane.b32.xlu1 %v7927_v36, %s20089_s26 }
0x1040   :  { %v20015_v11 = vpop.eup %20014 }
0x1041   :  { %v9761_v3 = vmul.f32 %v20015_v11, %v20926_v49 }
0x1043   :  { %15291 = vrot.lane.b32.xlu1 %v9761_v3, %s20090_s27  ;;  %s20094_s27 = smov [#allocation2]  }
0x1044   :  { %v20017_v4 = vpop.eup %20016 }
0x1045   :  { %v11595_v5 = vmul.f32 %v20017_v4, %v21057_v32  ;;  %v15340_v32 = vld [vmem:[%s21791_s3] sm:$0xff] }
0x1046   :  { %v15358_v1 = vand.u32 4294901760, %v15340_v32 }
0x1047   :  { %15299 = vrot.lane.b32.xlu1 %v11595_v5, %s20091_s28  ;;  %s17239_s28 = sshll.u32 %s20094_s27, 4  ;;  %s17240_s28 = int_to_ptr.vmem [resolvable:$true] %s17239_s28 }
0x1048   :  { %v20019_v57 = vpop.eup %20018  ;;  %v15448_v22 = vsub.f32 %v15340_v32, %v15358_v1  ;;  %p20043_p1 = scmp.lt.s32.totalorder %s17240_s28, %s17240_s28 }
0x1049   :  { %v13429_v6 = vmul.f32 %v20019_v57, %v21188_v27  ;;  %v15341_v27 = vld [vmem:[%s21791_s3 + $0x8] sm:$0xff] }
0x104a   :  { %v15361_v17 = vand.u32 4294901760, %v15341_v27  ;;  %v15449_v28 = vand.u32 4294901760, %v15448_v22 }
0x104b   :  { %15307 = vrot.lane.b32.xlu1 %v13429_v6, %s20092_s29  ;;  %s20038_s29 = scalar_lea.vmem %s17240_s28, 256 }
0x104c   :  { %v21303_v20 = vpack.c.bf16 %v15361_v17, %v15358_v1  ;;  %v15455_v14 = vsub.f32 %v15341_v27, %v15361_v17  ;;  %v15450_v34 = vsub.f32 %v15448_v22, %v15449_v28  ;;  %p20039_p0 = scmp.ne.s32.totalorder %s17240_s28, %s20038_s29  ;;  %p20044_p2 = scmp.lt.s32.totalorder %s20038_s29, %s20038_s29 }
0x104e   :  { %19275 = vmatprep.subr.bf16.mxu0 %v21303_v20  ;;  %v15456_v30 = vand.u32 4294901760, %v15455_v14  ;;  %v15451_v44 = vand.u32 4294901760, %v15450_v34  ;;  %v21321_v56 = vpack.c.bf16 %v15455_v14, %v15448_v22  ;;  %p20045_p3 = por %p20044_p2, %p20043_p1 }
0x104f   :  { %19277 = vmatpush3.bf16.msra.mxu0 %v21303_v20 }
0x1050   :  { %v15457_v40 = vsub.f32 %v15455_v14, %v15456_v30  ;;  %19279 = vmatprep.subr.bf16.mxu0 %v21313_v31  ;;  %v21325_v39 = vpack.c.bf16 %v15456_v30, %v15449_v28  ;;  %p20046_p4 = pnand %p20045_p3, %p20039_p0 }
0x1052   :  { %v15458_v45 = vand.u32 4294901760, %v15457_v40 }
0x1053   :  { %19281 = vmatpush3.bf16.msra.mxu0 %v21313_v31 }
0x1054   :  { %v21317_v50 = vpack.c.bf16 %v15458_v45, %v15451_v44 }
0x1056   :  { %19283 = vmatprep.subr.bf16.mxu0 %v21317_v50 }
0x107f   :  { %v14353_v10 = vpop.xlane.xlu0 %14352 }
0x1080   :  { %20020 = vrcp.f32 %v14353_v10 }
0x1083   :  { %v1515_v60 = vpop.xlane.xlu0 %1514 }
0x108a   :  { %v20021_v13 = vpop.eup %20020 }
0x1092   :  { %v14356_v49 = vpop.xlane.xlu1 %14355 }
0x1093   :  { %20022 = vrcp.f32 %v14356_v49 }
0x1094   :  { %20024 = vrcp.f32 %v1515_v60  ;;  %v15932_v60 = vld [vmem:[%s21795_s7] sm:$0xff] }
0x1096   :  { %v1518_v55 = vpop.xlane.xlu1 %1517  ;;  %v15268_v38 = vpop.permute.xlu0 %15267 }
0x1097   :  { %20026 = vrcp.f32 %v1518_v55 }
0x109a   :  { %v15278_v46 = vpop.permute.xlu0 %15277 }
0x109d   :  { %v20023_v47 = vpop.eup %20022 }
0x109e   :  { %v20025_v0 = vpop.eup %20024  ;;  %v15286_v11 = vpop.permute.xlu0 %15285 }
0x109f   :  { %v2425_v41 = vmul.f32 %v20025_v0, %v20402_v19 }
0x10a1   :  { %v15321_v2 = vsel %vm596_vm2, %v2425_v41, %v15268_v38  ;;  %v20027_v5 = vpop.eup %20026  ;;  %v15950_v38 = vand.u32 4294901760, %v15932_v60 }
0x10a9   :  { %v15270_v52 = vpop.permute.xlu1 %15269 }
0x10ad   :  { %v15276_v18 = vpop.permute.xlu1 %15275 }
0x10ae   :  { %v15323_v62 = vsel %vm1500_vm3, %v15321_v2, %v15276_v18 }
0x10b1   :  { %v15284_v9 = vpop.permute.xlu1 %15283 }
0x10b2   :  { %v15326_v3 = vsel %vm15325_vm4, %v15323_v62, %v15284_v9  ;;  %v15933_v9 = vld [vmem:[%s21795_s7 + $0x8] sm:$0xff] }
0x10b3   :  { %v15953_v0 = vand.u32 4294901760, %v15933_v9 }
0x10b5   :  { %v15292_v58 = vpop.permute.xlu1 %15291  ;;  %v21397_v2 = vpack.c.bf16 %v15953_v0, %v15950_v38 }
0x10b6   :  { %v15329_v4 = vsel %vm15328_vm5, %v15326_v3, %v15292_v58  ;;  %v15934_v58 = vld [vmem:[%s21795_s7 + $0x10] sm:$0xff] }
0x10b7   :  { %19323 = vmatprep.subr.bf16.mxu1 %v21397_v2 }
0x10b8   :  { %19325 = vmatpush3.bf16.msra.mxu1 %v21397_v2 }
0x10b9   :  { %v15300_v12 = vpop.permute.xlu1 %15299 }
0x10ba   :  { %v15332_v57 = vsel %vm15331_vm6, %v15329_v4, %v15300_v12  ;;  %v15935_v12 = vld [vmem:[%s21795_s7 + $0x18] sm:$0xff] }
0x10bb   :  { %v15959_v41 = vand.u32 4294901760, %v15935_v12 }
0x10bd   :  { %v15308_v36 = vpop.permute.xlu1 %15307 }
0x10be   :  { %v15335_v19 = vsel %vm15334_vm8, %v15332_v57, %v15308_v36  ;;  %v16040_v36 = vsub.f32 %v15932_v60, %v15950_v38 }
0x10c0   :  { %v16041_v3 = vand.u32 4294901760, %v16040_v36 }
0x10f7   :  { %v14805_v16 = vpop.f32.mrb[30].mxu0 }
0x10f8   :  { %v15263_v8 = vmul.f32 %v20021_v13, %v14805_v16  ;;  %v18853_v15 = vpop.f32.mrb[31].mxu0  ;;  %v2426_v13 = vmul.f32 %v20027_v5, %v20404_v21  ;;  %v16042_v5 = vsub.f32 %v16040_v36, %v16041_v3 }
0x10fa   :  { %15315 = vrot.lane.b32.xlu1 %v15263_v8, %s20093_s30  ;;  %v15294_v8 = vpop.permute.xlu0 %15293  ;;  %v15322_v49 = vsel %vm596_vm2, %v2426_v13, %v15270_v52 }
0x10fb   :  { %v15324_v27 = vsel %vm1500_vm3, %v15322_v49, %v15278_v46  ;;  %v15956_v46 = vand.u32 4294901760, %v15934_v58 }
0x10fc   :  { %v15327_v14 = vsel %vm15325_vm4, %v15324_v27, %v15286_v11  ;;  %v16047_v11 = vsub.f32 %v15933_v9, %v15953_v0 }
0x10fd   :  { %v15330_v23 = vsel %vm15328_vm5, %v15327_v14, %v15294_v8  ;;  %v21399_v62 = vpack.c.bf16 %v15959_v41, %v15956_v46 }
0x10fe   :  { %v15302_v17 = vpop.permute.xlu0 %15301  ;;  %v16048_v4 = vand.u32 4294901760, %v16047_v11 }
0x10ff   :  { %v15333_v21 = vsel %vm15331_vm6, %v15330_v23, %v15302_v17  ;;  %19327 = vmatprep.subr.bf16.mxu1 %v21399_v62 }
0x1100   :  { %19329 = vmatpush3.bf16.msra.mxu1 %v21399_v62  ;;  %v16049_v57 = vsub.f32 %v16047_v11, %v16048_v4 }
0x1102   :  { %v15310_v25 = vpop.permute.xlu0 %15309  ;;  %v16050_v13 = vand.u32 4294901760, %v16049_v57 }
0x1103   :  { %v15336_v61 = vsel %vm15334_vm8, %v15333_v21, %v15310_v25  ;;  %v21421_v25 = vld [vmem:[%s21797_s9] sm:$0xff]  ;;  %v21426_v21 = vld [vmem:[%s21797_s9 + $0x8] sm:$0xff] }
0x110a   :  { %v15257_v48 = vpop.f32.mrb[32].mxu1 }
0x110b   :  { %v15264_v51 = vmul.f32 %v20023_v47, %v15257_v48  ;;  %v18883_v53 = vpop.f32.mrb[33].mxu1 }
0x110c   :  { %v20036_v53 = vld [vmem:[%s21788_s0 + $0x8] sm:$0xff] }
0x110d   :  { %15317 = vrot.lane.b32.xlu0 %v15264_v51, %s20093_s30 }
0x116c   :  { %v15316_v6 = vpop.permute.xlu1 %15315 }
0x116d   :  { %v15338_v10 = vsel %vm15337_vm7, %v15335_v19, %v15316_v6  ;;  %v16054_v19 = vsub.f32 %v15934_v58, %v15956_v46  ;;  %v16061_v6 = vsub.f32 %v15935_v12, %v15959_v41  ;;  %v17252_v58 = vld [vmem:[%s21793_s5] ss:$0 sm:$0xff] }
0x116e   :  { %v15352_v16 = vsel %vm58_vm0, %v15338_v10, 0  ;;  %v16043_v10 = vand.u32 4294901760, %v16042_v5  ;;  %v17253_v46 = vld [vmem:[%s21794_s6] ss:$0 sm:$0xff] }
0x116f   :  { %v15426_v15 = vand.u32 4294901760, %v15352_v16  ;;  %v16062_v8 = vand.u32 4294901760, %v16061_v6  ;;  %v21412_v14 = vpack.c.bf16 %v16061_v6, %v16054_v19 }
0x1171   :  { %v15427_v32 = vsub.f32 %v15352_v16, %v15426_v15  ;;  %v16055_v16 = vand.u32 4294901760, %v16054_v19 }
0x1173   :  { %v15428_v1 = vand.u32 4294901760, %v15427_v32  ;;  %v16056_v49 = vsub.f32 %v16054_v19, %v16055_v16  ;;  %v21416_v23 = vpack.c.bf16 %v16062_v8, %v16055_v16 }
0x1175   :  { %v15429_v22 = vsub.f32 %v15427_v32, %v15428_v1  ;;  %v16057_v27 = vand.u32 4294901760, %v16056_v49 }
0x1177   :  { %v15430_v26 = vand.u32 4294901760, %v15429_v22  ;;  %v21410_v22 = vpack.c.bf16 %v16047_v11, %v16040_v36 }
0x1179   :  { %18892 = vmatprep.mubr.f32.mxu0 %v15430_v26  ;;  %v21414_v26 = vpack.c.bf16 %v16048_v4, %v16041_v3 }
0x117f   :  { %v15318_v28 = vpop.permute.xlu0 %15317 }
0x1180   :  { %v15339_v30 = vsel %vm15337_vm7, %v15336_v61, %v15318_v28  ;;  %v21431_v61 = vld [vmem:[%s21797_s9 + $0x10] sm:$0xff]  ;;  %v16503_v28 = vand.u32 4294901760, %v21421_v25 }
0x1181   :  { %v15355_v34 = vsel %vm58_vm0, %v15339_v30, 0  ;;  %v16506_v30 = vand.u32 4294901760, %v21426_v21 }
0x1182   :  { %v15436_v40 = vand.u32 4294901760, %v15355_v34 }
0x1184   :  { %v15437_v42 = vsub.f32 %v15355_v34, %v15436_v40  ;;  %v21438_v34 = vld [vmem:[%s21797_s9 + $0x18] sm:$0xff] }
0x1186   :  { %v15438_v43 = vand.u32 4294901760, %v15437_v42 }
0x1188   :  { %v15439_v44 = vsub.f32 %v15437_v42, %v15438_v43 }
0x118a   :  { %v15440_v45 = vand.u32 4294901760, %v15439_v44  ;;  %v21450_v44 = vld [vmem:[%s21797_s9 + $0x28] sm:$0xff] }
0x118c   :  { %18893 = vmatmul.mubr.f32.vlgmr.msra.gmra.mrb[32].mxu0 %v15440_v45  ;;  %v21456_v45 = vpack.c.bf16 %v16506_v30, %v16503_v28 }
0x118d   :  { %19285 = vmatpush3.bf16.msra.mxu0 %v21317_v50  ;;  %18903 = vmatprep.mubr.f32.mxu0 %v15426_v15 }
0x118e   :  { %19287 = vmatprep.subr.bf16.mxu0 %v19286_v33 }
0x1191   :  { %19289 = vmatpush3.bf16.msra.mxu0 %v19286_v33 }
0x1192   :  { %19291 = vmatprep.subr.bf16.mxu0 %v21321_v56 }
0x1194   :  { %18904 = vmatmul.mubr.f32.vlgmr.msra.gmra.mrb[32].mxu0 %v15436_v40 }
0x1195   :  { %19293 = vmatpush3.bf16.msra.mxu0 %v21321_v56  ;;  %18914 = vmatprep.mubr.f32.mxu0 %v15427_v32  ;;  %v16063_v32 = vsub.f32 %v16061_v6, %v16062_v8 }
0x1196   :  { %19295 = vmatprep.subr.bf16.mxu0 %v21323_v59 }
0x1199   :  { %19297 = vmatpush3.bf16.msra.mxu0 %v21323_v59 }
0x119a   :  { %19299 = vmatprep.subr.bf16.mxu0 %v21303_v20 }
0x119c   :  { %18915 = vmatmul.mubr.f32.vlgmr.msra.gmra.mrb[32].mxu0 %v15437_v42  ;;  %v16512_v42 = vand.u32 4294901760, %v21438_v34 }
0x119d   :  { %19301 = vmatpush3.bf16.msra.mxu0 %v21303_v20  ;;  %18925 = vmatprep.mubr.f32.mxu0 %v15428_v1  ;;  %v16064_v1 = vand.u32 4294901760, %v16063_v32 }
0x119e   :  { %19303 = vmatprep.subr.bf16.mxu0 %v21313_v31 }
0x119f   :  { %v21408_v17 = vpack.c.bf16 %v16064_v1, %v16057_v27  ;;  %v16491_v1 = vld [vmem:[%s21797_s9 + $0x60] sm:$0xff] }
0x11a1   :  { %19305 = vmatpush3.bf16.msra.mxu0 %v21313_v31 }
0x11a2   :  { %19307 = vmatprep.subr.bf16.mxu0 %v21325_v39 }
0x11a4   :  { %18926 = vmatmul.mubr.f32.vlgmr.msra.gmra.mrb[32].mxu0 %v15438_v43  ;;  %v21445_v43 = vld [vmem:[%s21797_s9 + $0x20] sm:$0xff] }
0x11a5   :  { %19309 = vmatpush3.bf16.msra.mxu0 %v21325_v39  ;;  %18936 = vmatprep.mubr.f32.mxu0 %v15426_v15 }
0x11a6   :  { %19311 = vmatprep.subr.bf16.mxu0 %v21327_v24 }
0x11a9   :  { %19313 = vmatpush3.bf16.msra.mxu0 %v21327_v24 }
0x11aa   :  { %19315 = vmatprep.subr.bf16.mxu0 %v21303_v20 }
0x11ac   :  { %18937 = vmatmul.mubr.f32.vlgmr.msra.gmra.mrb[32].mxu0 %v15436_v40 }
0x11ad   :  { %19317 = vmatpush3.bf16.msra.mxu0 %v21303_v20  ;;  %18947 = vmatprep.mubr.f32.mxu0 %v15426_v15  ;;  %v20037_v20 = vld [vmem:[%s21788_s0] sm:$0xff]  ;;  %v21405_v15 = vpack.c.bf16 %v16050_v13, %v16043_v10 }
0x11ae   :  { %19319 = vmatprep.subr.bf16.mxu0 %v21313_v31 }
0x11af   :  { %19331 = vmatprep.subr.bf16.mxu1 %v21405_v15 }
0x11b1   :  { %19321 = vmatpush3.bf16.msra.mxu0 %v21313_v31 }
0x11b2   :  { %19467 = vmatprep.subr.bf16.mxu0 %v21456_v45 }
0x11b4   :  { %18948 = vmatmul.mubr.f32.vlgmr.msra.gmra.mrb[32].mxu0 %v15436_v40  ;;  %v16509_v40 = vand.u32 4294901760, %v21431_v61 }
0x11b5   :  { %19469 = vmatpush3.bf16.msra.mxu0 %v21456_v45 }
0x1287   :  { %v18949_v47 = vpop.f32.mrb[32].mxu0 }
0x1288   :  { %v19564_v48 = vadd.f32 %v18949_v47, %v17251_v54  ;;  %v15875_v37 = vpop.f32.mrb[33].mxu0  ;;  %v16518_v47 = vand.u32 4294901760, %v21450_v44 }
0x1289   :  { %v19565_v51 = vadd.f32 %v17251_v54, %v15875_v37  ;;  %v16515_v54 = vand.u32 4294901760, %v21445_v43  ;;  %v21471_v37 = vld [vmem:[%s21797_s9 + $0x30] sm:$0xff] }
0x128a   :  { %v15886_v50 = vadd.f32 %v20036_v53, %v19564_v48  ;;  %v21464_v48 = vpack.c.bf16 %v16512_v42, %v16509_v40 }
0x128b   :  { %v15885_v35 = vadd.f32 %v20037_v20, %v19565_v51  ;;  %v21476_v51 = vld [vmem:[%s21797_s9 + $0x38] sm:$0xff]  ;;  %v21483_v53 = vpack.c.bf16 %v16518_v47, %v16515_v54 }
0x128c   :  { %v15892_v31 = vsel %vm58_vm0, %v15886_v50, 0.0  ;;  %19471 = vmatprep.subr.bf16.mxu0 %v21464_v48  ;;  %v16524_v20 = vand.u32 4294901760, %v21476_v51 }
0x128d   :  { %15893 = vadd.xlane.f32.xlu0 %v15892_v31  ;;  %v15889_v7 = vsel %vm58_vm0, %v15885_v35, 0.0  ;;  %19473 = vmatpush3.bf16.msra.mxu0 %v21464_v48  ;;  %v21496_v31 = vld [vmem:[%s21797_s9 + $0x48] sm:$0xff] }
0x128e   :  { %15890 = vadd.xlane.f32.xlu1 %v15889_v7  ;;  %19475 = vmatprep.subr.bf16.mxu0 %v21483_v53 }
0x1291   :  { %19477 = vmatpush3.bf16.msra.mxu0 %v21483_v53 }
0x131a   :  { %v15894_v29 = vpop.xlane.xlu0 %15893 }
0x131b   :  { %v15897_v63 = vmul.f32 0.03125, %v15894_v29  ;;  %v15891_v33 = vpop.xlane.xlu1 %15890 }
0x131c   :  { %v15896_v56 = vmul.f32 0.03125, %v15891_v33 }
0x131d   :  { %v21375_v59 = vsub.f32 %v15886_v50, %v15897_v63  ;;  %v16521_v50 = vand.u32 4294901760, %v21471_v37  ;;  %v16530_v63 = vand.u32 4294901760, %v21496_v31 }
0x131e   :  { %v21377_v39 = vsub.f32 %v15885_v35, %v15896_v56  ;;  %v21491_v35 = vld [vmem:[%s21797_s9 + $0x40] sm:$0xff] }
0x131f   :  { %v15901_v24 = vmul.f32 %v21375_v59, %v21375_v59  ;;  %v21503_v7 = vpack.c.bf16 %v16524_v20, %v16521_v50  ;;  %v16527_v29 = vand.u32 4294901760, %v21491_v35 }
0x1320   :  { %v15900_v55 = vmul.f32 %v21377_v39, %v21377_v39 }
0x1321   :  { %v15905_v52 = vsel %vm58_vm0, %v15901_v24, 0.0  ;;  %19479 = vmatprep.subr.bf16.mxu0 %v21503_v7  ;;  %v21513_v33 = vpack.c.bf16 %v16530_v63, %v16527_v29 }
0x1322   :  { %15906 = vadd.xlane.f32.xlu1 %v15905_v52  ;;  %v15902_v18 = vsel %vm58_vm0, %v15900_v55, 0.0  ;;  %19481 = vmatpush3.bf16.msra.mxu0 %v21503_v7 }
0x1323   :  { %15903 = vadd.xlane.f32.xlu0 %v15902_v18  ;;  %19483 = vmatprep.subr.bf16.mxu0 %v21513_v33 }
0x1326   :  { %19485 = vmatpush3.bf16.msra.mxu0 %v21513_v33 }
0x13af   :  { %v15907_v56 = vpop.xlane.xlu1 %15906 }
0x13b0   :  { %v15909_v24 = vmul.f32 0.03125, %v15907_v56  ;;  %v15904_v55 = vpop.xlane.xlu0 %15903  ;;  %v16494_v56 = vld [vmem:[%s21797_s9 + $0x78] sm:$0xff] }
0x13b1   :  { %v15908_v52 = vmul.f32 0.03125, %v15904_v55  ;;  %v16548_v55 = vand.u32 4294901760, %v16494_v56 }
0x13b2   :  { %v15911_v18 = vadd.f32 1e-05, %v15909_v24 }
0x13b3   :  { %v15910_v60 = vadd.f32 1e-05, %v15908_v52 }
0x13b4   :  { %20028 = vrsqrt.f32 %v15911_v18  ;;  %v16605_v18 = vsub.f32 %v21421_v25, %v16503_v28 }
0x13b5   :  { %20030 = vrsqrt.f32 %v15910_v60  ;;  %v16612_v60 = vsub.f32 %v21426_v21, %v16506_v30 }
0x13be   :  { %v20029_v9 = vpop.eup %20028 }
0x13bf   :  { %v20031_v38 = vpop.eup %20030  ;;  %v15915_v0 = vmul.f32 %v20029_v9, %v21375_v59  ;;  %v16606_v9 = vand.u32 4294901760, %v16605_v18 }
0x13c0   :  { %v15914_v12 = vmul.f32 %v20031_v38, %v21377_v39 }
0x13c1   :  { %v15923_v41 = vmul.f32 %v17252_v58, %v15915_v0  ;;  %v16607_v0 = vsub.f32 %v16605_v18, %v16606_v9 }
0x13c2   :  { %v15922_v36 = vmul.f32 %v17252_v58, %v15914_v12  ;;  %v16613_v58 = vand.u32 4294901760, %v16612_v60 }
0x13c3   :  { %v21526_v11 = vadd.f32 %v17253_v46, %v15923_v41  ;;  %v16608_v25 = vand.u32 4294901760, %v16607_v0 }
0x13c4   :  { %v21528_v3 = vadd.f32 %v17253_v46, %v15922_v36  ;;  %v21605_v38 = vpack.c.bf16 %v16613_v58, %v16606_v9  ;;  %v16614_v12 = vsub.f32 %v16612_v60, %v16613_v58 }
0x13c5   :  { %v15947_v4 = vsel %vm58_vm0, %v21526_v11, 0 }
0x13c6   :  { %v15944_v5 = vsel %vm58_vm0, %v21528_v3, 0  ;;  %v16028_v57 = vand.u32 4294901760, %v15947_v4  ;;  %v16615_v28 = vand.u32 4294901760, %v16614_v12 }
0x13c7   :  { %v16018_v59 = vand.u32 4294901760, %v15944_v5 }
0x13c8   :  { %v16029_v19 = vsub.f32 %v15947_v4, %v16028_v57  ;;  %v21608_v46 = vpack.c.bf16 %v16615_v28, %v16608_v25 }
0x13c9   :  { %v16019_v39 = vsub.f32 %v15944_v5, %v16018_v59 }
0x13ca   :  { %v16030_v6 = vand.u32 4294901760, %v16029_v19 }
0x13cb   :  { %v16020_v10 = vand.u32 4294901760, %v16019_v39 }
0x13cc   :  { %v16031_v13 = vsub.f32 %v16029_v19, %v16030_v6 }
0x13cd   :  { %v16021_v16 = vsub.f32 %v16019_v39, %v16020_v10 }
0x13ce   :  { %v16032_v49 = vand.u32 4294901760, %v16031_v13 }
0x13cf   :  { %v16022_v8 = vand.u32 4294901760, %v16021_v16 }
0x13d1   :  { %18958 = vmatprep.mubr.f32.mxu1 %v16022_v8 }
0x13d2   :  { %18959 = vmatmul.mubr.f32.vlgmr.msra.gmra.mrb[34].mxu1 %v16032_v49 }
0x13d3   :  { %19333 = vmatpush3.bf16.msra.mxu1 %v21405_v15  ;;  %18969 = vmatprep.mubr.f32.mxu1 %v16018_v59 }
0x13d4   :  { %19335 = vmatprep.subr.bf16.mxu1 %v21408_v17 }
0x13d7   :  { %19337 = vmatpush3.bf16.msra.mxu1 %v21408_v17  ;;  %v16492_v17 = vld [vmem:[%s21797_s9 + $0x68] sm:$0xff] }
0x13d8   :  { %19339 = vmatprep.subr.bf16.mxu1 %v21410_v22 }
0x13da   :  { %18970 = vmatmul.mubr.f32.vlgmr.msra.gmra.mrb[34].mxu1 %v16028_v57 }
0x13db   :  { %19341 = vmatpush3.bf16.msra.mxu1 %v21410_v22  ;;  %18980 = vmatprep.mubr.f32.mxu1 %v16019_v39  ;;  %v16539_v22 = vand.u32 4294901760, %v16491_v1 }
0x13dc   :  { %19343 = vmatprep.subr.bf16.mxu1 %v21412_v14 }
0x13dd   :  { %v16689_v5 = vsub.f32 %v16491_v1, %v16539_v22 }
0x13df   :  { %19345 = vmatpush3.bf16.msra.mxu1 %v21412_v14  ;;  %v16542_v14 = vand.u32 4294901760, %v16492_v17 }
0x13e0   :  { %19347 = vmatprep.subr.bf16.mxu1 %v21397_v2 }
0x13e2   :  { %18981 = vmatmul.mubr.f32.vlgmr.msra.gmra.mrb[34].mxu1 %v16029_v19 }
0x13e3   :  { %19349 = vmatpush3.bf16.msra.mxu1 %v21397_v2  ;;  %18991 = vmatprep.mubr.f32.mxu1 %v16020_v10 }
0x13e4   :  { %19351 = vmatprep.subr.bf16.mxu1 %v21399_v62 }
0x13e7   :  { %19353 = vmatpush3.bf16.msra.mxu1 %v21399_v62 }
0x13e8   :  { %19355 = vmatprep.subr.bf16.mxu1 %v21414_v26 }
0x13ea   :  { %18992 = vmatmul.mubr.f32.vlgmr.msra.gmra.mrb[34].mxu1 %v16030_v6  ;;  %v16690_v6 = vand.u32 4294901760, %v16689_v5 }
0x13eb   :  { %19357 = vmatpush3.bf16.msra.mxu1 %v21414_v26  ;;  %19002 = vmatprep.mubr.f32.mxu1 %v16018_v59  ;;  %v21581_v26 = vpack.c.bf16 %v16542_v14, %v16539_v22 }
0x13ec   :  { %19359 = vmatprep.subr.bf16.mxu1 %v21416_v23  ;;  %v16691_v8 = vsub.f32 %v16689_v5, %v16690_v6 }
0x13ef   :  { %19361 = vmatpush3.bf16.msra.mxu1 %v21416_v23  ;;  %v16493_v23 = vld [vmem:[%s21797_s9 + $0x70] sm:$0xff] }
0x13f0   :  { %19363 = vmatprep.subr.bf16.mxu1 %v21397_v2  ;;  %v16545_v24 = vand.u32 4294901760, %v16493_v23 }
0x13f2   :  { %19003 = vmatmul.mubr.f32.vlgmr.msra.gmra.mrb[34].mxu1 %v16028_v57  ;;  %v21593_v52 = vpack.c.bf16 %v16548_v55, %v16545_v24  ;;  %v16703_v9 = vsub.f32 %v16493_v23, %v16545_v24 }
0x13f3   :  { %19365 = vmatpush3.bf16.msra.mxu1 %v21397_v2  ;;  %19013 = vmatprep.mubr.f32.mxu1 %v16018_v59  ;;  %v16489_v2 = vld [vmem:[%s21797_s9 + $0x50] sm:$0xff] }
0x13f4   :  { %19367 = vmatprep.subr.bf16.mxu1 %v21399_v62  ;;  %v16533_v15 = vand.u32 4294901760, %v16489_v2 }
0x13f6   :  { %v16675_v21 = vsub.f32 %v16489_v2, %v16533_v15  ;;  %v16710_v2 = vsub.f32 %v16494_v56, %v16548_v55  ;;  %v21634_v55 = vsub.f32 %v21431_v61, %v16509_v40  ;;  %v21649_v61 = vsub.f32 %v21445_v43, %v16515_v54 }
0x13f7   :  { %19369 = vmatpush3.bf16.msra.mxu1 %v21399_v62  ;;  %v16490_v62 = vld [vmem:[%s21797_s9 + $0x58] sm:$0xff]  ;;  %v21667_v54 = vsub.f32 %v21471_v37, %v16521_v50 }
0x13f8   :  { %19371 = vmatprep.subr.bf16.mxu1 %v21456_v45  ;;  %v16536_v32 = vand.u32 4294901760, %v16490_v62  ;;  %v16676_v41 = vand.u32 4294901760, %v16675_v21  ;;  %v16711_v1 = vand.u32 4294901760, %v16710_v2  ;;  %v21629_v56 = vpack.c.bf16 %v16710_v2, %v16703_v9 }
0x13fa   :  { %19014 = vmatmul.mubr.f32.vlgmr.msra.gmra.mrb[34].mxu1 %v16028_v57  ;;  %v21569_v27 = vpack.c.bf16 %v16536_v32, %v16533_v15  ;;  %v16682_v30 = vsub.f32 %v16490_v62, %v16536_v32  ;;  %v16677_v4 = vsub.f32 %v16675_v21, %v16676_v41  ;;  %v16696_v57 = vsub.f32 %v16492_v17, %v16542_v14 }
0x13fb   :  { %19373 = vmatpush3.bf16.msra.mxu1 %v21456_v45  ;;  %v16692_v62 = vand.u32 4294901760, %v16691_v8  ;;  %v16704_v32 = vand.u32 4294901760, %v16703_v9  ;;  %v16712_v0 = vsub.f32 %v16710_v2, %v16711_v1 }
0x13fc   :  { %19375 = vmatprep.subr.bf16.mxu1 %v21464_v48  ;;  %19487 = vmatprep.subr.bf16.mxu0 %v21569_v27  ;;  %v16683_v36 = vand.u32 4294901760, %v16682_v30  ;;  %v16678_v39 = vand.u32 4294901760, %v16677_v4  ;;  %v16697_v10 = vand.u32 4294901760, %v16696_v57  ;;  %v21625_v23 = vpack.c.bf16 %v16682_v30, %v16675_v21 }
0x13fd   :  { %19489 = vmatpush3.bf16.msra.mxu0 %v21569_v27  ;;  %v16705_v22 = vsub.f32 %v16703_v9, %v16704_v32  ;;  %v21619_v14 = vpack.c.bf16 %v16711_v1, %v16704_v32  ;;  %v16713_v25 = vand.u32 4294901760, %v16712_v0  ;;  %v21627_v24 = vpack.c.bf16 %v16696_v57, %v16689_v5 }
0x13fe   :  { %19491 = vmatprep.subr.bf16.mxu0 %v21581_v26  ;;  %v21611_v59 = vpack.c.bf16 %v16683_v36, %v16676_v41  ;;  %v16684_v19 = vsub.f32 %v16682_v30, %v16683_v36  ;;  %v21613_v16 = vpack.c.bf16 %v16697_v10, %v16690_v6  ;;  %v16698_v49 = vsub.f32 %v16696_v57, %v16697_v10 }
0x13ff   :  { %19377 = vmatpush3.bf16.msra.mxu1 %v21464_v48  ;;  %v16706_v12 = vand.u32 4294901760, %v16705_v22  ;;  %v21623_v41 = vpack.c.bf16 %v16612_v60, %v16605_v18  ;;  %v21639_v36 = vsub.f32 %v21438_v34, %v16512_v42  ;;  %v17254_v18 = vld [vmem:[%s21796_s8] ss:$0 sm:$0xff]  ;;  %v16620_v4 = vand.u32 4294901760, %v21634_v55 }
0x1400   :  { %19379 = vmatprep.subr.bf16.mxu1 %v21483_v53  ;;  %v16685_v13 = vand.u32 4294901760, %v16684_v19  ;;  %v16699_v15 = vand.u32 4294901760, %v16698_v49  ;;  %v21654_v34 = vsub.f32 %v21450_v44, %v16518_v47  ;;  %v21675_v47 = vsub.f32 %v21476_v51, %v16524_v20 }
0x1401   :  { %19493 = vmatpush3.bf16.msra.mxu0 %v21581_v26  ;;  %v21621_v28 = vpack.c.bf16 %v16713_v25, %v16706_v12  ;;  %v16627_v5 = vand.u32 4294901760, %v21639_v36  ;;  %v16648_v32 = vand.u32 4294901760, %v21667_v54  ;;  %v21690_v20 = vsub.f32 %v21491_v35, %v16527_v29 }
0x1402   :  { %19495 = vmatprep.subr.bf16.mxu0 %v21593_v52  ;;  %v21615_v58 = vpack.c.bf16 %v16685_v13, %v16678_v39  ;;  %v21617_v17 = vpack.c.bf16 %v16699_v15, %v16692_v62  ;;  %v16621_v39 = vsub.f32 %v21634_v55, %v16620_v4  ;;  %v16634_v13 = vand.u32 4294901760, %v21649_v61 }
0x1403   :  { %19381 = vmatpush3.bf16.msra.mxu1 %v21483_v53  ;;  %v16628_v6 = vsub.f32 %v21639_v36, %v16627_v5  ;;  %v16641_v43 = vand.u32 4294901760, %v21654_v34  ;;  %v19502_v9 = vpack.c.bf16 %v16627_v5, %v16620_v4  ;;  %v16655_v51 = vand.u32 4294901760, %v21675_v47 }
0x1404   :  { %19383 = vmatprep.subr.bf16.mxu1 %v21503_v7  ;;  %v16622_v2 = vand.u32 4294901760, %v16621_v39  ;;  %v16635_v37 = vsub.f32 %v21649_v61, %v16634_v13  ;;  %v21695_v22 = vsub.f32 %v21496_v31, %v16530_v63  ;;  %v16649_v35 = vsub.f32 %v21667_v54, %v16648_v32 }
0x1405   :  { %19497 = vmatpush3.bf16.msra.mxu0 %v21593_v52  ;;  %v16629_v62 = vand.u32 4294901760, %v16628_v6  ;;  %v16642_v50 = vsub.f32 %v21654_v34, %v16641_v43  ;;  %v16662_v31 = vand.u32 4294901760, %v21690_v20  ;;  %v19510_v4 = vpack.c.bf16 %v16655_v51, %v16648_v32 }
0x1406   :  { %19499 = vmatprep.subr.bf16.mxu0 %v21605_v38  ;;  %v16669_v63 = vand.u32 4294901760, %v21695_v22  ;;  %v16650_v5 = vand.u32 4294901760, %v16649_v35 }
0x1407   :  { %19385 = vmatpush3.bf16.msra.mxu1 %v21503_v7  ;;  %v19406_v12 = vpack.c.bf16 %v16629_v62, %v16622_v2 }
0x1408   :  { %19387 = vmatprep.subr.bf16.mxu1 %v21513_v33  ;;  %v19514_v6 = vpack.c.bf16 %v16669_v63, %v16662_v31 }
0x140b   :  { %19389 = vmatpush3.bf16.msra.mxu1 %v21513_v33 }
0x140c   :  { %19391 = vmatprep.subr.bf16.mxu1 %v21569_v27 }
0x140f   :  { %19393 = vmatpush3.bf16.msra.mxu1 %v21569_v27 }
0x1410   :  { %19395 = vmatprep.subr.bf16.mxu1 %v21581_v26 }
0x1413   :  { %19397 = vmatpush3.bf16.msra.mxu1 %v21581_v26 }
0x1414   :  { %19399 = vmatprep.subr.bf16.mxu1 %v21593_v52 }
0x1417   :  { %19401 = vmatpush3.bf16.msra.mxu1 %v21593_v52 }
0x1418   :  { %19403 = vmatprep.subr.bf16.mxu1 %v21608_v46 }
0x14cd   :  { %v19015_v60 = vpop.f32.mrb[34].mxu1 }
0x14ce   :  { %v19566_v21 = vadd.f32 %v19015_v60, %v17254_v18  ;;  %v16467_v30 = vpop.f32.mrb[35].mxu1  ;;  %v16643_v60 = vand.u32 4294901760, %v16642_v50 }
0x14cf   :  { %v19567_v57 = vadd.f32 %v17254_v18, %v16467_v30  ;;  %v16636_v18 = vand.u32 4294901760, %v16635_v37  ;;  %v19506_v30 = vpack.c.bf16 %v16641_v43, %v16634_v13 }
0x14d0   :  { %v16478_v40 = vmax.f32 %v19566_v21, 0.0  ;;  %v16656_v21 = vsub.f32 %v21675_v47, %v16655_v51 }
0x14d1   :  { %v16477_v42 = vmax.f32 %v19567_v57, 0.0 }
0x14d2   :  { %v21656_v19 = vand.u32 4294901760, %v16478_v40  ;;  %v16657_v57 = vand.u32 4294901760, %v16656_v21 }
0x14d3   :  { %v21660_v10 = vand.u32 4294901760, %v16477_v42 }
0x14d4   :  { %v21670_v44 = vsub.f32 %v16478_v40, %v21656_v19  ;;  %v16663_v40 = vsub.f32 %v21690_v20, %v16662_v31  ;;  %v19414_v39 = vpack.c.bf16 %v16657_v57, %v16650_v5 }
0x14d5   :  { %v21678_v8 = vsub.f32 %v16477_v42, %v21660_v10  ;;  %v16670_v42 = vsub.f32 %v21695_v22, %v16669_v63 }
0x14d6   :  { %v16595_v49 = vand.u32 4294901760, %v21670_v44 }
0x14d7   :  { %v16585_v15 = vand.u32 4294901760, %v21678_v8  ;;  %v16671_v13 = vand.u32 4294901760, %v16670_v42 }
0x14d8   :  { %v16596_v1 = vsub.f32 %v21670_v44, %v16595_v49 }
0x14d9   :  { %19153 = vmatprep.mubr.f32.mxu0 %v16585_v15  ;;  %v16586_v0 = vsub.f32 %v21678_v8, %v16585_v15  ;;  %v17256_v15 = vld [vmem:[%s21799_s11] ss:$0 sm:$0xff] }
0x14da   :  { %19154 = vmatmul.mubr.f32.vlgmr.msra.gmra.mrb[34].mxu0 %v16595_v49  ;;  %v16597_v29 = vand.u32 4294901760, %v16596_v1  ;;  %v17257_v1 = vld [vmem:[%s21800_s12] ss:$0 sm:$0xff] }
0x14db   :  { %19501 = vmatpush3.bf16.msra.mxu0 %v21605_v38  ;;  %19188 = vmatprep.mubr.f32.mxu0 %v21660_v10  ;;  %v16587_v25 = vand.u32 4294901760, %v16586_v0  ;;  %v19410_v38 = vpack.c.bf16 %v16643_v60, %v16636_v18 }
0x14dc   :  { %19503 = vmatprep.subr.bf16.mxu0 %v19502_v9 }
0x14dd   :  { %19048 = vmatprep.mubr.f32.mxu1 %v16587_v25 }
0x14de   :  { %19049 = vmatmul.mubr.f32.vlgmr.msra.gmra.mrb[36].mxu1 %v16597_v29 }
0x14df   :  { %19405 = vmatpush3.bf16.msra.mxu1 %v21608_v46  ;;  %19505 = vmatpush3.bf16.msra.mxu0 %v19502_v9  ;;  %v16664_v46 = vand.u32 4294901760, %v16663_v40 }
0x14e0   :  { %19083 = vmatprep.mubr.f32.mxu1 %v21660_v10  ;;  %19407 = vmatprep.subr.bf16.mxu1 %v19406_v12 }
0x14e1   :  { %19507 = vmatprep.subr.bf16.mxu0 %v19506_v30  ;;  %v19418_v43 = vpack.c.bf16 %v16671_v13, %v16664_v46 }
0x14e3   :  { %19409 = vmatpush3.bf16.msra.mxu1 %v19406_v12  ;;  %19509 = vmatpush3.bf16.msra.mxu0 %v19506_v30 }
0x14e4   :  { %19411 = vmatprep.subr.bf16.mxu1 %v19410_v38  ;;  %19511 = vmatprep.subr.bf16.mxu0 %v19510_v4 }
0x14e7   :  { %19413 = vmatpush3.bf16.msra.mxu1 %v19410_v38  ;;  %19513 = vmatpush3.bf16.msra.mxu0 %v19510_v4 }
0x14e8   :  { %19415 = vmatprep.subr.bf16.mxu1 %v19414_v39  ;;  %19515 = vmatprep.subr.bf16.mxu0 %v19514_v6 }
0x14eb   :  { %19417 = vmatpush3.bf16.msra.mxu1 %v19414_v39  ;;  %19517 = vmatpush3.bf16.msra.mxu0 %v19514_v6 }
0x14ec   :  { %19419 = vmatprep.subr.bf16.mxu1 %v19418_v43  ;;  %19519 = vmatprep.subr.bf16.mxu0 %v21611_v59 }
0x14ef   :  { %19421 = vmatpush3.bf16.msra.mxu1 %v19418_v43  ;;  %19521 = vmatpush3.bf16.msra.mxu0 %v21611_v59  ;;  %v19438_v59 = vpack.c.bf16 %v21639_v36, %v21634_v55 }
0x14f0   :  { %19423 = vmatprep.subr.bf16.mxu1 %v21615_v58  ;;  %19523 = vmatprep.subr.bf16.mxu0 %v21613_v16 }
0x14f3   :  { %19425 = vmatpush3.bf16.msra.mxu1 %v21615_v58  ;;  %19525 = vmatpush3.bf16.msra.mxu0 %v21613_v16  ;;  %v19446_v16 = vpack.c.bf16 %v21675_v47, %v21667_v54 }
0x14f4   :  { %19427 = vmatprep.subr.bf16.mxu1 %v21617_v17  ;;  %19527 = vmatprep.subr.bf16.mxu0 %v21619_v14 }
0x14f7   :  { %19429 = vmatpush3.bf16.msra.mxu1 %v21617_v17  ;;  %19529 = vmatpush3.bf16.msra.mxu0 %v21619_v14 }
0x14f8   :  { %19431 = vmatprep.subr.bf16.mxu1 %v21621_v28  ;;  %19531 = vmatprep.subr.bf16.mxu0 %v21456_v45 }
0x14fa   :  { %19189 = vmatmul.mubr.f32.vlgmr.msra.gmra.mrb[34].mxu0 %v21656_v19 }
0x14fb   :  { %19433 = vmatpush3.bf16.msra.mxu1 %v21621_v28  ;;  %19533 = vmatpush3.bf16.msra.mxu0 %v21456_v45  ;;  %v19442_v45 = vpack.c.bf16 %v21654_v34, %v21649_v61 }
0x14fc   :  { %19223 = vmatprep.mubr.f32.mxu0 %v21660_v10  ;;  %19435 = vmatprep.subr.bf16.mxu1 %v21623_v41 }
0x14fd   :  { %19535 = vmatprep.subr.bf16.mxu0 %v21464_v48 }
0x14fe   :  { %19084 = vmatmul.mubr.f32.vlgmr.msra.gmra.mrb[36].mxu1 %v21656_v19 }
0x14ff   :  { %19437 = vmatpush3.bf16.msra.mxu1 %v21623_v41  ;;  %19118 = vmatprep.mubr.f32.mxu1 %v21678_v8 }
0x1500   :  { %19537 = vmatpush3.bf16.msra.mxu0 %v21464_v48  ;;  %19439 = vmatprep.subr.bf16.mxu1 %v19438_v59  ;;  %v19450_v48 = vpack.c.bf16 %v21695_v22, %v21690_v20 }
0x1501   :  { %19539 = vmatprep.subr.bf16.mxu0 %v21483_v53 }
0x1503   :  { %19441 = vmatpush3.bf16.msra.mxu1 %v19438_v59 }
0x1504   :  { %19541 = vmatpush3.bf16.msra.mxu0 %v21483_v53  ;;  %19443 = vmatprep.subr.bf16.mxu1 %v19442_v45 }
0x1505   :  { %19543 = vmatprep.subr.bf16.mxu0 %v21503_v7 }
0x1507   :  { %19445 = vmatpush3.bf16.msra.mxu1 %v19442_v45 }
0x1508   :  { %19545 = vmatpush3.bf16.msra.mxu0 %v21503_v7  ;;  %19447 = vmatprep.subr.bf16.mxu1 %v19446_v16 }
0x1509   :  { %19547 = vmatprep.subr.bf16.mxu0 %v21513_v33 }
0x150b   :  { %19449 = vmatpush3.bf16.msra.mxu1 %v19446_v16 }
0x150c   :  { %19549 = vmatpush3.bf16.msra.mxu0 %v21513_v33  ;;  %19451 = vmatprep.subr.bf16.mxu1 %v19450_v48  ;;  %v17255_v33 = vld [vmem:[%s21798_s10] ss:$0 sm:$0xff] }
0x150d   :  { %19551 = vmatprep.subr.bf16.mxu0 %v21569_v27 }
0x150f   :  { %19453 = vmatpush3.bf16.msra.mxu1 %v19450_v48 }
0x1510   :  { %19553 = vmatpush3.bf16.msra.mxu0 %v21569_v27  ;;  %19455 = vmatprep.subr.bf16.mxu1 %v21625_v23 }
0x1511   :  { %19555 = vmatprep.subr.bf16.mxu0 %v21581_v26 }
0x1513   :  { %19457 = vmatpush3.bf16.msra.mxu1 %v21625_v23 }
0x1514   :  { %19557 = vmatpush3.bf16.msra.mxu0 %v21581_v26  ;;  %19459 = vmatprep.subr.bf16.mxu1 %v21627_v24 }
0x1515   :  { %19559 = vmatprep.subr.bf16.mxu0 %v21593_v52 }
0x1517   :  { %19461 = vmatpush3.bf16.msra.mxu1 %v21627_v24 }
0x1518   :  { %19561 = vmatpush3.bf16.msra.mxu0 %v21593_v52  ;;  %19463 = vmatprep.subr.bf16.mxu1 %v21629_v56 }
0x151b   :  { %19224 = vmatmul.mubr.f32.vlgmr.msra.gmra.mrb[34].mxu0 %v21656_v19  ;;  %19465 = vmatpush3.bf16.msra.mxu1 %v21629_v56 }
0x151e   :  { %19119 = vmatmul.mubr.f32.vlgmr.msra.gmra.mrb[36].mxu1 %v21670_v44 }
0x15ee   :  { %v19225_v53 = vpop.f32.mrb[34].mxu0 }
0x15ef   :  { %v17176_v7 = vpop.f32.mrb[35].mxu0 }
0x15f1   :  { %v19120_v27 = vpop.f32.mrb[36].mxu1 }
0x15f2   :  { %v19568_v26 = vadd.f32 %v19120_v27, %v17255_v33  ;;  %v16860_v58 = vpop.f32.mrb[37].mxu1 }
0x15f3   :  { %v19570_v17 = vadd.f32 %v17255_v33, %v16860_v58 }
0x15f4   :  { %v19569_v14 = vadd.f32 %v19568_v26, %v19225_v53 }
0x15f5   :  { %v19571_v52 = vadd.f32 %v19570_v17, %v17176_v7 }
0x15f6   :  { %v17187_v28 = vadd.f32 %v19569_v14, %v21526_v11 }
0x15f7   :  { %v17186_v41 = vadd.f32 %v19571_v52, %v21528_v3 }
0x15f8   :  { %v17193_v23 = vsel %vm58_vm0, %v17187_v28, 0.0 }
0x15f9   :  { %17194 = vadd.xlane.f32.xlu1 %v17193_v23  ;;  %v17190_v24 = vsel %vm58_vm0, %v17186_v41, 0.0 }
0x15fa   :  { %17191 = vadd.xlane.f32.xlu0 %v17190_v24 }
0x1686   :  { %v17195_v56 = vpop.xlane.xlu1 %17194 }
0x1687   :  { %v17197_v55 = vmul.f32 0.03125, %v17195_v56  ;;  %v17192_v36 = vpop.xlane.xlu0 %17191 }
0x1688   :  { %v17196_v61 = vmul.f32 0.03125, %v17192_v36 }
0x1689   :  { %v17199_v34 = vsub.f32 %v17187_v28, %v17197_v55 }
0x168a   :  { %v17198_v19 = vsub.f32 %v17186_v41, %v17196_v61 }
0x168b   :  { %v17201_v10 = vmul.f32 %v17199_v34, %v17199_v34 }
0x168c   :  { %v17200_v54 = vmul.f32 %v17198_v19, %v17198_v19 }
0x168d   :  { %v17205_v44 = vsel %vm58_vm0, %v17201_v10, 0.0 }
0x168e   :  { %17206 = vadd.xlane.f32.xlu1 %v17205_v44  ;;  %v17202_v11 = vsel %vm58_vm0, %v17200_v54, 0.0 }
0x168f   :  { %17203 = vadd.xlane.f32.xlu0 %v17202_v11 }
0x171b   :  { %v17207_v3 = vpop.xlane.xlu1 %17206 }
0x171c   :  { %v17209_v47 = vmul.f32 0.03125, %v17207_v3  ;;  %v17204_v8 = vpop.xlane.xlu0 %17203 }
0x171d   :  { %v17208_v49 = vmul.f32 0.03125, %v17204_v8 }
0x171e   :  { %v17211_v9 = vadd.f32 1e-05, %v17209_v47 }
0x171f   :  { %v17210_v2 = vadd.f32 1e-05, %v17208_v49 }
0x1720   :  { %20032 = vrsqrt.f32 %v17211_v9 }
0x1721   :  { %20034 = vrsqrt.f32 %v17210_v2 }
0x172a   :  { %v20033_v62 = vpop.eup %20032 }
0x172b   :  { %v20035_v37 = vpop.eup %20034  ;;  %v17215_v50 = vmul.f32 %v20033_v62, %v17199_v34 }
0x172c   :  { %v17214_v32 = vmul.f32 %v20035_v37, %v17198_v19 }
0x172d   :  { %v17223_v51 = vmul.f32 %v17256_v15, %v17215_v50 }
0x172e   :  { %v17222_v20 = vmul.f32 %v17256_v15, %v17214_v32 }
0x172f   :  { %v17231_v22 = vadd.f32 %v17257_v1, %v17223_v51 }
0x1730   :  { %v17230_v0 = vadd.f32 %v17257_v1, %v17222_v20 }
0x1731   :  { %17233 = vst.msk [vmem:[#allocation2 + $0x8] sm:$0xff] %vm58_vm0, %v17231_v22 }
0x1732   :  { %17232 = vst.msk [vmem:[#allocation2] sm:$0xff] %vm58_vm0, %v17230_v0 }
0x1733   :  { %20049 = shalt.err (!%p20046_p4)
}
0x1734   :  { %s20050_s30 = scalar_lea.hbm %s21801_s13, 256 }
0x1735   :  { %p20051_p5 = scmp.ne.s32.totalorder %s21801_s13, %s20050_s30  ;;  %p20054_p6 = scmp.lt.u32.totalorder %s20050_s30, %s21801_s13 }
0x1737   :  { %p20056_p7 = pnand %p20054_p6, %p20051_p5 }
0x1739   :  { %20059 = shalt.err (!%p20056_p7)
}
0x173a   :  { %s20095_s6 = smov 128  }
0x173b   :  { %17245 = dma.vmem_to_hbm [thread:$0]  %s17240_s28, 256, %s21801_s13, [#allocation3], %s20095_s6, %s20095_s6, %s20088_s25  }
0x173c   :  { %20060 = dma.done.wait [#allocation3], 256  }
0x173d   :  { %20061 = vsyncadd [#allocation3], 4294967040 }
0x173e   :  { %17249 = vsyncpa [#allocation3], 1 }

</bundles_post_ra>
